<compile_context>
chip_gen: v5e
topology: v5e:2x2
jax: 0.10.0
libtpu: 0.0.40
codegen_flags: <defaults>
</compile_context>

<pallas_src>
import jax
import jax.numpy as jnp
from jax.experimental import pallas as pl
from jax.experimental.pallas import tpu as pltpu


# ---------------------------------------------------------------------------
# Fused kernel: one grid step == whole batch
# ---------------------------------------------------------------------------
def _fused_kernel(p_ref, w1_ref, b1_ref, w2_ref, mask_ref, rowsel_ref, sel_ref,
                  b2_ref, feat_ref, logits_ref):
    """
    p_ref      : (16*B*64, 27)  im2col rows, row = p*(B*64) + b*64 + s
                                (p = 4x4 pool-window position, s = oh*7+ow, s>=49 pad)
    w1_ref     : (27, 16)       conv weight, rows ordered (ky, kx, c)
    b1_ref     : (1, 16)        conv bias
    w2_ref     : (16, 192)      linear weight block: w2[oc, s*3+n] = lin_w[n, oc*49+s]
                                (zero for s >= 49)
    mask_ref   : (B*64, 192)    0/1: mask[b*64+s, s'*3+n] = (s == s')
    rowsel_ref : (B, B*64)      0/1: rowsel[b, b'*64+s] = (b == b')
    sel_ref    : (192, 3)       0/1: sel[s'*3+n', n] = (n' == n)
    b2_ref     : (1, 3)         linear bias
    feat_ref   : (16, B*64)     pooled features, lane-dense: feat[oc, b*64+s]
    logits_ref : (B, 3)
    """
    blk = feat_ref.shape[1]              # B * 64 pooled rows (b-major, s-minor)
    npos = p_ref.shape[0] // blk         # 16 pooling-window positions

    # Conv (im2col matmul) + bias + ReLU for the whole batch in ONE matmul.
    conv = jnp.dot(p_ref[...], w1_ref[...], preferred_element_type=jnp.float32)
    conv = jnp.maximum(conv + b1_ref[...], 0.0)                  # (16*B*64, 16)

    # MaxPool2d(4): rows ordered (p, b, s) -> pooling is an elementwise max over
    # 16 contiguous, tile-aligned row blocks of B*64 rows each.
    pooled = conv[0:blk, :]
    for p in range(1, npos):
        pooled = jnp.maximum(pooled, conv[p * blk:(p + 1) * blk, :])   # (B*64, 16)

    # Lane-dense feature output: last dim 128 -> unmasked full-lane stores.
    feat_ref[...] = pooled.T                                     # (16, B*64)

    # Linear(784, 3) with no serialized per-channel dots and no minor-dim reshape:
    #   V[(b,s), (s',n)] = sum_oc pooled[(b,s), oc] * lin_w[n, oc*49+s']
    #   mask keeps s' == s, rowsel sums each batch's rows, sel collapses (s',n) -> n.
    v = jnp.dot(pooled, w2_ref[...], preferred_element_type=jnp.float32)   # (B*64, 192)
    v = v * mask_ref[...]
    t = jnp.dot(rowsel_ref[...], v, preferred_element_type=jnp.float32)    # (B, 192)
    logits_ref[...] = (jnp.dot(t, sel_ref[...],
                               preferred_element_type=jnp.float32)
                       + b2_ref[...])                                       # (B, 3)


# ---------------------------------------------------------------------------
# Forward pass of CNN_problem3_1
# ---------------------------------------------------------------------------
def cnn_problem3_1_forward(x, params):
    """x: (B, 3, 28, 28) NCHW.  Returns (logits (B,3), features (B,784))."""
    conv_w, conv_b, lin_w, lin_b = params
    x = x.astype(jnp.float32)                     # matches x.float() in PyTorch
    B, C, H, W = x.shape
    OC = conv_w.shape[0]                          # 16
    KH = KW = 3
    P = 4                                         # MaxPool2d(4)
    OH, OW = H // P, W // P                       # 7, 7
    S = OH * OW                                   # 49 pooled pixels
    SPAD = 64                                     # padded so pooling slices are aligned
    NPOS = P * P                                  # 16 pool-window positions
    BLK = B * SPAD                                # 128 pooled rows
    ROWS = NPOS * BLK                             # 2048 im2col rows
    K = C * KH * KW                               # 27
    NCLS = lin_w.shape[0]                         # 3
    f32 = jnp.float32

    # ---- host prep: pad + 9-slice concat + one 6-D reshape/transpose (tiny) ----
    xn = jnp.transpose(x, (0, 2, 3, 1))                               # (B,28,28,3)
    xp = jnp.pad(xn, ((0, 0), (1, 1), (1, 1), (0, 0)))                # (B,30,30,3)
    patches9 = jnp.concatenate(
        [xp[:, ky:ky + H, kx:kx + W, :] for ky in range(KH) for kx in range(KW)],
        axis=-1)                                                      # (B,28,28,27)
    p6 = patches9.reshape(B, OH, P, OW, P, K)                         # [b,oh,ph,ow,pw,k]
    p6 = jnp.transpose(p6, (2, 4, 0, 1, 3, 5))                        # [ph,pw,b,oh,ow,k]
    p4 = p6.reshape(NPOS, B, S, K)
    p4 = jnp.pad(p4, ((0, 0), (0, 0), (0, SPAD - S), (0, 0)))         # pad s only
    patches = p4.reshape(ROWS, K)                                     # (2048, 27)

    w1 = conv_w.transpose(2, 3, 1, 0).reshape(K, OC)                  # (27, 16)
    b1 = conv_b.reshape(1, OC)                                        # (1, 16)
    w2 = jnp.pad(lin_w.reshape(NCLS, OC, S).transpose(1, 2, 0),
                 ((0, 0), (0, SPAD - S), (0, 0))).reshape(OC, SPAD * NCLS)  # (16,192)
    b2 = lin_b.reshape(1, NCLS)                                       # (1, 3)
    # Constant 0/1 selector matrices (constant-folded by XLA, tiny DMA).
    mask = jnp.tile(jnp.repeat(jnp.eye(SPAD, dtype=f32), NCLS, axis=1), (B, 1))  # (128,192)
    rowsel = jnp.repeat(jnp.eye(B, dtype=f32), SPAD, axis=1)                      # (B,128)
    sel = jnp.tile(jnp.eye(NCLS, dtype=f32), (SPAD, 1))                           # (192,3)

    featr, logits = pl.pallas_call(
        _fused_kernel,
        out_shape=(
            jax.ShapeDtypeStruct((OC, BLK), f32),
            jax.ShapeDtypeStruct((B, NCLS), f32),
        ),
        grid=(1,),
        in_specs=[
            pl.BlockSpec((ROWS, K), lambda i: (0, 0)),
            pl.BlockSpec((K, OC), lambda i: (0, 0)),
            pl.BlockSpec((1, OC), lambda i: (0, 0)),
            pl.BlockSpec((OC, SPAD * NCLS), lambda i: (0, 0)),
            pl.BlockSpec((BLK, SPAD * NCLS), lambda i: (0, 0)),
            pl.BlockSpec((B, BLK), lambda i: (0, 0)),
            pl.BlockSpec((SPAD * NCLS, NCLS), lambda i: (0, 0)),
            pl.BlockSpec((1, NCLS), lambda i: (0, 0)),
        ],
        out_specs=(
            pl.BlockSpec((OC, BLK), lambda i: (0, 0)),
            pl.BlockSpec((B, NCLS), lambda i: (0, 0)),
        ),
        compiler_params=pltpu.CompilerParams(dimension_semantics=("arbitrary",)),
    )(patches, w1, b1, w2, mask, rowsel, sel, b2)

    # Tiny (8 KB) reorder to PyTorch x.view(B, -1) flatten order (oc-major), on host.
    feat = featr.reshape(OC, B, SPAD)[:, :, :S].transpose(1, 0, 2).reshape(B, OC * S)
    return logits, feat


# ---------------------------------------------------------------------------
# Pure-JAX reference (same math) for a sanity check
# ---------------------------------------------------------------------------
def reference_forward(x, params):
    conv_w, conv_b, lin_w, lin_b = params
    x = x.astype(jnp.float32)
    B = x.shape[0]
    y = jax.lax.conv_general_dilated(
        x, conv_w, window_strides=(1, 1), padding=((1, 1), (1, 1)),
        dimension_numbers=("NCHW", "OIHW", "NCHW"))
    y = jnp.maximum(y + conv_b[None, :, None, None], 0.0)            # (B,16,28,28)
    pooled = y.reshape(B, 16, 7, 4, 7, 4).max(axis=(3, 5))           # (B,16,7,7)
    feat = pooled.reshape(B, 16 * 7 * 7)
    logits = feat @ lin_w.T + lin_b[None, :]
    return logits, feat


if __name__ == "__main__":
    key = jax.random.PRNGKey(0)
    k_x, k_cw, k_cb, k_lw, k_lb = jax.random.split(key, 5)

    # Input spatial size is dictated by Linear(16*7*7, 3): 28x28, 3 channels.
    B = 2
    x = jax.random.normal(k_x, (B, 3, 28, 28), dtype=jnp.float32)

    conv_w = 0.1 * jax.random.normal(k_cw, (16, 3, 3, 3), dtype=jnp.float32)
    conv_b = 0.1 * jax.random.normal(k_cb, (16,), dtype=jnp.float32)
    lin_w = 0.05 * jax.random.normal(k_lw, (3, 16 * 7 * 7), dtype=jnp.float32)
    lin_b = 0.05 * jax.random.normal(k_lb, (3,), dtype=jnp.float32)
    params = (conv_w, conv_b, lin_w, lin_b)

    fwd = jax.jit(cnn_problem3_1_forward)
    logits, feat = fwd(x, params)
    logits = jax.block_until_ready(logits)
    feat = jax.block_until_ready(feat)

    ref_logits, ref_feat = reference_forward(x, params)
    assert logits.shape == (B, 3) and feat.shape == (B, 784)
    assert jnp.allclose(feat, ref_feat, rtol=1e-3, atol=1e-3)
    assert jnp.allclose(logits, ref_logits, rtol=1e-3, atol=1e-3)

    print("KERNEL_OK")
</pallas_src>

<mosaic_0001>
module attributes {stable_mosaic.version = 11 : i64} {
  func.func @_fused_kernel(%arg0: i32, %arg1: memref<2048x27xf32, #tpu.memory_space<vmem>>, %arg2: memref<27x16xf32, #tpu.memory_space<vmem>>, %arg3: memref<1x16xf32, #tpu.memory_space<vmem>>, %arg4: memref<16x192xf32, #tpu.memory_space<vmem>>, %arg5: memref<128x192xf32, #tpu.memory_space<vmem>>, %arg6: memref<2x128xf32, #tpu.memory_space<vmem>>, %arg7: memref<192x3xf32, #tpu.memory_space<vmem>>, %arg8: memref<1x3xf32, #tpu.memory_space<vmem>>, %arg9: memref<16x128xf32, #tpu.memory_space<vmem>>, %arg10: memref<2x3xf32, #tpu.memory_space<vmem>>) attributes {dimension_semantics = [#tpu.dimension_semantics<arbitrary>], iteration_bounds = array<i64: 1>, scalar_prefetch = 0 : i64, scratch_operands = 0 : i64, tpu.core_type = #tpu.core_type<tc>, window_params = [{pipeline_mode = #tpu.pipeline_mode<synchronous>, transform_indices = @transform_0, window_bounds = array<i64: 2048, 27>}, {pipeline_mode = #tpu.pipeline_mode<synchronous>, transform_indices = @transform_1, window_bounds = array<i64: 27, 16>}, {pipeline_mode = #tpu.pipeline_mode<synchronous>, transform_indices = @transform_2, window_bounds = array<i64: 1, 16>}, {pipeline_mode = #tpu.pipeline_mode<synchronous>, transform_indices = @transform_3, window_bounds = array<i64: 16, 192>}, {pipeline_mode = #tpu.pipeline_mode<synchronous>, transform_indices = @transform_4, window_bounds = array<i64: 128, 192>}, {pipeline_mode = #tpu.pipeline_mode<synchronous>, transform_indices = @transform_5, window_bounds = array<i64: 2, 128>}, {pipeline_mode = #tpu.pipeline_mode<synchronous>, transform_indices = @transform_6, window_bounds = array<i64: 192, 3>}, {pipeline_mode = #tpu.pipeline_mode<synchronous>, transform_indices = @transform_7, window_bounds = array<i64: 1, 3>}, {pipeline_mode = #tpu.pipeline_mode<synchronous>, transform_indices = @transform_8, window_bounds = array<i64: 16, 128>}, {pipeline_mode = #tpu.pipeline_mode<synchronous>, transform_indices = @transform_9, window_bounds = array<i64: 2, 3>}]} {
    %c0 = arith.constant 0 : index
    %c0_0 = arith.constant 0 : index
    %0 = vector.load %arg1[%c0, %c0_0] : memref<2048x27xf32, #tpu.memory_space<vmem>>, vector<2048x27xf32>
    %c0_1 = arith.constant 0 : index
    %c0_2 = arith.constant 0 : index
    %1 = vector.load %arg2[%c0_1, %c0_2] : memref<27x16xf32, #tpu.memory_space<vmem>>, vector<27x16xf32>
    %cst = arith.constant dense<0.000000e+00> : vector<2048x16xf32>
    %2 = tpu.matmul %0, %1, %cst {dimension_numbers = #tpu.dot_dimension_numbers<[1], [0], [0], [1], [0, 0, 1, 1], [], []>} : vector<2048x27xf32>, vector<27x16xf32>, vector<2048x16xf32> -> vector<2048x16xf32>
    %c0_3 = arith.constant 0 : index
    %c0_4 = arith.constant 0 : index
    %3 = vector.load %arg3[%c0_3, %c0_4] : memref<1x16xf32, #tpu.memory_space<vmem>>, vector<1x16xf32>
    %4 = vector.broadcast %3 : vector<1x16xf32> to vector<2048x16xf32>
    %5 = arith.addf %2, %4 : vector<2048x16xf32>
    %cst_5 = arith.constant 0.000000e+00 : f32
    %6 = vector.broadcast %cst_5 : f32 to vector<2048x16xf32>
    %7 = arith.maximumf %5, %6 : vector<2048x16xf32>
    %8 = vector.extract_strided_slice %7 {offsets = [0, 0], sizes = [128, 16], strides = [1, 1]} : vector<2048x16xf32> to vector<128x16xf32>
    %9 = vector.extract_strided_slice %7 {offsets = [128, 0], sizes = [128, 16], strides = [1, 1]} : vector<2048x16xf32> to vector<128x16xf32>
    %10 = arith.maximumf %8, %9 : vector<128x16xf32>
    %11 = vector.extract_strided_slice %7 {offsets = [256, 0], sizes = [128, 16], strides = [1, 1]} : vector<2048x16xf32> to vector<128x16xf32>
    %12 = arith.maximumf %10, %11 : vector<128x16xf32>
    %13 = vector.extract_strided_slice %7 {offsets = [384, 0], sizes = [128, 16], strides = [1, 1]} : vector<2048x16xf32> to vector<128x16xf32>
    %14 = arith.maximumf %12, %13 : vector<128x16xf32>
    %15 = vector.extract_strided_slice %7 {offsets = [512, 0], sizes = [128, 16], strides = [1, 1]} : vector<2048x16xf32> to vector<128x16xf32>
    %16 = arith.maximumf %14, %15 : vector<128x16xf32>
    %17 = vector.extract_strided_slice %7 {offsets = [640, 0], sizes = [128, 16], strides = [1, 1]} : vector<2048x16xf32> to vector<128x16xf32>
    %18 = arith.maximumf %16, %17 : vector<128x16xf32>
    %19 = vector.extract_strided_slice %7 {offsets = [768, 0], sizes = [128, 16], strides = [1, 1]} : vector<2048x16xf32> to vector<128x16xf32>
    %20 = arith.maximumf %18, %19 : vector<128x16xf32>
    %21 = vector.extract_strided_slice %7 {offsets = [896, 0], sizes = [128, 16], strides = [1, 1]} : vector<2048x16xf32> to vector<128x16xf32>
    %22 = arith.maximumf %20, %21 : vector<128x16xf32>
    %23 = vector.extract_strided_slice %7 {offsets = [1024, 0], sizes = [128, 16], strides = [1, 1]} : vector<2048x16xf32> to vector<128x16xf32>
    %24 = arith.maximumf %22, %23 : vector<128x16xf32>
    %25 = vector.extract_strided_slice %7 {offsets = [1152, 0], sizes = [128, 16], strides = [1, 1]} : vector<2048x16xf32> to vector<128x16xf32>
    %26 = arith.maximumf %24, %25 : vector<128x16xf32>
    %27 = vector.extract_strided_slice %7 {offsets = [1280, 0], sizes = [128, 16], strides = [1, 1]} : vector<2048x16xf32> to vector<128x16xf32>
    %28 = arith.maximumf %26, %27 : vector<128x16xf32>
    %29 = vector.extract_strided_slice %7 {offsets = [1408, 0], sizes = [128, 16], strides = [1, 1]} : vector<2048x16xf32> to vector<128x16xf32>
    %30 = arith.maximumf %28, %29 : vector<128x16xf32>
    %31 = vector.extract_strided_slice %7 {offsets = [1536, 0], sizes = [128, 16], strides = [1, 1]} : vector<2048x16xf32> to vector<128x16xf32>
    %32 = arith.maximumf %30, %31 : vector<128x16xf32>
    %33 = vector.extract_strided_slice %7 {offsets = [1664, 0], sizes = [128, 16], strides = [1, 1]} : vector<2048x16xf32> to vector<128x16xf32>
    %34 = arith.maximumf %32, %33 : vector<128x16xf32>
    %35 = vector.extract_strided_slice %7 {offsets = [1792, 0], sizes = [128, 16], strides = [1, 1]} : vector<2048x16xf32> to vector<128x16xf32>
    %36 = arith.maximumf %34, %35 : vector<128x16xf32>
    %37 = vector.extract_strided_slice %7 {offsets = [1920, 0], sizes = [128, 16], strides = [1, 1]} : vector<2048x16xf32> to vector<128x16xf32>
    %38 = arith.maximumf %36, %37 : vector<128x16xf32>
    %39 = tpu.transpose %38, [1, 0] : vector<128x16xf32> -> vector<16x128xf32>
    %c0_6 = arith.constant 0 : index
    %c0_7 = arith.constant 0 : index
    %40 = vector.load %arg9[%c0_6, %c0_7] : memref<16x128xf32, #tpu.memory_space<vmem>>, vector<16x128xf32>
    tpu.vector_store %arg9[%c0_6, %c0_7], %39 {strides = array<i32>} : memref<16x128xf32, #tpu.memory_space<vmem>>, vector<16x128xf32>,
    %c0_8 = arith.constant 0 : index
    %c0_9 = arith.constant 0 : index
    %41 = vector.load %arg4[%c0_8, %c0_9] : memref<16x192xf32, #tpu.memory_space<vmem>>, vector<16x192xf32>
    %cst_10 = arith.constant dense<0.000000e+00> : vector<128x192xf32>
    %42 = tpu.matmul %38, %41, %cst_10 {dimension_numbers = #tpu.dot_dimension_numbers<[1], [0], [0], [1], [0, 0, 1, 1], [], []>} : vector<128x16xf32>, vector<16x192xf32>, vector<128x192xf32> -> vector<128x192xf32>
    %c0_11 = arith.constant 0 : index
    %c0_12 = arith.constant 0 : index
    %43 = vector.load %arg5[%c0_11, %c0_12] : memref<128x192xf32, #tpu.memory_space<vmem>>, vector<128x192xf32>
    %44 = arith.mulf %42, %43 : vector<128x192xf32>
    %c0_13 = arith.constant 0 : index
    %c0_14 = arith.constant 0 : index
    %45 = vector.load %arg6[%c0_13, %c0_14] : memref<2x128xf32, #tpu.memory_space<vmem>>, vector<2x128xf32>
    %cst_15 = arith.constant dense<0.000000e+00> : vector<2x192xf32>
    %46 = tpu.matmul %45, %44, %cst_15 {dimension_numbers = #tpu.dot_dimension_numbers<[1], [0], [0], [1], [0, 0, 1, 1], [], []>} : vector<2x128xf32>, vector<128x192xf32>, vector<2x192xf32> -> vector<2x192xf32>
    %c0_16 = arith.constant 0 : index
    %c0_17 = arith.constant 0 : index
    %47 = vector.load %arg7[%c0_16, %c0_17] : memref<192x3xf32, #tpu.memory_space<vmem>>, vector<192x3xf32>
    %cst_18 = arith.constant dense<0.000000e+00> : vector<2x3xf32>
    %48 = tpu.matmul %46, %47, %cst_18 {dimension_numbers = #tpu.dot_dimension_numbers<[1], [0], [0], [1], [0, 0, 1, 1], [], []>} : vector<2x192xf32>, vector<192x3xf32>, vector<2x3xf32> -> vector<2x3xf32>
    %c0_19 = arith.constant 0 : index
    %c0_20 = arith.constant 0 : index
    %49 = vector.load %arg8[%c0_19, %c0_20] : memref<1x3xf32, #tpu.memory_space<vmem>>, vector<1x3xf32>
    %50 = vector.broadcast %49 : vector<1x3xf32> to vector<2x3xf32>
    %51 = arith.addf %48, %50 : vector<2x3xf32>
    %c0_21 = arith.constant 0 : index
    %c0_22 = arith.constant 0 : index
    %52 = vector.load %arg10[%c0_21, %c0_22] : memref<2x3xf32, #tpu.memory_space<vmem>>, vector<2x3xf32>
    tpu.vector_store %arg10[%c0_21, %c0_22], %51 {strides = array<i32>} : memref<2x3xf32, #tpu.memory_space<vmem>>, vector<2x3xf32>,
    return
  }
  func.func @transform_0(%arg0: i32) -> (i32, i32) {
    %c0_i32 = arith.constant 0 : i32
    %c0_i32_0 = arith.constant 0 : i32
    %c0_i32_1 = arith.constant 0 : i32
    return %c0_i32, %c0_i32_0 : i32, i32
  }
  func.func @transform_1(%arg0: i32) -> (i32, i32) {
    %c0_i32 = arith.constant 0 : i32
    %c0_i32_0 = arith.constant 0 : i32
    %c0_i32_1 = arith.constant 0 : i32
    return %c0_i32, %c0_i32_0 : i32, i32
  }
  func.func @transform_2(%arg0: i32) -> (i32, i32) {
    %c0_i32 = arith.constant 0 : i32
    %c0_i32_0 = arith.constant 0 : i32
    %c0_i32_1 = arith.constant 0 : i32
    return %c0_i32, %c0_i32_0 : i32, i32
  }
  func.func @transform_3(%arg0: i32) -> (i32, i32) {
    %c0_i32 = arith.constant 0 : i32
    %c0_i32_0 = arith.constant 0 : i32
    %c0_i32_1 = arith.constant 0 : i32
    return %c0_i32, %c0_i32_0 : i32, i32
  }
  func.func @transform_4(%arg0: i32) -> (i32, i32) {
    %c0_i32 = arith.constant 0 : i32
    %c0_i32_0 = arith.constant 0 : i32
    %c0_i32_1 = arith.constant 0 : i32
    return %c0_i32, %c0_i32_0 : i32, i32
  }
  func.func @transform_5(%arg0: i32) -> (i32, i32) {
    %c0_i32 = arith.constant 0 : i32
    %c0_i32_0 = arith.constant 0 : i32
    %c0_i32_1 = arith.constant 0 : i32
    return %c0_i32, %c0_i32_0 : i32, i32
  }
  func.func @transform_6(%arg0: i32) -> (i32, i32) {
    %c0_i32 = arith.constant 0 : i32
    %c0_i32_0 = arith.constant 0 : i32
    %c0_i32_1 = arith.constant 0 : i32
    return %c0_i32, %c0_i32_0 : i32, i32
  }
  func.func @transform_7(%arg0: i32) -> (i32, i32) {
    %c0_i32 = arith.constant 0 : i32
    %c0_i32_0 = arith.constant 0 : i32
    %c0_i32_1 = arith.constant 0 : i32
    return %c0_i32, %c0_i32_0 : i32, i32
  }
  func.func @transform_8(%arg0: i32) -> (i32, i32) {
    %c0_i32 = arith.constant 0 : i32
    %c0_i32_0 = arith.constant 0 : i32
    %c0_i32_1 = arith.constant 0 : i32
    return %c0_i32, %c0_i32_0 : i32, i32
  }
  func.func @transform_9(%arg0: i32) -> (i32, i32) {
    %c0_i32 = arith.constant 0 : i32
    %c0_i32_0 = arith.constant 0 : i32
    %c0_i32_1 = arith.constant 0 : i32
    return %c0_i32, %c0_i32_0 : i32, i32
  }
}

</mosaic_0001>

<bundles_post_ra>
// kernel: tile.17
= control target key start
LH: loop header
LB: loop body
LE: loop exit
PB: predicated region body
PF: predicated region fallthrough
CT: control target
= control target key end

     0   :  { %vm5_vm0 = vcmask 1041409   ;;  %vm9_vm1 = vcmask 1042434   ;;  %vm33_vm2 = vcmask 15360   ;;  %s1201_s28 = smov 126   ;;  %s1202_s4 = smov 120   ;;  %vm11_vm3 = vcmask 23552   ;;  %s2014_s0 = inlined_call_operand.vmem [shape: f32[64,3,3], index: 0, kind: input, shape index: {}]   ;;  %s2015_s1 = inlined_call_operand.vmem [shape: f32[192,3], index: 1, kind: output, shape index: {}]  }
   0x1   :  { %v945_v0 = vld [vmem:[%s2014_s0 + $0x2a] sm:$0x1]   ;;  %v954_v9 = vld [vmem:[%s2014_s0 + $0x28] sm:$0x1]   ;;  %v951_v15 = vld [vmem:[%s2014_s0 + $0x29] sm:$0x1]  }
   0x2   :  { %v946_v1 = vld [vmem:[%s2014_s0 + $0x69] sm:$0x2]   ;;  %v955_v11 = vld [vmem:[%s2014_s0 + $0x67] sm:$0x2]   ;;  %v952_v16 = vld [vmem:[%s2014_s0 + $0x68] sm:$0x2]  }
   0x3   :  { %v18_v2 = vsel %vm5_vm0, %v946_v1, %v945_v0  ;;  %v947_v3 = vld [vmem:[%s2014_s0 + $0xa8] sm:$0x4]   ;;  %v956_v12 = vld [vmem:[%s2014_s0 + $0xa6] sm:$0x4]   ;;  %v61_v14 = vsel %vm5_vm0, %v955_v11, %v954_v9  ;;  %v957_v18 = vld [vmem:[%s2014_s0 + $0x27] sm:$0x1]   ;;  %v47_v20 = vsel %vm5_vm0, %v952_v16, %v951_v15 }
   0x4   :  { %v948_v4 = vld [vmem:[%s2014_s0 + $0x2a] sm:$0x1]   ;;  %v22_v6 = vsel %vm9_vm1, %v947_v3, %v18_v2  ;;  %v65_v17 = vsel %vm9_vm1, %v956_v12, %v61_v14  ;;  %v958_v19 = vld [vmem:[%s2014_s0 + $0x66] sm:$0x2]   ;;  %v953_v21 = vld [vmem:[%s2014_s0 + $0xa7] sm:$0x4]  }
   0x5   :  { %v949_v5 = vld [vmem:[%s2014_s0 + $0x69] sm:$0x2]   ;;  %66 = vrot.lane.b32.xlu1 %v65_v17, %s1202_s4  ;;  %v75_v22 = vsel %vm5_vm0, %v958_v19, %v957_v18  ;;  %v959_v23 = vld [vmem:[%s2014_s0 + $0xa5] sm:$0x4]   ;;  %v960_v24 = vld [vmem:[%s2014_s0 + $0x26] sm:$0x1]   ;;  %v51_v25 = vsel %vm9_vm1, %v953_v21, %v47_v20 }
   0x6   :  { %v28_v7 = vsel %vm5_vm0, %v949_v5, %v948_v4  ;;  %v950_v8 = vld [vmem:[%s2014_s0 + $0xa8] sm:$0x4]   ;;  %v961_v26 = vld [vmem:[%s2014_s0 + $0x65] sm:$0x2]   ;;  %v79_v28 = vsel %vm9_vm1, %v959_v23, %v75_v22  ;;  %v966_v29 = vld [vmem:[%s2014_s0 + $0x24] sm:$0x1]  }
   0x7   :  { %v32_v10 = vsel %vm9_vm1, %v950_v8, %v28_v7  ;;  %v962_v27 = vld [vmem:[%s2014_s0 + $0xa4] sm:$0x4]   ;;  %v89_v30 = vsel %vm5_vm0, %v961_v26, %v960_v24  ;;  %v967_v31 = vld [vmem:[%s2014_s0 + $0x63] sm:$0x2]   ;;  %v969_v32 = vld [vmem:[%s2014_s0 + $0x23] sm:$0x1]  }
   0x8   :  { %v34_v13 = vsel %vm33_vm2, %v32_v10, %v22_v6  ;;  %v970_v33 = vld [vmem:[%s2014_s0 + $0x62] sm:$0x2]   ;;  %v93_v34 = vsel %vm9_vm1, %v962_v27, %v89_v30  ;;  %s1203_s23 = smov 123   ;;  %s1204_s24 = smov 114   ;;  %v963_v35 = vld [vmem:[%s2014_s0 + $0x25] sm:$0x1]   ;;  %v117_v37 = vsel %vm5_vm0, %v967_v31, %v966_v29 }
   0x9   :  { %35 = vrot.lane.b32.xlu0 %v34_v13, %s1201_s28  ;;  %94 = vrot.lane.b32.xlu2 %v93_v34, %s1204_s24  ;;  %v964_v36 = vld [vmem:[%s2014_s0 + $0x64] sm:$0x2]   ;;  %s1205_s29 = smov 117   ;;  %v968_v38 = vld [vmem:[%s2014_s0 + $0xa2] sm:$0x4]   ;;  %v131_v41 = vsel %vm5_vm0, %v970_v33, %v969_v32  ;;  %s1206_s15 = smov 108  }
   0xa   :  { %v103_v39 = vsel %vm5_vm0, %v964_v36, %v963_v35  ;;  %v965_v40 = vld [vmem:[%s2014_s0 + $0xa3] sm:$0x4]   ;;  %v971_v42 = vld [vmem:[%s2014_s0 + $0xa1] sm:$0x4]   ;;  %v121_v43 = vsel %vm9_vm1, %v968_v38, %v117_v37  ;;  %v975_v46 = vld [vmem:[%s2014_s0 + $0x21] sm:$0x1]  }
   0xb   :  { %v107_v44 = vsel %vm9_vm1, %v965_v40, %v103_v39  ;;  %v135_v45 = vsel %vm9_vm1, %v971_v42, %v131_v41  ;;  %v976_v47 = vld [vmem:[%s2014_s0 + $0x60] sm:$0x2]   ;;  %v972_v48 = vld [vmem:[%s2014_s0 + $0x22] sm:$0x1]   ;;  %v978_v50 = vld [vmem:[%s2014_s0 + $0x20] sm:$0x1]  }
   0xc   :  { %v973_v49 = vld [vmem:[%s2014_s0 + $0x61] sm:$0x2]   ;;  %v979_v51 = vld [vmem:[%s2014_s0 + $0x5f] sm:$0x2]   ;;  %s1207_s20 = smov 111   ;;  %s1208_s21 = smov 105   ;;  %v159_v52 = vsel %vm5_vm0, %v976_v47, %v975_v46 }
   0xd   :  { %80 = vrot.lane.b32.xlu1 %v79_v28, %s1205_s29  ;;  %v977_v53 = vld [vmem:[%s2014_s0 + $0x9f] sm:$0x4]   ;;  %v145_v54 = vsel %vm5_vm0, %v973_v49, %v972_v48  ;;  %v974_v55 = vld [vmem:[%s2014_s0 + $0xa0] sm:$0x4]   ;;  %v173_v56 = vsel %vm5_vm0, %v979_v51, %v978_v50  ;;  %v980_v57 = vld [vmem:[%s2014_s0 + $0x9e] sm:$0x4]  }
   0xe   :  { %v163_v58 = vsel %vm9_vm1, %v977_v53, %v159_v52  ;;  %v149_v59 = vsel %vm9_vm1, %v974_v55, %v145_v54  ;;  %v177_v60 = vsel %vm9_vm1, %v980_v57, %v173_v56  ;;  %v984_v61 = vld [vmem:[%s2014_s0 + $0x1e] sm:$0x1]   ;;  %v981_v63 = vld [vmem:[%s2014_s0 + $0x1f] sm:$0x1]   ;;  %s1209_s7 = smov 99   ;;  %s1210_s12 = smov 102  }
   0xf   :  { %v985_v62 = vld [vmem:[%s2014_s0 + $0x5d] sm:$0x2]   ;;  %v982_v0 = vld [vmem:[%s2014_s0 + $0x5e] sm:$0x2]   ;;  %v987_v1 = vld [vmem:[%s2014_s0 + $0x1d] sm:$0x1]  }
  0x10   :  { %v988_v2 = vld [vmem:[%s2014_s0 + $0x5c] sm:$0x2]   ;;  %s1211_s13 = smov 96   ;;  %v201_v3 = vsel %vm5_vm0, %v985_v62, %v984_v61  ;;  %v986_v4 = vld [vmem:[%s2014_s0 + $0x9c] sm:$0x4]   ;;  %v187_v5 = vsel %vm5_vm0, %v982_v0, %v981_v63  ;;  %s1212_s28 = smov 90  }
  0x11   :  { %52 = vrot.lane.b32.xlu0 %v51_v25, %s1203_s23  ;;  %108 = vrot.lane.b32.xlu2 %v107_v44, %s1207_s20  ;;  %v983_v6 = vld [vmem:[%s2014_s0 + $0x9d] sm:$0x4]   ;;  %v215_v7 = vsel %vm5_vm0, %v988_v2, %v987_v1  ;;  %v989_v8 = vld [vmem:[%s2014_s0 + $0x9b] sm:$0x4]   ;;  %v205_v9 = vsel %vm9_vm1, %v986_v4, %v201_v3  ;;  %s1213_s4 = smov 93   ;;  %s1214_s5 = smov 87  }
  0x12   :  { %v191_v10 = vsel %vm9_vm1, %v983_v6, %v187_v5  ;;  %v219_v11 = vsel %vm9_vm1, %v989_v8, %v215_v7  ;;  %v993_v12 = vld [vmem:[%s2014_s0 + $0x1b] sm:$0x1]   ;;  %v990_v14 = vld [vmem:[%s2014_s0 + $0x1c] sm:$0x1]   ;;  %v996_v16 = vld [vmem:[%s2014_s0 + $0x1a] sm:$0x1]  }
  0x13   :  { %v994_v13 = vld [vmem:[%s2014_s0 + $0x5a] sm:$0x2]   ;;  %v991_v15 = vld [vmem:[%s2014_s0 + $0x5b] sm:$0x2]   ;;  %v997_v17 = vld [vmem:[%s2014_s0 + $0x59] sm:$0x2]  }
  0x14   :  { %v243_v18 = vsel %vm5_vm0, %v994_v13, %v993_v12  ;;  %v995_v19 = vld [vmem:[%s2014_s0 + $0x99] sm:$0x4]   ;;  %v229_v20 = vsel %vm5_vm0, %v991_v15, %v990_v14  ;;  %v992_v21 = vld [vmem:[%s2014_s0 + $0x9a] sm:$0x4]   ;;  %v257_v22 = vsel %vm5_vm0, %v997_v17, %v996_v16  ;;  %v998_v23 = vld [vmem:[%s2014_s0 + $0x98] sm:$0x4]  }
  0x15   :  { %136 = vrot.lane.b32.xlu1 %v135_v45, %s1208_s21  ;;  %v247_v24 = vsel %vm9_vm1, %v995_v19, %v243_v18  ;;  %v233_v25 = vsel %vm9_vm1, %v992_v21, %v229_v20  ;;  %v261_v26 = vsel %vm9_vm1, %v998_v23, %v257_v22  ;;  %v1002_v27 = vld [vmem:[%s2014_s0 + $0x18] sm:$0x1]   ;;  %v999_v29 = vld [vmem:[%s2014_s0 + $0x19] sm:$0x1]   ;;  %s1215_s20 = smov 81   ;;  %s1216_s25 = smov 84  }
  0x16   :  { %v1003_v28 = vld [vmem:[%s2014_s0 + $0x57] sm:$0x2]   ;;  %v1000_v30 = vld [vmem:[%s2014_s0 + $0x58] sm:$0x2]   ;;  %v1005_v31 = vld [vmem:[%s2014_s0 + $0x17] sm:$0x1]  }
  0x17   :  { %v1006_v32 = vld [vmem:[%s2014_s0 + $0x56] sm:$0x2]   ;;  %s1217_s26 = smov 78   ;;  %v285_v33 = vsel %vm5_vm0, %v1003_v28, %v1002_v27  ;;  %v1004_v34 = vld [vmem:[%s2014_s0 + $0x96] sm:$0x4]   ;;  %v271_v35 = vsel %vm5_vm0, %v1000_v30, %v999_v29  ;;  %s1219_s17 = smov 75  }
  0x18   :  { %v1001_v36 = vld [vmem:[%s2014_s0 + $0x97] sm:$0x4]   ;;  %v299_v37 = vsel %vm5_vm0, %v1006_v32, %v1005_v31  ;;  %v1007_v38 = vld [vmem:[%s2014_s0 + $0x95] sm:$0x4]   ;;  %v289_v39 = vsel %vm9_vm1, %v1004_v34, %v285_v33  ;;  %v1011_v42 = vld [vmem:[%s2014_s0 + $0x15] sm:$0x1]  }
  0x19   :  { %122 = vrot.lane.b32.xlu0 %v121_v43, %s1206_s15  ;;  %150 = vrot.lane.b32.xlu2 %v149_v59, %s1210_s12  ;;  %v275_v40 = vsel %vm9_vm1, %v1001_v36, %v271_v35  ;;  %v303_v41 = vsel %vm9_vm1, %v1007_v38, %v299_v37  ;;  %v1012_v43 = vld [vmem:[%s2014_s0 + $0x54] sm:$0x2]   ;;  %v1008_v44 = vld [vmem:[%s2014_s0 + $0x16] sm:$0x1]   ;;  %s1218_s12 = smov 72   ;;  %s1220_s18 = smov 69  }
  0x1a   :  { %v1009_v45 = vld [vmem:[%s2014_s0 + $0x55] sm:$0x2]   ;;  %v1014_v46 = vld [vmem:[%s2014_s0 + $0x3f] sm:$0x1]   ;;  %v327_v48 = vsel %vm5_vm0, %v1012_v43, %v1011_v42  ;;  %v1013_v49 = vld [vmem:[%s2014_s0 + $0x93] sm:$0x4]  }
  0x1b   :  { %v1015_v47 = vld [vmem:[%s2014_s0 + $0x7e] sm:$0x2]   ;;  %v313_v50 = vsel %vm5_vm0, %v1009_v45, %v1008_v44  ;;  %v1010_v51 = vld [vmem:[%s2014_s0 + $0x94] sm:$0x4]   ;;  %v331_v54 = vsel %vm9_vm1, %v1013_v49, %v327_v48  ;;  %v1020_v57 = vld [vmem:[%s2014_s0 + $0x3e] sm:$0x1]  }
  0x1c   :  { %v341_v52 = vsel %vm5_vm0, %v1015_v47, %v1014_v46  ;;  %v1016_v53 = vld [vmem:[%s2014_s0 + $0xbd] sm:$0x4]   ;;  %v317_v55 = vsel %vm9_vm1, %v1010_v51, %v313_v50  ;;  %v1017_v59 = vld [vmem:[%s2014_s0 + $0x14] sm:$0x1]   ;;  %v1023_v61 = vld [vmem:[%s2014_s0 + $0x13] sm:$0x1]  }
  0x1d   :  { %178 = vrot.lane.b32.xlu1 %v177_v60, %s1211_s13  ;;  %v345_v56 = vsel %vm9_vm1, %v1016_v53, %v341_v52  ;;  %v1018_v60 = vld [vmem:[%s2014_s0 + $0x53] sm:$0x2]   ;;  %v1024_v62 = vld [vmem:[%s2014_s0 + $0x52] sm:$0x2]   ;;  %s1222_s9 = smov 66   ;;  %s1223_s10 = smov 61  }
  0x1e   :  { %v1022_v0 = vld [vmem:[%s2014_s0 + $0xbc] sm:$0x4]   ;;  %v356_v1 = vsel %vm5_vm0, %v1018_v60, %v1017_v59  ;;  %v1019_v2 = vld [vmem:[%s2014_s0 + $0x92] sm:$0x4]   ;;  %v385_v3 = vsel %vm5_vm0, %v1024_v62, %v1023_v61  ;;  %v1025_v4 = vld [vmem:[%s2014_s0 + $0x91] sm:$0x4]  }
  0x1f   :  { %v360_v6 = vsel %vm9_vm1, %v1019_v2, %v356_v1  ;;  %v389_v7 = vsel %vm9_vm1, %v1025_v4, %v385_v3  ;;  %v1029_v8 = vld [vmem:[%s2014_s0 + $0x12] sm:$0x1]   ;;  %v1032_v12 = vld [vmem:[%s2014_s0 + $0x3c] sm:$0x1]   ;;  %s1225_s30 = smov 60   ;;  %s1226_s2 = smov 57  }
  0x20   :  { %v1033_v13 = vld [vmem:[%s2014_s0 + $0x7b] sm:$0x2]   ;;  %v1031_v15 = vld [vmem:[%s2014_s0 + $0x90] sm:$0x4]   ;;  %v1028_v17 = vld [vmem:[%s2014_s0 + $0xbb] sm:$0x4]  }
  0x21   :  { %164 = vrot.lane.b32.xlu0 %v163_v58, %s1209_s7  ;;  %192 = vrot.lane.b32.xlu2 %v191_v10, %s1213_s4  ;;  %v1021_v58 = vld [vmem:[%s2014_s0 + $0x7d] sm:$0x2]   ;;  %s1221_s4 = smov 63   ;;  %v1026_v10 = vld [vmem:[%s2014_s0 + $0x3d] sm:$0x1]   ;;  %v428_v18 = vsel %vm5_vm0, %v1033_v13, %v1032_v12  ;;  %s1228_s22 = smov 55  }
  0x22   :  { %v370_v63 = vsel %vm5_vm0, %v1021_v58, %v1020_v57  ;;  %v1034_v19 = vld [vmem:[%s2014_s0 + $0xba] sm:$0x4]   ;;  %v1038_v23 = vld [vmem:[%s2014_s0 + $0x3b] sm:$0x1]   ;;  %v1041_v27 = vld [vmem:[%s2014_s0 + $0x10] sm:$0x1]  }
  0x23   :  { %v374_v5 = vsel %vm9_vm1, %v1022_v0, %v370_v63  ;;  %v432_v22 = vsel %vm9_vm1, %v1034_v19, %v428_v18  ;;  %v1042_v28 = vld [vmem:[%s2014_s0 + $0x4f] sm:$0x2]   ;;  %s1229_s23 = smov 52   ;;  %v1040_v30 = vld [vmem:[%s2014_s0 + $0xb9] sm:$0x4]   ;;  %s1230_s13 = smov 49  }
  0x24   :  { %v1037_v32 = vld [vmem:[%s2014_s0 + $0x8f] sm:$0x4]   ;;  %v472_v33 = vsel %vm5_vm0, %v1042_v28, %v1041_v27  ;;  %v1043_v34 = vld [vmem:[%s2014_s0 + $0x8e] sm:$0x4]   ;;  %v1047_v38 = vld [vmem:[%s2014_s0 + $0xf] sm:$0x1]  }
  0x25   :  { %220 = vrot.lane.b32.xlu1 %v219_v11, %s1214_s5  ;;  %v1027_v11 = vld [vmem:[%s2014_s0 + $0x7c] sm:$0x2]   ;;  %v476_v37 = vsel %vm9_vm1, %v1043_v34, %v472_v33  ;;  %v1044_v42 = vld [vmem:[%s2014_s0 + $0x3a] sm:$0x1]   ;;  %s1231_s14 = smov 51   ;;  %s1232_s19 = smov 48  }
  0x26   :  { %v399_v16 = vsel %vm5_vm0, %v1027_v11, %v1026_v10  ;;  %v1045_v43 = vld [vmem:[%s2014_s0 + $0x79] sm:$0x2]   ;;  %v944_v44 = vld [vmem:[%s2014_s0 + $0x7e] sm:$0x4]   ;;  %v1049_v48 = vld [vmem:[%s2014_s0 + $0x8d] sm:$0x4]  }
  0x27   :  { %v403_v21 = vsel %vm9_vm1, %v1028_v17, %v399_v16  ;;  %v2_v45 = vld [vmem:[%s2014_s0] sm:$0x1]   ;;  %v486_v49 = vsel %vm5_vm0, %v1045_v43, %v1044_v42  ;;  %v1046_v50 = vld [vmem:[%s2014_s0 + $0xb8] sm:$0x4]   ;;  %v1052_v53 = vld [vmem:[%s2014_s0 + $0xb7] sm:$0x4]  }
  0x28   :  { %v943_v46 = vld [vmem:[%s2014_s0 + $0x3f] sm:$0x2]   ;;  %v1056_v58 = vld [vmem:[%s2014_s0 + $0x38] sm:$0x1]   ;;  %v1053_v60 = vld [vmem:[%s2014_s0 + $0xe] sm:$0x1]  }
  0x29   :  { %206 = vrot.lane.b32.xlu0 %v205_v9, %s1212_s28  ;;  %234 = vrot.lane.b32.xlu2 %v233_v25, %s1216_s25  ;;  %v1030_v9 = vld [vmem:[%s2014_s0 + $0x51] sm:$0x2]   ;;  %s1224_s25 = smov 58   ;;  %v1035_v25 = vld [vmem:[%s2014_s0 + $0x11] sm:$0x1]   ;;  %v6_v51 = vsel %vm5_vm0, %v943_v46, %v2_v45  ;;  %s1233_s7 = smov 45  }
  0x2a   :  { %v414_v14 = vsel %vm5_vm0, %v1030_v9, %v1029_v8  ;;  %v1057_v59 = vld [vmem:[%s2014_s0 + $0x77] sm:$0x2]   ;;  %v1054_v61 = vld [vmem:[%s2014_s0 + $0x4d] sm:$0x2]   ;;  %v1059_v62 = vld [vmem:[%s2014_s0 + $0xd] sm:$0x1]  }
  0x2b   :  { %v418_v20 = vsel %vm9_vm1, %v1031_v15, %v414_v14  ;;  %v1060_v63 = vld [vmem:[%s2014_s0 + $0x4c] sm:$0x2]   ;;  %v544_v0 = vsel %vm5_vm0, %v1057_v59, %v1056_v58  ;;  %v1058_v1 = vld [vmem:[%s2014_s0 + $0xb6] sm:$0x4]   ;;  %v530_v2 = vsel %vm5_vm0, %v1054_v61, %v1053_v60  ;;  %v1055_v3 = vld [vmem:[%s2014_s0 + $0x8c] sm:$0x4]  }
  0x2c   :  { %v559_v4 = vsel %vm5_vm0, %v1060_v63, %v1059_v62  ;;  %v1065_v9 = vld [vmem:[%s2014_s0 + $0xc] sm:$0x1]   ;;  %v1062_v11 = vld [vmem:[%s2014_s0 + $0x37] sm:$0x1]   ;;  %s1236_s28 = smov 40   ;;  %s1238_s5 = smov 39  }
  0x2d   :  { %262 = vrot.lane.b32.xlu1 %v261_v26, %s1217_s26  ;;  %v1036_v26 = vld [vmem:[%s2014_s0 + $0x50] sm:$0x2]   ;;  %v1066_v10 = vld [vmem:[%s2014_s0 + $0x4b] sm:$0x2]   ;;  %v1063_v12 = vld [vmem:[%s2014_s0 + $0x76] sm:$0x2]  }
  0x2e   :  { %v443_v31 = vsel %vm5_vm0, %v1036_v26, %v1035_v25  ;;  %v1068_v13 = vld [vmem:[%s2014_s0 + $0x36] sm:$0x1]   ;;  %v588_v15 = vsel %vm5_vm0, %v1066_v10, %v1065_v9  ;;  %v1067_v16 = vld [vmem:[%s2014_s0 + $0x8a] sm:$0x4]   ;;  %v573_v18 = vsel %vm5_vm0, %v1063_v12, %v1062_v11  ;;  %v1064_v19 = vld [vmem:[%s2014_s0 + $0xb5] sm:$0x4]  }
  0x2f   :  { %v447_v36 = vsel %vm9_vm1, %v1037_v32, %v443_v31  ;;  %v1069_v14 = vld [vmem:[%s2014_s0 + $0x75] sm:$0x2]   ;;  %v1074_v25 = vld [vmem:[%s2014_s0 + $0x35] sm:$0x1]   ;;  %v1071_v27 = vld [vmem:[%s2014_s0 + $0xb] sm:$0x1]  }
  0x30   :  { %v1075_v26 = vld [vmem:[%s2014_s0 + $0x74] sm:$0x2]   ;;  %v1072_v28 = vld [vmem:[%s2014_s0 + $0x4a] sm:$0x2]   ;;  %s1241_s26 = smov 34   ;;  %vm37_vm4 = vcmask 7168  }
  0x31   :  { %248 = vrot.lane.b32.xlu0 %v247_v24, %s1215_s20  ;;  %276 = vrot.lane.b32.xlu2 %v275_v40, %s1219_s17  ;;  %v1039_v24 = vld [vmem:[%s2014_s0 + $0x7a] sm:$0x2]   ;;  %s1227_s17 = smov 54   ;;  %v1050_v40 = vld [vmem:[%s2014_s0 + $0x39] sm:$0x1]   ;;  %s1239_s20 = smov 36   ;;  %v631_v31 = vsel %vm5_vm0, %v1075_v26, %v1074_v25  ;;  %v617_v34 = vsel %vm5_vm0, %v1072_v28, %v1071_v27 }
  0x32   :  { %v457_v29 = vsel %vm5_vm0, %v1039_v24, %v1038_v23  ;;  %v577_v23 = vsel %vm9_vm1, %v1064_v19, %v573_v18  ;;  %v1076_v32 = vld [vmem:[%s2014_s0 + $0xb3] sm:$0x4]   ;;  %v1084_v42 = vld [vmem:[%s2014_s0 + $0x48] sm:$0x2]   ;;  %v1080_v43 = vld [vmem:[%s2014_s0 + $0x34] sm:$0x1]  }
  0x33   :  { %v461_v35 = vsel %vm9_vm1, %v1040_v30, %v457_v29  ;;  %v1077_v29 = vld [vmem:[%s2014_s0 + $0xa] sm:$0x1]   ;;  %v1086_v45 = vld [vmem:[%s2014_s0 + $0x33] sm:$0x1]   ;;  %vm40_vm5 = vcmask 1048560   ;;  %vm54_vm6 = vcmask 1032152  }
  0x34   :  { %v1078_v30 = vld [vmem:[%s2014_s0 + $0x49] sm:$0x2]   ;;  %v1087_v46 = vld [vmem:[%s2014_s0 + $0x72] sm:$0x2]   ;;  %v1092_v59 = vld [vmem:[%s2014_s0 + $0x32] sm:$0x1]  }
  0x35   :  { %304 = vrot.lane.b32.xlu1 %v303_v41, %s1220_s18  ;;  %v1051_v41 = vld [vmem:[%s2014_s0 + $0x78] sm:$0x2]   ;;  %s1244_s18 = smov 30   ;;  %v1093_v60 = vld [vmem:[%s2014_s0 + $0x71] sm:$0x2]   ;;  %vm68_vm7 = vcmask 1007552  }
  0x36   :  { %v515_v52 = vsel %vm5_vm0, %v1051_v41, %v1050_v40  ;;  %v1083_v41 = vld [vmem:[%s2014_s0 + $0x9] sm:$0x1]   ;;  %v1089_v61 = vld [vmem:[%s2014_s0 + $0x8] sm:$0x1]   ;;  %v1095_v63 = vld [vmem:[%s2014_s0 + $0x7] sm:$0x1]  }
  0x37   :  { %v519_v57 = vsel %vm9_vm1, %v1052_v53, %v515_v52  ;;  %v1082_v52 = vld [vmem:[%s2014_s0 + $0xb2] sm:$0x4]   ;;  %v1090_v62 = vld [vmem:[%s2014_s0 + $0x47] sm:$0x2]   ;;  %vm82_vm8 = vcmask 982952   ;;  %vm96_vm9 = vcmask 958352  }
  0x38   :  { %v1097_v9 = vld [vmem:[%s2014_s0 + $0x85] sm:$0x4]   ;;  %vm110_vm10 = vcmask 933752   ;;  %vm124_vm11 = vcmask 909152   ;;  %v1105_v18 = vld [vmem:[%s2014_s0 + $0x6f] sm:$0x2]  }
  0x39   :  { %290 = vrot.lane.b32.xlu0 %v289_v39, %s1218_s12  ;;  %318 = vrot.lane.b32.xlu2 %v317_v55, %s1222_s9  ;;  %v1048_v39 = vld [vmem:[%s2014_s0 + $0x4e] sm:$0x2]   ;;  %s1234_s12 = smov 46   ;;  %s1246_s9 = smov 28   ;;  %vm138_vm12 = vcmask 884552   ;;  %vm152_vm13 = vcmask 859952  }
  0x3a   :  { %v501_v47 = vsel %vm5_vm0, %v1048_v39, %v1047_v38  ;;  %v635_v38 = vsel %vm9_vm1, %v1076_v32, %v631_v31  ;;  %v1106_v27 = vld [vmem:[%s2014_s0 + $0xae] sm:$0x4]   ;;  %v1110_v31 = vld [vmem:[%s2014_s0 + $0x2f] sm:$0x1]   ;;  %vm166_vm14 = vcmask 835352   ;;  %vm180_vm15 = vcmask 810752  }
  0x3b   :  { %v505_v55 = vsel %vm9_vm1, %v1049_v48, %v501_v47  ;;  %v675_v48 = vsel %vm5_vm0, %v1084_v42, %v1083_v41  ;;  %v1111_v32 = vld [vmem:[%s2014_s0 + $0x6e] sm:$0x2]   ;;  %vm194_vm2 = vcmask 786152   ;;  %v1109_v42 = vld [vmem:[%s2014_s0 + $0x83] sm:$0x4]   ;;  %s1256_s15 = smov 12  }
  0x3c   :  { %s1258_s6 = smov 10  }
  0x3d   :  { %346 = vrot.lane.b32.xlu1 %v345_v56, %s1223_s10  ;;  %v490_v56 = vsel %vm9_vm1, %v1046_v50, %v486_v49  ;;  %v1085_v49 = vld [vmem:[%s2014_s0 + $0x87] sm:$0x4]   ;;  %s1247_s10 = smov 25  }
  0x41   :  { %332 = vrot.lane.b32.xlu0 %v331_v54, %s1221_s4  ;;  %361 = vrot.lane.b32.xlu2 %v360_v6, %s1225_s30  ;;  %v10_v54 = vsel %vm9_vm1, %v944_v44, %v6_v51  ;;  %v548_v6 = vsel %vm9_vm1, %v1058_v1, %v544_v0  ;;  %s1237_s4 = smov 42   ;;  %v1081_v44 = vld [vmem:[%s2014_s0 + $0x73] sm:$0x2]   ;;  %v1096_v0 = vld [vmem:[%s2014_s0 + $0x46] sm:$0x2]   ;;  %s1249_s30 = smov 24  }
  0x42   :  { %12 = vst.msk [vmem:[#allocation0] sm:$0x7] %vm11_vm3, %v10_v54   ;;  %v660_v51 = vsel %vm5_vm0, %v1081_v44, %v1080_v43  ;;  %v689_v54 = vsel %vm5_vm0, %v1087_v46, %v1086_v45  ;;  %v1115_v45 = vld [vmem:[%s2014_s0 + $0x82] sm:$0x4]   ;;  %vm208_vm3 = vcmask 761552  }
  0x45   :  { %390 = vrot.lane.b32.xlu1 %v389_v7, %s1226_s2  ;;  %v534_v7 = vsel %vm9_vm1, %v1055_v3, %v530_v2  ;;  %v718_v2 = vsel %vm5_vm0, %v1093_v60, %v1092_v59  ;;  %v1094_v3 = vld [vmem:[%s2014_s0 + $0xb0] sm:$0x4]   ;;  %s1250_s2 = smov 21   ;;  %v1118_v60 = vld [vmem:[%s2014_s0 + $0xac] sm:$0x4]  }
  0x46   :  { %v722_v10 = vsel %vm9_vm1, %v1094_v3, %v718_v2  ;;  %v1128_v3 = vld [vmem:[%s2014_s0 + $0x2c] sm:$0x1]  }
  0x49   :  { %375 = vrot.lane.b32.xlu0 %v374_v5, %s1224_s25  ;;  %404 = vrot.lane.b32.xlu2 %v403_v21, %s1228_s22  ;;  %v1061_v5 = vld [vmem:[%s2014_s0 + $0x8b] sm:$0x4]   ;;  %v1070_v21 = vld [vmem:[%s2014_s0 + $0xb4] sm:$0x4]   ;;  %s1240_s25 = smov 37   ;;  %s1252_s22 = smov 19  }
  0x4a   :  { %v563_v8 = vsel %vm9_vm1, %v1061_v5, %v559_v4  ;;  %v704_v5 = vsel %vm5_vm0, %v1090_v62, %v1089_v61 }
  0x4d   :  { %433 = vrot.lane.b32.xlu1 %v432_v22, %s1229_s23  ;;  %v592_v22 = vsel %vm9_vm1, %v1067_v16, %v588_v15  ;;  %v1098_v15 = vld [vmem:[%s2014_s0 + $0x31] sm:$0x1]   ;;  %s1253_s23 = smov 16  }
  0x4e   :  { %v1099_v16 = vld [vmem:[%s2014_s0 + $0x70] sm:$0x2]  }
  0x51   :  { %419 = vrot.lane.b32.xlu0 %v418_v20, %s1227_s17  ;;  %448 = vrot.lane.b32.xlu2 %v447_v36, %s1231_s14  ;;  %v602_v20 = vsel %vm5_vm0, %v1069_v14, %v1068_v13  ;;  %v646_v36 = vsel %vm5_vm0, %v1078_v30, %v1077_v29  ;;  %s1243_s17 = smov 33   ;;  %v1101_v13 = vld [vmem:[%s2014_s0 + $0x6] sm:$0x1]   ;;  %s1255_s14 = smov 15  }
  0x52   :  { %v606_v24 = vsel %vm9_vm1, %v1070_v21, %v602_v20  ;;  %v1102_v14 = vld [vmem:[%s2014_s0 + $0x45] sm:$0x2]  }
  0x53   :  { %v762_v20 = vsel %vm5_vm0, %v1102_v14, %v1101_v13  ;;  %v1103_v21 = vld [vmem:[%s2014_s0 + $0x84] sm:$0x4]   ;;  %v1127_v14 = vld [vmem:[%s2014_s0 + $0x80] sm:$0x4]  }
  0x54   :  { %v766_v28 = vsel %vm9_vm1, %v1103_v21, %v762_v20  ;;  %v1134_v21 = vld [vmem:[%s2014_s0 + $0x2b] sm:$0x1]  }
  0x55   :  { %477 = vrot.lane.b32.xlu1 %v476_v37, %s1232_s19  ;;  %v1079_v37 = vld [vmem:[%s2014_s0 + $0x88] sm:$0x4]   ;;  %s1261_s19 = smov 6  }
  0x56   :  { %v650_v40 = vsel %vm9_vm1, %v1079_v37, %v646_v36  ;;  %v1114_v36 = vld [vmem:[%s2014_s0 + $0x43] sm:$0x2]  }
  0x59   :  { %462 = vrot.lane.b32.xlu0 %v461_v35, %s1230_s13  ;;  %491 = vrot.lane.b32.xlu2 %v490_v56, %s1234_s12  ;;  %s1235_s13 = smov 43   ;;  %v1073_v35 = vld [vmem:[%s2014_s0 + $0x89] sm:$0x4]   ;;  %s1242_s12 = smov 31   ;;  %v679_v56 = vsel %vm9_vm1, %v1085_v49, %v675_v48  ;;  %v1119_v49 = vld [vmem:[%s2014_s0 + $0x3] sm:$0x1]  }
  0x5a   :  { %v621_v39 = vsel %vm9_vm1, %v1073_v35, %v617_v34  ;;  %v1108_v34 = vld [vmem:[%s2014_s0 + $0x44] sm:$0x2]   ;;  %v1113_v35 = vld [vmem:[%s2014_s0 + $0x4] sm:$0x1]  }
  0x5b   :  { %v820_v44 = vsel %vm5_vm0, %v1114_v36, %v1113_v35 }
  0x5c   :  { %v824_v48 = vsel %vm9_vm1, %v1115_v45, %v820_v44 }
  0x5d   :  { %520 = vrot.lane.b32.xlu1 %v519_v57, %s1235_s13  ;;  %v664_v57 = vsel %vm9_vm1, %v1082_v52, %v660_v51  ;;  %v1116_v51 = vld [vmem:[%s2014_s0 + $0x2e] sm:$0x1]  }
  0x5e   :  { %v1117_v52 = vld [vmem:[%s2014_s0 + $0x6d] sm:$0x2]  }
  0x5f   :  { %v834_v59 = vsel %vm5_vm0, %v1117_v52, %v1116_v51 }
  0x61   :  { %506 = vrot.lane.b32.xlu0 %v505_v55, %s1233_s7  ;;  %535 = vrot.lane.b32.xlu2 %v534_v7, %s1237_s4  ;;  %v1088_v55 = vld [vmem:[%s2014_s0 + $0xb1] sm:$0x4]   ;;  %s1245_s4 = smov 27   ;;  %s1259_s7 = smov 7  }
  0x62   :  { %v693_v58 = vsel %vm9_vm1, %v1088_v55, %v689_v54  ;;  %v1123_v54 = vld [vmem:[%s2014_s0 + $0x6c] sm:$0x2]  }
  0x63   :  { %v1736_v17 = vpop.permute.xlu2 %94  }
  0x65   :  { %564 = vrot.lane.b32.xlu1 %v563_v8, %s1238_s5  ;;  %v733_v8 = vsel %vm5_vm0, %v1096_v0, %v1095_v63  ;;  %v1124_v63 = vld [vmem:[%s2014_s0 + $0xab] sm:$0x4]  }
  0x66   :  { %v737_v12 = vsel %vm9_vm1, %v1097_v9, %v733_v8  ;;  %v1132_v8 = vld [vmem:[%s2014_s0 + $0x40] sm:$0x2]  }
  0x69   :  { %549 = vrot.lane.b32.xlu0 %v548_v6, %s1236_s28  ;;  %578 = vrot.lane.b32.xlu2 %v577_v23, %s1240_s25  ;;  %v1091_v6 = vld [vmem:[%s2014_s0 + $0x86] sm:$0x4]   ;;  %s1248_s25 = smov 22   ;;  %v747_v23 = vsel %vm5_vm0, %v1099_v16, %v1098_v15 }
  0x6a   :  { %v708_v11 = vsel %vm9_vm1, %v1091_v6, %v704_v5  ;;  %v1125_v5 = vld [vmem:[%s2014_s0 + $0x2] sm:$0x1]  }
  0x6b   :  { %v1771_v33 = vpop.permute.xlu2 %108   ;;  %v1126_v6 = vld [vmem:[%s2014_s0 + $0x41] sm:$0x2]  }
  0x6c   :  { %v878_v13 = vsel %vm5_vm0, %v1126_v6, %v1125_v5 }
  0x6d   :  { %607 = vrot.lane.b32.xlu1 %v606_v24, %s1241_s26  ;;  %v1100_v24 = vld [vmem:[%s2014_s0 + $0xaf] sm:$0x4]  }
  0x6e   :  { %v751_v29 = vsel %vm9_vm1, %v1100_v24, %v747_v23 }
  0x71   :  { %593 = vrot.lane.b32.xlu0 %v592_v22, %s1239_s20  ;;  %622 = vrot.lane.b32.xlu2 %v621_v39, %s1243_s17  ;;  %s1251_s17 = smov 18   ;;  %v1112_v39 = vld [vmem:[%s2014_s0 + $0xad] sm:$0x4]   ;;  %s1262_s20 = smov 3  }
  0x73   :  { %v1806_v50 = vpop.permute.xlu2 %150  }
  0x75   :  { %651 = vrot.lane.b32.xlu1 %v650_v40, %s1244_s18  ;;  %s1260_s18 = smov 4  }
  0x77   :  { %v67_v53 = vpop.permute.xlu1 %66  }
  0x79   :  { %636 = vrot.lane.b32.xlu0 %v635_v38, %s1242_s12  ;;  %665 = vrot.lane.b32.xlu2 %v664_v57, %s1246_s9  ;;  %v805_v38 = vsel %vm5_vm0, %v1111_v32, %v1110_v31  ;;  %s1254_s9 = smov 13   ;;  %v1121_v57 = vld [vmem:[%s2014_s0 + $0x81] sm:$0x4]  }
  0x7a   :  { %v809_v46 = vsel %vm9_vm1, %v1112_v39, %v805_v38 }
  0x7b   :  { %v36_v47 = vpop.permute.xlu0 %35   ;;  %v1841_v4 = vpop.permute.xlu2 %192  }
  0x7c   :  { %39 = vst.msk [vmem:[#allocation0 + $0x8] sm:$0x7] %vm37_vm4, %v36_v47   ;;  %vm222_vm4 = vcmask 736952  }
  0x7d   :  { %41 = vst.msk [vmem:[#allocation0] sm:$0x7] %vm40_vm5, %v36_v47   ;;  %694 = vrot.lane.b32.xlu1 %v693_v58, %s1247_s10  ;;  %vm236_vm5 = vcmask 712352  }
  0x7f   :  { %v81_v7 = vpop.permute.xlu1 %80  }
  0x81   :  { %680 = vrot.lane.b32.xlu0 %v679_v56, %s1245_s4  ;;  %709 = vrot.lane.b32.xlu2 %v708_v11, %s1249_s30  ;;  %s1257_s30 = smov 9   ;;  %v1130_v11 = vld [vmem:[%s2014_s0 + $0xaa] sm:$0x4]  }
  0x83   :  { %v53_v1 = vpop.permute.xlu0 %52   ;;  %v1879_v22 = vpop.permute.xlu2 %234  }
  0x84   :  { %55 = vst.msk [vmem:[#allocation0] sm:$0x7] %vm54_vm6, %v53_v1   ;;  %v838_v1 = vsel %vm9_vm1, %v1118_v60, %v834_v59  ;;  %vm250_vm6 = vcmask 687752  }
  0x85   :  { %69 = vst.msk [vmem:[#allocation0] sm:$0x7] %vm68_vm7, %v67_v53   ;;  %738 = vrot.lane.b32.xlu1 %v737_v12, %s1250_s2  ;;  %v1122_v53 = vld [vmem:[%s2014_s0 + $0x2d] sm:$0x1]   ;;  %vm264_vm7 = vcmask 663152  }
  0x86   :  { %83 = vst.msk [vmem:[#allocation0] sm:$0x7] %vm82_vm8, %v81_v7   ;;  %v863_v62 = vsel %vm5_vm0, %v1123_v54, %v1122_v53  ;;  %v1131_v7 = vld [vmem:[%s2014_s0 + $0x1] sm:$0x1]   ;;  %vm278_vm8 = vcmask 638552  }
  0x87   :  { %97 = vst.msk [vmem:[#allocation0] sm:$0x7] %vm96_vm9, %v1736_v17   ;;  %v1104_v17 = vld [vmem:[%s2014_s0 + $0x30] sm:$0x1]   ;;  %v137_v25 = vpop.permute.xlu1 %136   ;;  %v867_v2 = vsel %vm9_vm1, %v1124_v63, %v863_v62  ;;  %v907_v16 = vsel %vm5_vm0, %v1132_v8, %v1131_v7  ;;  %vm292_vm9 = vcmask 613952  }
  0x88   :  { %111 = vst.msk [vmem:[#allocation0] sm:$0x7] %vm110_vm10, %v1771_v33   ;;  %v776_v26 = vsel %vm5_vm0, %v1105_v18, %v1104_v17  ;;  %v1107_v33 = vld [vmem:[%s2014_s0 + $0x5] sm:$0x1]   ;;  %v1133_v17 = vld [vmem:[%s2014_s0 + $0x7f] sm:$0x4]  }
  0x89   :  { %723 = vrot.lane.b32.xlu0 %v722_v10, %s1248_s25  ;;  %v780_v30 = vsel %vm9_vm1, %v1106_v27, %v776_v26  ;;  %752 = vrot.lane.b32.xlu2 %v751_v29, %s1252_s22  ;;  %v791_v41 = vsel %vm5_vm0, %v1108_v34, %v1107_v33  ;;  %v911_v20 = vsel %vm9_vm1, %v1133_v17, %v907_v16  ;;  %vm306_vm10 = vcmask 589352   ;;  %v1136_v26 = vld [vmem:[%s2014_s0 + $0xa9] sm:$0x4]  }
  0x8a   :  { %v795_v47 = vsel %vm9_vm1, %v1109_v42, %v791_v41 }
  0x8b   :  { %v123_v19 = vpop.permute.xlu0 %122   ;;  %v1915_v40 = vpop.permute.xlu2 %276  }
  0x8c   :  { %125 = vst.msk [vmem:[#allocation0] sm:$0x7] %vm124_vm11, %v123_v19   ;;  %v882_v19 = vsel %vm9_vm1, %v1127_v14, %v878_v13  ;;  %vm320_vm11 = vcmask 564752  }
  0x8d   :  { %139 = vst.msk [vmem:[#allocation0] sm:$0x7] %vm138_vm12, %v137_v25   ;;  %781 = vrot.lane.b32.xlu1 %v780_v30, %s1253_s23  ;;  %vm348_vm12 = vcmask 523752  }
  0x8e   :  { %153 = vst.msk [vmem:[#allocation0] sm:$0x7] %vm152_vm13, %v1806_v50   ;;  %v1120_v50 = vld [vmem:[%s2014_s0 + $0x42] sm:$0x2]   ;;  %vm377_vm13 = vcmask 499152  }
  0x8f   :  { %v179_v43 = vpop.permute.xlu1 %178   ;;  %v849_v56 = vsel %vm5_vm0, %v1120_v50, %v1119_v49 }
  0x90   :  { %v853_v0 = vsel %vm9_vm1, %v1121_v57, %v849_v56 }
  0x91   :  { %767 = vrot.lane.b32.xlu0 %v766_v28, %s1251_s17  ;;  %796 = vrot.lane.b32.xlu2 %v795_v47, %s1255_s14 }
  0x93   :  { %v165_v37 = vpop.permute.xlu0 %164   ;;  %v319_v58 = vpop.permute.xlu2 %318  }
  0x94   :  { %167 = vst.msk [vmem:[#allocation0] sm:$0x7] %vm166_vm14, %v165_v37   ;;  %vm406_vm14 = vcmask 474552  }
  0x95   :  { %181 = vst.msk [vmem:[#allocation0] sm:$0x7] %vm180_vm15, %v179_v43   ;;  %825 = vrot.lane.b32.xlu1 %v824_v48, %s1256_s15  ;;  %vm392_vm15 = vcmask 490952  }
  0x96   :  { %195 = vst.msk [vmem:[#allocation0] sm:$0x7] %vm194_vm2, %v1841_v4   ;;  %v1129_v4 = vld [vmem:[%s2014_s0 + $0x6b] sm:$0x2]   ;;  %vm421_vm2 = vcmask 466352  }
  0x97   :  { %v221_v61 = vpop.permute.xlu1 %220   ;;  %v892_v10 = vsel %vm5_vm0, %v1129_v4, %v1128_v3 }
  0x98   :  { %v896_v18 = vsel %vm9_vm1, %v1130_v11, %v892_v10 }
  0x99   :  { %810 = vrot.lane.b32.xlu0 %v809_v46, %s1254_s9  ;;  %839 = vrot.lane.b32.xlu2 %v838_v1, %s1258_s6 }
  0x9b   :  { %v207_v55 = vpop.permute.xlu0 %206   ;;  %v362_v12 = vpop.permute.xlu2 %361  }
  0x9c   :  { %209 = vst.msk [vmem:[#allocation0] sm:$0x7] %vm208_vm3, %v207_v55   ;;  %vm450_vm3 = vcmask 441752  }
  0x9d   :  { %223 = vst.msk [vmem:[#allocation0] sm:$0x7] %vm222_vm4, %v221_v61   ;;  %868 = vrot.lane.b32.xlu1 %v867_v2, %s1259_s7  ;;  %vm435_vm4 = vcmask 449952  }
  0x9e   :  { %237 = vst.msk [vmem:[#allocation0] sm:$0x7] %vm236_vm5, %v1879_v22   ;;  %v1135_v22 = vld [vmem:[%s2014_s0 + $0x6a] sm:$0x2]   ;;  %s1263_s0 = smov 1   ;;  %vm464_vm5 = vcmask 425352  }
  0x9f   :  { %v263_v15 = vpop.permute.xlu1 %262   ;;  %v921_v25 = vsel %vm5_vm0, %v1135_v22, %v1134_v21  ;;  %vm334_vm0 = vcmask 540152  }
  0xa0   :  { %v925_v28 = vsel %vm9_vm1, %v1136_v26, %v921_v25  ;;  %vm363_vm1 = vcmask 515552  }
  0xa1   :  { %854 = vrot.lane.b32.xlu0 %v853_v0, %s1257_s30  ;;  %883 = vrot.lane.b32.xlu2 %v882_v19, %s1261_s19 }
  0xa3   :  { %v249_v9 = vpop.permute.xlu0 %248   ;;  %v405_v24 = vpop.permute.xlu2 %404  }
  0xa4   :  { %251 = vst.msk [vmem:[#allocation0] sm:$0x7] %vm250_vm6, %v249_v9   ;;  %vm493_vm6 = vcmask 400752  }
  0xa5   :  { %265 = vst.msk [vmem:[#allocation0] sm:$0x7] %vm264_vm7, %v263_v15   ;;  %912 = vrot.lane.b32.xlu1 %v911_v20, %s1262_s20  ;;  %vm479_vm7 = vcmask 417152  }
  0xa6   :  { %279 = vst.msk [vmem:[#allocation0] sm:$0x7] %vm278_vm8, %v1915_v40   ;;  %vm508_vm8 = vcmask 392552  }
  0xa7   :  { %v305_v27 = vpop.permute.xlu1 %304  }
  0xa9   :  { %897 = vrot.lane.b32.xlu0 %v896_v18, %s1260_s18  ;;  %926 = vrot.lane.b32.xlu2 %v925_v28, %s1263_s0 }
  0xab   :  { %v291_v23 = vpop.permute.xlu0 %290   ;;  %v449_v30 = vpop.permute.xlu2 %448  }
  0xac   :  { %293 = vst.msk [vmem:[#allocation0] sm:$0x7] %vm292_vm9, %v291_v23   ;;  %vm537_vm9 = vcmask 367952  }
  0xad   :  { %307 = vst.msk [vmem:[#allocation0] sm:$0x7] %vm306_vm10, %v305_v27   ;;  %vm522_vm10 = vcmask 376152  }
  0xae   :  { %321 = vst.msk [vmem:[#allocation0] sm:$0x7] %vm320_vm11, %v319_v58   ;;  %vm551_vm11 = vcmask 351552  }
  0xaf   :  { %v347_v31 = vpop.permute.xlu1 %346  }
  0xb0   :  { %350 = vst.msk [vmem:[#allocation0 + $0x8] sm:$0x7] %vm348_vm12, %v347_v31   ;;  %vm595_vm12 = vcmask 318752  }
  0xb3   :  { %v333_v29 = vpop.permute.xlu0 %332   ;;  %v492_v33 = vpop.permute.xlu2 %491  }
  0xb4   :  { %335 = vst.msk [vmem:[#allocation0] sm:$0x7] %vm334_vm0, %v333_v29   ;;  %vm580_vm0 = vcmask 326952  }
  0xb5   :  { %364 = vst.msk [vmem:[#allocation0] sm:$0x7] %vm363_vm1, %v362_v12   ;;  %vm566_vm1 = vcmask 343352  }
  0xb7   :  { %v391_v34 = vpop.permute.xlu1 %390  }
  0xb8   :  { %393 = vst.msk [vmem:[#allocation0] sm:$0x7] %vm392_vm15, %v391_v34   ;;  %vm638_vm15 = vcmask 277752  }
  0xbb   :  { %v376_v32 = vpop.permute.xlu0 %375   ;;  %v536_v36 = vpop.permute.xlu2 %535  }
  0xbc   :  { %379 = vst.msk [vmem:[#allocation0 + $0x8] sm:$0x7] %vm377_vm13, %v376_v32   ;;  %vm624_vm13 = vcmask 294152  }
  0xbd   :  { %408 = vst.msk [vmem:[#allocation0 + $0x8] sm:$0x7] %vm406_vm14, %v405_v24   ;;  %vm609_vm14 = vcmask 302352  }
  0xbf   :  { %v434_v37 = vpop.permute.xlu1 %433  }
  0xc0   :  { %437 = vst.msk [vmem:[#allocation0 + $0x8] sm:$0x7] %vm435_vm4, %v434_v37   ;;  %vm682_vm4 = vcmask 244952  }
  0xc3   :  { %v420_v35 = vpop.permute.xlu0 %419   ;;  %v579_v39 = vpop.permute.xlu2 %578  }
  0xc4   :  { %422 = vst.msk [vmem:[#allocation0] sm:$0x7] %vm421_vm2, %v420_v35   ;;  %vm667_vm2 = vcmask 253152  }
  0xc5   :  { %451 = vst.msk [vmem:[#allocation0] sm:$0x7] %vm450_vm3, %v449_v30   ;;  %vm653_vm3 = vcmask 269552  }
  0xc7   :  { %v478_v40 = vpop.permute.xlu1 %477  }
  0xc8   :  { %480 = vst.msk [vmem:[#allocation0] sm:$0x7] %vm479_vm7, %v478_v40   ;;  %vm725_vm7 = vcmask 203952  }
  0xcb   :  { %v463_v38 = vpop.permute.xlu0 %462   ;;  %v623_v42 = vpop.permute.xlu2 %622  }
  0xcc   :  { %466 = vst.msk [vmem:[#allocation0 + $0x8] sm:$0x7] %vm464_vm5, %v463_v38   ;;  %vm711_vm5 = vcmask 220352  }
  0xcd   :  { %495 = vst.msk [vmem:[#allocation0 + $0x8] sm:$0x7] %vm493_vm6, %v492_v33   ;;  %vm696_vm6 = vcmask 228552  }
  0xcf   :  { %v521_v43 = vpop.permute.xlu1 %520  }
  0xd0   :  { %524 = vst.msk [vmem:[#allocation0 + $0x8] sm:$0x7] %vm522_vm10, %v521_v43   ;;  %vm769_vm10 = vcmask 171152  }
  0xd3   :  { %v507_v41 = vpop.permute.xlu0 %506   ;;  %v666_v45 = vpop.permute.xlu2 %665  }
  0xd4   :  { %509 = vst.msk [vmem:[#allocation0] sm:$0x7] %vm508_vm8, %v507_v41   ;;  %vm754_vm8 = vcmask 179352  }
  0xd5   :  { %538 = vst.msk [vmem:[#allocation0] sm:$0x7] %vm537_vm9, %v536_v36   ;;  %vm740_vm9 = vcmask 195752  }
  0xd7   :  { %v565_v46 = vpop.permute.xlu1 %564  }
  0xd8   :  { %567 = vst.msk [vmem:[#allocation0] sm:$0x7] %vm566_vm1, %v565_v46   ;;  %vm812_vm1 = vcmask 130152  }
  0xdb   :  { %v550_v44 = vpop.permute.xlu0 %549   ;;  %v710_v48 = vpop.permute.xlu2 %709  }
  0xdc   :  { %553 = vst.msk [vmem:[#allocation0 + $0x8] sm:$0x7] %vm551_vm11, %v550_v44   ;;  %vm798_vm11 = vcmask 146552  }
  0xdd   :  { %582 = vst.msk [vmem:[#allocation0 + $0x8] sm:$0x7] %vm580_vm0, %v579_v39   ;;  %vm783_vm0 = vcmask 154752  }
  0xdf   :  { %v608_v49 = vpop.permute.xlu1 %607  }
  0xe0   :  { %611 = vst.msk [vmem:[#allocation0 + $0x8] sm:$0x7] %vm609_vm14, %v608_v49   ;;  %vm856_vm14 = vcmask 97352  }
  0xe3   :  { %v594_v47 = vpop.permute.xlu0 %593   ;;  %v753_v51 = vpop.permute.xlu2 %752  }
  0xe4   :  { %596 = vst.msk [vmem:[#allocation0] sm:$0x7] %vm595_vm12, %v594_v47   ;;  %vm841_vm12 = vcmask 105552  }
  0xe5   :  { %625 = vst.msk [vmem:[#allocation0] sm:$0x7] %vm624_vm13, %v623_v42   ;;  %vm827_vm13 = vcmask 121952  }
  0xe7   :  { %v652_v52 = vpop.permute.xlu1 %651  }
  0xe8   :  { %654 = vst.msk [vmem:[#allocation0] sm:$0x7] %vm653_vm3, %v652_v52   ;;  %vm899_vm3 = vcmask 56352  }
  0xeb   :  { %v637_v50 = vpop.permute.xlu0 %636   ;;  %v797_v54 = vpop.permute.xlu2 %796  }
  0xec   :  { %640 = vst.msk [vmem:[#allocation0 + $0x8] sm:$0x7] %vm638_vm15, %v637_v50   ;;  %vm885_vm15 = vcmask 72752  }
  0xed   :  { %669 = vst.msk [vmem:[#allocation0 + $0x8] sm:$0x7] %vm667_vm2, %v666_v45   ;;  %vm870_vm2 = vcmask 80952  }
  0xef   :  { %v695_v55 = vpop.permute.xlu1 %694  }
  0xf0   :  { %698 = vst.msk [vmem:[#allocation0 + $0x8] sm:$0x7] %vm696_vm6, %v695_v55  }
  0xf3   :  { %v681_v53 = vpop.permute.xlu0 %680   ;;  %v840_v57 = vpop.permute.xlu2 %839  }
  0xf4   :  { %683 = vst.msk [vmem:[#allocation0] sm:$0x7] %vm682_vm4, %v681_v53   ;;  %vm928_vm4 = vcmask 31752  }
  0xf5   :  { %712 = vst.msk [vmem:[#allocation0] sm:$0x7] %vm711_vm5, %v710_v48   ;;  %vm914_vm5 = vcmask 48152  }
  0xf7   :  { %v739_v58 = vpop.permute.xlu1 %738  }
  0xf8   :  { %741 = vst.msk [vmem:[#allocation0] sm:$0x7] %vm740_vm9, %v739_v58  }
  0xfb   :  { %v724_v56 = vpop.permute.xlu0 %723   ;;  %v884_v60 = vpop.permute.xlu2 %883  }
  0xfc   :  { %727 = vst.msk [vmem:[#allocation0 + $0x8] sm:$0x7] %vm725_vm7, %v724_v56  }
  0xfd   :  { %756 = vst.msk [vmem:[#allocation0 + $0x8] sm:$0x7] %vm754_vm8, %v753_v51  }
  0xff   :  { %v782_v61 = vpop.permute.xlu1 %781  }
 0x100   :  { %785 = vst.msk [vmem:[#allocation0 + $0x8] sm:$0x7] %vm783_vm0, %v782_v61  }
 0x103   :  { %v768_v59 = vpop.permute.xlu0 %767   ;;  %v927_v63 = vpop.permute.xlu2 %926  }
 0x104   :  { %770 = vst.msk [vmem:[#allocation0] sm:$0x7] %vm769_vm10, %v768_v59  }
 0x105   :  { %799 = vst.msk [vmem:[#allocation0] sm:$0x7] %vm798_vm11, %v797_v54  }
 0x107   :  { %v826_v0 = vpop.permute.xlu1 %825  }
 0x108   :  { %828 = vst.msk [vmem:[#allocation0] sm:$0x7] %vm827_vm13, %v826_v0  }
 0x10b   :  { %v811_v62 = vpop.permute.xlu0 %810  }
 0x10c   :  { %814 = vst.msk [vmem:[#allocation0 + $0x8] sm:$0x7] %vm812_vm1, %v811_v62  }
 0x10d   :  { %843 = vst.msk [vmem:[#allocation0 + $0x8] sm:$0x7] %vm841_vm12, %v840_v57  }
 0x10f   :  { %v869_v2 = vpop.permute.xlu1 %868  }
 0x110   :  { %872 = vst.msk [vmem:[#allocation0 + $0x8] sm:$0x7] %vm870_vm2, %v869_v2  }
 0x113   :  { %v855_v1 = vpop.permute.xlu0 %854  }
 0x114   :  { %857 = vst.msk [vmem:[#allocation0] sm:$0x7] %vm856_vm14, %v855_v1  }
 0x115   :  { %886 = vst.msk [vmem:[#allocation0] sm:$0x7] %vm885_vm15, %v884_v60  }
 0x117   :  { %v913_v4 = vpop.permute.xlu1 %912  }
 0x118   :  { %915 = vst.msk [vmem:[#allocation0] sm:$0x7] %vm914_vm5, %v913_v4  }
 0x11b   :  { %v898_v3 = vpop.permute.xlu0 %897  }
 0x11c   :  { %901 = vst.msk [vmem:[#allocation0 + $0x8] sm:$0x7] %vm899_vm3, %v898_v3  }
 0x11d   :  { %930 = vst.msk [vmem:[#allocation0 + $0x8] sm:$0x7] %vm928_vm4, %v927_v63  }
 0x11f   :  { %v933_v6 = vld [vmem:[#allocation0] sm:$0xf] }
 0x120   :  { %936 = vst [vmem:[%s2015_s1] sm:$0xf] %v933_v6 }
 0x124   :  { %v938_v5 = vld [vmem:[#allocation0 + $0x8] sm:$0xf] }
 0x125   :  { %1137 = vst [vmem:[%s2015_s1 + $0x4] sm:$0xf] %v938_v5 }

// kernel: cnn_problem3_1_forward.1
= control target key start
LH: loop header
LB: loop body
LE: loop exit
PB: predicated region body
PF: predicated region fallthrough
CT: control target
= control target key end

     0   :  { %vm1065_vm0 = vcmask 1042432   ;;  %vm296_vm1 = vcmask 220160   ;;  %s5206_s0 = inlined_call_operand.vmem [shape: f32[2048,27], index: 0, kind: input, shape index: {}]   ;;  %s5207_s1 = inlined_call_operand.vmem [shape: f32[27,16], index: 1, kind: input, shape index: {}]   ;;  %s5208_s2 = inlined_call_operand.vmem [shape: f32[1,16], index: 2, kind: input, shape index: {}]   ;;  %s5209_s3 = inlined_call_operand.vmem [shape: f32[16,192], index: 3, kind: input, shape index: {}]   ;;  %s5210_s4 = inlined_call_operand.vmem [shape: f32[128,192], index: 4, kind: input, shape index: {}]   ;;  %s5211_s5 = inlined_call_operand.vmem [shape: f32[2,128], index: 5, kind: input, shape index: {}]   ;;  %s5212_s6 = inlined_call_operand.vmem [shape: f32[192,3], index: 6, kind: input, shape index: {}]   ;;  %s5213_s7 = inlined_call_operand.vmem [shape: f32[1,3], index: 7, kind: input, shape index: {}]   ;;  %s5214_s8 = inlined_call_operand.vmem [shape: f32[16,128], index: 8, kind: output, shape index: {0}]   ;;  %s5215_s9 = inlined_call_operand.hbm [shape: f32[2,3], index: 9, kind: output, shape index: {1}]  }
   0x1   :  { %v291_v0 = vld [vmem:[%s5207_s1 + $0x18] sm:$0x7]  ;;  %v290_v1 = vld [vmem:[%s5207_s1 + $0x10] sm:$0xff]  ;;  %v289_v2 = vld [vmem:[%s5207_s1 + $0x8] sm:$0xff] }
   0x2   :  { %2766 = vmatpush.msk.msra.mxu0 %vm1065_vm0, %v291_v0  ;;  %3058 = vmatpush.msk.msra.mxu3 %vm1065_vm0, %v291_v0  ;;  %v288_v3 = vld [vmem:[%s5207_s1] sm:$0xff] }
   0x3   :  { %3057 = vmatpush.msk.msra.mxu2 %vm1065_vm0, %v291_v0  ;;  %3056 = vmatpush.msk.msra.mxu1 %vm1065_vm0, %v291_v0  ;;  %v32_v4 = vld [vmem:[%s5206_s0] sm:$0xff] }
   0x4   :  { %1082 = vmatpush.msra.mxu0 %v290_v1  ;;  %3061 = vmatpush.msra.mxu3 %v290_v1  ;;  %v224_v5 = vld [vmem:[%s5206_s0 + $0x600] sm:$0xff] }
   0x5   :  { %3060 = vmatpush.msra.mxu2 %v290_v1  ;;  %3059 = vmatpush.msra.mxu1 %v290_v1 }
   0x6   :  { %1083 = vmatpush.msra.mxu0 %v289_v2  ;;  %3064 = vmatpush.msra.mxu3 %v289_v2 }
   0x7   :  { %15 = vsyncpa [#allocation3], 0  ;;  %3063 = vmatpush.msra.mxu2 %v289_v2  ;;  %3062 = vmatpush.msra.mxu1 %v289_v2  ;;  %v33_v6 = vld [vmem:[%s5206_s0 + $0x8] sm:$0xff]  ;;  %v166_v8 = vld [vmem:[%s5206_s0 + $0x430] sm:$0xff]  ;;  %vm2388_vm2 = vcmask 130048   ;;  %vm2700_vm3 = vcmask 523264  }
   0x8   :  { %1084 = vmatpush.msra.mxu0 %v288_v3  ;;  %3067 = vmatpush.msra.mxu3 %v288_v3  ;;  %v225_v7 = vld [vmem:[%s5206_s0 + $0x608] sm:$0xff]  ;;  %v34_v9 = vld [vmem:[%s5206_s0 + $0x10] sm:$0xff]  ;;  %v167_v11 = vld [vmem:[%s5206_s0 + $0x438] sm:$0xff]  ;;  %s2755_s27 = sshll.u32 %s5215_s9, 4  ;;  %vm2744_vm4 = vcmask 17408   ;;  %s2756_s27 = int_to_ptr.hbm [resolvable:$true] %s2755_s27 }
   0x9   :  { %2767 = vmatmul.msk.f32.vlgmr.msra.gmra.mxu0 %vm296_vm1, %v32_v4  ;;  %2959 = vmatmul.msk.f32.vlgmr.msra.gmra.mxu3 %vm296_vm1, %v224_v5  ;;  %v226_v10 = vld [vmem:[%s5206_s0 + $0x610] sm:$0xff]  ;;  %v35_v12 = vld [vmem:[%s5206_s0 + $0x18] sm:$0xff]  ;;  %v168_v14 = vld [vmem:[%s5206_s0 + $0x440] sm:$0xff] }
   0xa   :  { %3066 = vmatpush.msra.mxu2 %v288_v3  ;;  %3065 = vmatpush.msra.mxu1 %v288_v3  ;;  %v227_v13 = vld [vmem:[%s5206_s0 + $0x618] sm:$0xff]  ;;  %v36_v15 = vld [vmem:[%s5206_s0 + $0x20] sm:$0xff]  ;;  %v169_v17 = vld [vmem:[%s5206_s0 + $0x448] sm:$0xff] }
   0xb   :  { %2901 = vmatmul.msk.f32.vlgmr.msra.gmra.mxu2 %vm296_vm1, %v166_v8  ;;  %v228_v16 = vld [vmem:[%s5206_s0 + $0x620] sm:$0xff]  ;;  %v37_v18 = vld [vmem:[%s5206_s0 + $0x28] sm:$0xff]  ;;  %v170_v20 = vld [vmem:[%s5206_s0 + $0x450] sm:$0xff] }
   0xc   :  { %v229_v19 = vld [vmem:[%s5206_s0 + $0x628] sm:$0xff]  ;;  %v38_v21 = vld [vmem:[%s5206_s0 + $0x30] sm:$0xff]  ;;  %v171_v23 = vld [vmem:[%s5206_s0 + $0x458] sm:$0xff] }
   0xd   :  { %v230_v22 = vld [vmem:[%s5206_s0 + $0x630] sm:$0xff]  ;;  %v39_v24 = vld [vmem:[%s5206_s0 + $0x38] sm:$0xff]  ;;  %v172_v27 = vld [vmem:[%s5206_s0 + $0x460] sm:$0xff] }
   0xe   :  { %v231_v25 = vld [vmem:[%s5206_s0 + $0x638] sm:$0xff]  ;;  %v40_v28 = vld [vmem:[%s5206_s0 + $0x40] sm:$0xff]  ;;  %v173_v31 = vld [vmem:[%s5206_s0 + $0x468] sm:$0xff] }
   0xf   :  { %v107_v26 = vld [vmem:[%s5206_s0 + $0x258] sm:$0xff]  ;;  %v232_v29 = vld [vmem:[%s5206_s0 + $0x640] sm:$0xff]  ;;  %v41_v32 = vld [vmem:[%s5206_s0 + $0x48] sm:$0xff] }
  0x10   :  { %2842 = vmatmul.msk.f32.vlgmr.msra.gmra.mxu1 %vm296_vm1, %v107_v26  ;;  %v108_v30 = vld [vmem:[%s5206_s0 + $0x260] sm:$0xff]  ;;  %v233_v33 = vld [vmem:[%s5206_s0 + $0x648] sm:$0xff]  ;;  %v174_v35 = vld [vmem:[%s5206_s0 + $0x470] sm:$0xff] }
  0x11   :  { %2768 = vmatmul.msk.f32.gmra.mxu0 %vm296_vm1, %v33_v6  ;;  %2960 = vmatmul.msk.f32.gmra.mxu3 %vm296_vm1, %v225_v7  ;;  %v109_v34 = vld [vmem:[%s5206_s0 + $0x268] sm:$0xff]  ;;  %v42_v36 = vld [vmem:[%s5206_s0 + $0x50] sm:$0xff]  ;;  %v175_v39 = vld [vmem:[%s5206_s0 + $0x478] sm:$0xff] }
  0x12   :  { %v234_v37 = vld [vmem:[%s5206_s0 + $0x650] sm:$0xff]  ;;  %v43_v40 = vld [vmem:[%s5206_s0 + $0x58] sm:$0xff]  ;;  %v44_v43 = vld [vmem:[%s5206_s0 + $0x60] sm:$0xff] }
  0x13   :  { %2902 = vmatmul.msk.f32.gmra.mxu2 %vm296_vm1, %v167_v11  ;;  %v110_v38 = vld [vmem:[%s5206_s0 + $0x270] sm:$0xff]  ;;  %v235_v41 = vld [vmem:[%s5206_s0 + $0x658] sm:$0xff]  ;;  %v236_v44 = vld [vmem:[%s5206_s0 + $0x660] sm:$0xff] }
  0x14   :  { %v111_v42 = vld [vmem:[%s5206_s0 + $0x278] sm:$0xff]  ;;  %v176_v45 = vld [vmem:[%s5206_s0 + $0x480] sm:$0xff]  ;;  %v45_v47 = vld [vmem:[%s5206_s0 + $0x68] sm:$0xff] }
  0x15   :  { %v112_v46 = vld [vmem:[%s5206_s0 + $0x280] sm:$0xff]  ;;  %v237_v48 = vld [vmem:[%s5206_s0 + $0x668] sm:$0xff]  ;;  %v46_v51 = vld [vmem:[%s5206_s0 + $0x70] sm:$0xff] }
  0x16   :  { %v177_v49 = vld [vmem:[%s5206_s0 + $0x488] sm:$0xff]  ;;  %v238_v52 = vld [vmem:[%s5206_s0 + $0x670] sm:$0xff]  ;;  %v47_v55 = vld [vmem:[%s5206_s0 + $0x78] sm:$0xff] }
  0x17   :  { %v113_v50 = vld [vmem:[%s5206_s0 + $0x288] sm:$0xff]  ;;  %v178_v53 = vld [vmem:[%s5206_s0 + $0x490] sm:$0xff]  ;;  %v239_v56 = vld [vmem:[%s5206_s0 + $0x678] sm:$0xff] }
  0x18   :  { %2843 = vmatmul.msk.f32.gmra.mxu1 %vm296_vm1, %v108_v30  ;;  %v114_v54 = vld [vmem:[%s5206_s0 + $0x290] sm:$0xff]  ;;  %v179_v57 = vld [vmem:[%s5206_s0 + $0x498] sm:$0xff]  ;;  %v48_v60 = vld [vmem:[%s5206_s0 + $0x80] sm:$0xff] }
  0x19   :  { %2769 = vmatmul.msk.f32.gmra.mxu0 %vm296_vm1, %v34_v9  ;;  %2961 = vmatmul.msk.f32.gmra.mxu3 %vm296_vm1, %v226_v10  ;;  %v115_v58 = vld [vmem:[%s5206_s0 + $0x298] sm:$0xff]  ;;  %v240_v61 = vld [vmem:[%s5206_s0 + $0x680] sm:$0xff]  ;;  %v49_v2 = vld [vmem:[%s5206_s0 + $0x88] sm:$0xff] }
  0x1a   :  { %v180_v62 = vld [vmem:[%s5206_s0 + $0x4a0] sm:$0xff]  ;;  %v241_v3 = vld [vmem:[%s5206_s0 + $0x688] sm:$0xff]  ;;  %v50_v8 = vld [vmem:[%s5206_s0 + $0x90] sm:$0xff] }
  0x1b   :  { %2903 = vmatmul.msk.f32.gmra.mxu2 %vm296_vm1, %v168_v14  ;;  %v116_v63 = vld [vmem:[%s5206_s0 + $0x2a0] sm:$0xff]  ;;  %v181_v4 = vld [vmem:[%s5206_s0 + $0x4a8] sm:$0xff]  ;;  %v242_v9 = vld [vmem:[%s5206_s0 + $0x690] sm:$0xff] }
  0x1c   :  { %v117_v5 = vld [vmem:[%s5206_s0 + $0x2a8] sm:$0xff]  ;;  %v182_v10 = vld [vmem:[%s5206_s0 + $0x4b0] sm:$0xff]  ;;  %v120_v26 = vld [vmem:[%s5206_s0 + $0x2c0] sm:$0xff] }
  0x1d   :  { %v245_v30 = vld [vmem:[%s5206_s0 + $0x6a8] sm:$0xff] }
  0x20   :  { %2844 = vmatmul.msk.f32.gmra.mxu1 %vm296_vm1, %v109_v34 }
  0x21   :  { %2770 = vmatmul.msk.f32.gmra.mxu0 %vm296_vm1, %v35_v12  ;;  %2962 = vmatmul.msk.f32.gmra.mxu3 %vm296_vm1, %v227_v13  ;;  %v118_v12 = vld [vmem:[%s5206_s0 + $0x2b0] sm:$0xff] }
  0x23   :  { %2904 = vmatmul.msk.f32.gmra.mxu2 %vm296_vm1, %v169_v17  ;;  %v183_v17 = vld [vmem:[%s5206_s0 + $0x4b8] sm:$0xff] }
  0x28   :  { %2845 = vmatmul.msk.f32.gmra.mxu1 %vm296_vm1, %v110_v38  ;;  %v246_v38 = vld [vmem:[%s5206_s0 + $0x6b0] sm:$0xff] }
  0x29   :  { %2771 = vmatmul.msk.f32.gmra.mxu0 %vm296_vm1, %v36_v15  ;;  %2963 = vmatmul.msk.f32.gmra.mxu3 %vm296_vm1, %v228_v16  ;;  %v51_v15 = vld [vmem:[%s5206_s0 + $0x98] sm:$0xff] }
  0x2a   :  { %v243_v16 = vld [vmem:[%s5206_s0 + $0x698] sm:$0xff] }
  0x2b   :  { %2905 = vmatmul.msk.f32.gmra.mxu2 %vm296_vm1, %v170_v20 }
  0x30   :  { %2846 = vmatmul.msk.f32.gmra.mxu1 %vm296_vm1, %v111_v42 }
  0x31   :  { %2772 = vmatmul.msk.f32.gmra.mxu0 %vm296_vm1, %v37_v18  ;;  %2964 = vmatmul.msk.f32.gmra.mxu3 %vm296_vm1, %v229_v19  ;;  %v119_v19 = vld [vmem:[%s5206_s0 + $0x2b8] sm:$0xff] }
  0x33   :  { %2906 = vmatmul.msk.f32.gmra.mxu2 %vm296_vm1, %v171_v23  ;;  %v244_v23 = vld [vmem:[%s5206_s0 + $0x6a0] sm:$0xff] }
  0x38   :  { %2847 = vmatmul.msk.f32.gmra.mxu1 %vm296_vm1, %v112_v46 }
  0x39   :  { %2773 = vmatmul.msk.f32.gmra.mxu0 %vm296_vm1, %v38_v21  ;;  %2965 = vmatmul.msk.f32.gmra.mxu3 %vm296_vm1, %v230_v22  ;;  %v52_v22 = vld [vmem:[%s5206_s0 + $0xa0] sm:$0xff] }
  0x3b   :  { %2907 = vmatmul.msk.f32.gmra.mxu2 %vm296_vm1, %v172_v27 }
  0x40   :  { %2848 = vmatmul.msk.f32.gmra.mxu1 %vm296_vm1, %v113_v50  ;;  %v247_v50 = vld [vmem:[%s5206_s0 + $0x6b8] sm:$0xff] }
  0x41   :  { %2774 = vmatmul.msk.f32.gmra.mxu0 %vm296_vm1, %v39_v24  ;;  %2966 = vmatmul.msk.f32.gmra.mxu3 %vm296_vm1, %v231_v25  ;;  %v184_v24 = vld [vmem:[%s5206_s0 + $0x4c0] sm:$0xff] }
  0x43   :  { %2908 = vmatmul.msk.f32.gmra.mxu2 %vm296_vm1, %v173_v31  ;;  %v185_v31 = vld [vmem:[%s5206_s0 + $0x4c8] sm:$0xff] }
  0x48   :  { %2849 = vmatmul.msk.f32.gmra.mxu1 %vm296_vm1, %v114_v54 }
  0x49   :  { %2775 = vmatmul.msk.f32.gmra.mxu0 %vm296_vm1, %v40_v28  ;;  %2967 = vmatmul.msk.f32.gmra.mxu3 %vm296_vm1, %v232_v29  ;;  %v53_v29 = vld [vmem:[%s5206_s0 + $0xa8] sm:$0xff] }
  0x4b   :  { %2909 = vmatmul.msk.f32.gmra.mxu2 %vm296_vm1, %v174_v35  ;;  %v3507_v35 = vld [vmem:[%s5208_s2] ss:$0 sm:$0xff] }
  0x50   :  { %2850 = vmatmul.msk.f32.gmra.mxu1 %vm296_vm1, %v115_v58 }
  0x51   :  { %2776 = vmatmul.msk.f32.gmra.mxu0 %vm296_vm1, %v41_v32  ;;  %2968 = vmatmul.msk.f32.gmra.mxu3 %vm296_vm1, %v233_v33  ;;  %v121_v33 = vld [vmem:[%s5206_s0 + $0x2c8] sm:$0xff] }
  0x53   :  { %2910 = vmatmul.msk.f32.gmra.mxu2 %vm296_vm1, %v175_v39  ;;  %v186_v39 = vld [vmem:[%s5206_s0 + $0x4d0] sm:$0xff] }
  0x58   :  { %2851 = vmatmul.msk.f32.gmra.mxu1 %vm296_vm1, %v116_v63 }
  0x59   :  { %2777 = vmatmul.msk.f32.gmra.mxu0 %vm296_vm1, %v42_v36  ;;  %2969 = vmatmul.msk.f32.gmra.mxu3 %vm296_vm1, %v234_v37  ;;  %v54_v37 = vld [vmem:[%s5206_s0 + $0xb0] sm:$0xff] }
  0x5b   :  { %2911 = vmatmul.msk.f32.gmra.mxu2 %vm296_vm1, %v176_v45 }
  0x60   :  { %2852 = vmatmul.msk.f32.gmra.mxu1 %vm296_vm1, %v117_v5  ;;  %v248_v5 = vld [vmem:[%s5206_s0 + $0x6c0] sm:$0xff] }
  0x61   :  { %2778 = vmatmul.msk.f32.gmra.mxu0 %vm296_vm1, %v43_v40  ;;  %2970 = vmatmul.msk.f32.gmra.mxu3 %vm296_vm1, %v235_v41 }
  0x63   :  { %2912 = vmatmul.msk.f32.gmra.mxu2 %vm296_vm1, %v177_v49  ;;  %v55_v49 = vld [vmem:[%s5206_s0 + $0xb8] sm:$0xff] }
  0x68   :  { %2853 = vmatmul.msk.f32.gmra.mxu1 %vm296_vm1, %v118_v12 }
  0x69   :  { %2779 = vmatmul.msk.f32.gmra.mxu0 %vm296_vm1, %v44_v43  ;;  %2971 = vmatmul.msk.f32.gmra.mxu3 %vm296_vm1, %v236_v44  ;;  %v122_v43 = vld [vmem:[%s5206_s0 + $0x2d0] sm:$0xff] }
  0x6b   :  { %2913 = vmatmul.msk.f32.gmra.mxu2 %vm296_vm1, %v178_v53 }
  0x70   :  { %2854 = vmatmul.msk.f32.gmra.mxu1 %vm296_vm1, %v119_v19 }
  0x71   :  { %2780 = vmatmul.msk.f32.gmra.mxu0 %vm296_vm1, %v45_v47  ;;  %2972 = vmatmul.msk.f32.gmra.mxu3 %vm296_vm1, %v237_v48 }
  0x73   :  { %2914 = vmatmul.msk.f32.gmra.mxu2 %vm296_vm1, %v179_v57 }
  0x78   :  { %2855 = vmatmul.msk.f32.gmra.mxu1 %vm296_vm1, %v120_v26  ;;  %v57_v26 = vld [vmem:[%s5206_s0 + $0xc8] sm:$0xff] }
  0x79   :  { %2781 = vmatmul.msk.f32.gmra.mxu0 %vm296_vm1, %v46_v51  ;;  %2973 = vmatmul.msk.f32.gmra.mxu3 %vm296_vm1, %v238_v52  ;;  %v187_v51 = vld [vmem:[%s5206_s0 + $0x4d8] sm:$0xff] }
  0x7b   :  { %2915 = vmatmul.msk.f32.gmra.mxu2 %vm296_vm1, %v180_v62 }
  0x80   :  { %2856 = vmatmul.msk.f32.gmra.mxu1 %vm296_vm1, %v121_v33 }
  0x81   :  { %2782 = vmatmul.msk.f32.gmra.mxu0 %vm296_vm1, %v47_v55  ;;  %2974 = vmatmul.msk.f32.gmra.mxu3 %vm296_vm1, %v239_v56 }
  0x83   :  { %2916 = vmatmul.msk.f32.gmra.mxu2 %vm296_vm1, %v181_v4  ;;  %v56_v4 = vld [vmem:[%s5206_s0 + $0xc0] sm:$0xff] }
  0x86   :  { %v3382_v59 = vpop.f32.mrf.mxu0 }
  0x88   :  { %2857 = vmatmul.msk.f32.gmra.mxu1 %vm296_vm1, %v122_v43 }
  0x89   :  { %2783 = vmatmul.msk.f32.gmra.mxu0 %vm296_vm1, %v48_v60  ;;  %2975 = vmatmul.msk.f32.gmra.mxu3 %vm296_vm1, %v240_v61  ;;  %v123_v60 = vld [vmem:[%s5206_s0 + $0x2d8] sm:$0xff] }
  0x8b   :  { %2917 = vmatmul.msk.f32.gmra.mxu2 %vm296_vm1, %v182_v10 }
  0x8c   :  { %v3400_v0 = vpop.f32.mrf.mxu3 }
  0x8d   :  { %v3541_v56 = vpop.f32.mrf.mxu1 }
  0x8e   :  { %v3402_v1 = vpop.f32.mrf.mxu0  ;;  %v1488_v11 = vpop.f32.mrf.mxu2 }
  0x8f   :  { %v1489_v41 = vadd.f32 %v3507_v35, %v1488_v11 }
  0x90   :  { %2858 = vmatmul.msk.f32.gmra.mxu1 %vm296_vm1, %v123_v60 }
  0x91   :  { %2784 = vmatmul.msk.f32.gmra.mxu0 %vm296_vm1, %v49_v2  ;;  %2976 = vmatmul.msk.f32.gmra.mxu3 %vm296_vm1, %v241_v3  ;;  %v1988_v45 = vmax.f32 %v1489_v41, 0.0  ;;  %v125_v41 = vld [vmem:[%s5206_s0 + $0x2e8] sm:$0xff] }
  0x93   :  { %2918 = vmatmul.msk.f32.gmra.mxu2 %vm296_vm1, %v183_v17 }
  0x94   :  { %v3420_v6 = vpop.f32.mrf.mxu3 }
  0x96   :  { %v3422_v7 = vpop.f32.mrf.mxu0  ;;  %v1491_v18 = vpop.f32.mrf.mxu2 }
  0x97   :  { %v1492_v54 = vadd.f32 %v3507_v35, %v1491_v18  ;;  %v124_v18 = vld [vmem:[%s5206_s0 + $0x2e0] sm:$0xff] }
  0x98   :  { %2859 = vmatmul.msk.f32.gmra.mxu1 %vm296_vm1, %v124_v18 }
  0x99   :  { %2785 = vmatmul.msk.f32.gmra.mxu0 %vm296_vm1, %v50_v8  ;;  %2977 = vmatmul.msk.f32.gmra.mxu3 %vm296_vm1, %v242_v9  ;;  %v1989_v62 = vmax.f32 %v1492_v54, 0.0  ;;  %v188_v8 = vld [vmem:[%s5206_s0 + $0x4e0] sm:$0xff] }
  0x9b   :  { %2919 = vmatmul.msk.f32.gmra.mxu2 %vm296_vm1, %v184_v24 }
  0x9c   :  { %v3440_v13 = vpop.f32.mrf.mxu3 }
  0x9e   :  { %v3442_v14 = vpop.f32.mrf.mxu0  ;;  %v1494_v25 = vpop.f32.mrf.mxu2 }
  0x9f   :  { %v1495_v11 = vadd.f32 %v3507_v35, %v1494_v25 }
  0xa0   :  { %2860 = vmatmul.msk.f32.gmra.mxu1 %vm296_vm1, %v125_v41  ;;  %v252_v41 = vld [vmem:[%s5206_s0 + $0x6e0] sm:$0xff] }
  0xa1   :  { %2786 = vmatmul.msk.f32.gmra.mxu0 %vm296_vm1, %v51_v15  ;;  %2978 = vmatmul.msk.f32.gmra.mxu3 %vm296_vm1, %v243_v16  ;;  %v3566_v15 = vpop.f32.mrf.mxu1 }
  0xa3   :  { %2920 = vmatmul.msk.f32.gmra.mxu2 %vm296_vm1, %v185_v31 }
  0xa4   :  { %v3460_v20 = vpop.f32.mrf.mxu3 }
  0xa6   :  { %v3462_v21 = vpop.f32.mrf.mxu0  ;;  %v3493_v32 = vpop.f32.mrf.mxu2 }
  0xa9   :  { %2787 = vmatmul.msk.f32.gmra.mxu0 %vm296_vm1, %v52_v22  ;;  %2979 = vmatmul.msk.f32.gmra.mxu3 %vm296_vm1, %v244_v23  ;;  %v1990_v22 = vmax.f32 %v1495_v11, 0.0 }
  0xab   :  { %2921 = vmatmul.msk.f32.gmra.mxu2 %vm296_vm1, %v186_v39 }
  0xac   :  { %v3480_v27 = vpop.f32.mrf.mxu3 }
  0xae   :  { %v3482_v28 = vpop.f32.mrf.mxu0  ;;  %v3521_v42 = vpop.f32.mrf.mxu2 }
  0xb1   :  { %2788 = vmatmul.msk.f32.gmra.mxu0 %vm296_vm1, %v53_v29  ;;  %2980 = vmatmul.msk.f32.gmra.mxu3 %vm296_vm1, %v245_v30  ;;  %v249_v29 = vld [vmem:[%s5206_s0 + $0x6c8] sm:$0xff] }
  0xb2   :  { %v189_v30 = vld [vmem:[%s5206_s0 + $0x4e8] sm:$0xff] }
  0xb3   :  { %2922 = vmatmul.msk.f32.gmra.mxu2 %vm296_vm1, %v187_v51 }
  0xb4   :  { %v3502_v34 = vpop.f32.mrf.mxu3 }
  0xb6   :  { %v1104_v36 = vpop.f32.mrf.mxu0  ;;  %v3544_v57 = vpop.f32.mrf.mxu2 }
  0xb7   :  { %v1105_v40 = vadd.f32 %v3507_v35, %v1104_v36  ;;  %v1498_v36 = vadd.f32 %v3507_v35, %v3493_v32 }
  0xb9   :  { %2789 = vmatmul.msk.f32.gmra.mxu0 %vm296_vm1, %v54_v37  ;;  %2981 = vmatmul.msk.f32.gmra.mxu3 %vm296_vm1, %v246_v38  ;;  %v1860_v44 = vmax.f32 %v1105_v40, 0.0  ;;  %v3592_v38 = vpop.f32.mrf.mxu1 }
  0xbb   :  { %v2116_v53 = vmax.f32 %v1860_v44, %v1988_v45  ;;  %2923 = vmatmul.msk.f32.gmra.mxu2 %vm296_vm1, %v188_v8  ;;  %v1991_v44 = vmax.f32 %v1498_v36, 0.0  ;;  %v1504_v8 = vadd.f32 %v3507_v35, %v3544_v57  ;;  %v60_v36 = vld [vmem:[%s5206_s0 + $0xe0] sm:$0xff] }
  0xbc   :  { %v1680_v46 = vpop.f32.mrf.mxu3 }
  0xbd   :  { %v1681_v47 = vadd.f32 %v3507_v35, %v1680_v46 }
  0xbe   :  { %v1107_v48 = vpop.f32.mrf.mxu0  ;;  %v3569_v16 = vpop.f32.mrf.mxu2 }
  0xbf   :  { %v1108_v52 = vadd.f32 %v3507_v35, %v1107_v48  ;;  %v2052_v55 = vmax.f32 %v1681_v47, 0.0  ;;  %v58_v47 = vld [vmem:[%s5206_s0 + $0xd0] sm:$0xff] }
  0xc0   :  { %v250_v48 = vld [vmem:[%s5206_s0 + $0x6d0] sm:$0xff] }
  0xc1   :  { %2790 = vmatmul.msk.f32.gmra.mxu0 %vm296_vm1, %v55_v49  ;;  %v3547_v58 = vmax.f32 %v2116_v53, %v2052_v55  ;;  %2982 = vmatmul.msk.f32.gmra.mxu3 %vm296_vm1, %v247_v50  ;;  %v1861_v61 = vmax.f32 %v1108_v52, 0.0  ;;  %v190_v49 = vld [vmem:[%s5206_s0 + $0x4f0] sm:$0xff]  ;;  %v1501_v52 = vadd.f32 %v3507_v35, %v3521_v42  ;;  %v3618_v54 = vpop.f32.mrf.mxu1  ;;  %v1312_v42 = vadd.f32 %v3507_v35, %v3541_v56  ;;  %v191_v56 = vld [vmem:[%s5206_s0 + $0x4f8] sm:$0xff] }
  0xc3   :  { %v2117_v10 = vmax.f32 %v1861_v61, %v1989_v62  ;;  %2924 = vmatmul.msk.f32.gmra.mxu2 %vm296_vm1, %v189_v30  ;;  %v126_v61 = vld [vmem:[%s5206_s0 + $0x2f0] sm:$0xff]  ;;  %v1929_v11 = vmax.f32 %v1312_v42, 0.0  ;;  %v61_v42 = vld [vmem:[%s5206_s0 + $0xe8] sm:$0xff] }
  0xc4   :  { %v1683_v63 = vpop.f32.mrf.mxu3  ;;  %2861 = vmatmul.msk.f32.gmra.mxu1 %vm296_vm1, %v126_v61 }
  0xc5   :  { %v1684_v2 = vadd.f32 %v3507_v35, %v1683_v63  ;;  %v1992_v63 = vmax.f32 %v1501_v52, 0.0 }
  0xc6   :  { %v1110_v3 = vpop.f32.mrf.mxu0  ;;  %v3595_v39 = vpop.f32.mrf.mxu2 }
  0xc7   :  { %v1111_v9 = vadd.f32 %v3507_v35, %v1110_v3  ;;  %v2053_v12 = vmax.f32 %v1684_v2, 0.0 }
  0xc9   :  { %2791 = vmatmul.msk.f32.gmra.mxu0 %vm296_vm1, %v56_v4  ;;  %v3572_v17 = vmax.f32 %v2117_v10, %v2053_v12  ;;  %2983 = vmatmul.msk.f32.gmra.mxu3 %vm296_vm1, %v248_v5  ;;  %v1862_v19 = vmax.f32 %v1111_v9, 0.0  ;;  %v59_v5 = vld [vmem:[%s5206_s0 + $0xd8] sm:$0xff] }
  0xca   :  { %v251_v9 = vld [vmem:[%s5206_s0 + $0x6d8] sm:$0xff] }
  0xcb   :  { %v2118_v33 = vmax.f32 %v1862_v19, %v1990_v22  ;;  %2925 = vmatmul.msk.f32.gmra.mxu2 %vm296_vm1, %v190_v49  ;;  %v3647_v19 = vpop.f32.mrf.mxu1 }
  0xcc   :  { %v1686_v23 = vpop.f32.mrf.mxu3 }
  0xcd   :  { %v1687_v24 = vadd.f32 %v3507_v35, %v1686_v23  ;;  %v127_v23 = vld [vmem:[%s5206_s0 + $0x2f8] sm:$0xff] }
  0xce   :  { %v1113_v25 = vpop.f32.mrf.mxu0  ;;  %v3621_v55 = vpop.f32.mrf.mxu2  ;;  %2862 = vmatmul.msk.f32.gmra.mxu1 %vm296_vm1, %v127_v23 }
  0xcf   :  { %v1114_v31 = vadd.f32 %v3507_v35, %v1113_v25  ;;  %v2054_v37 = vmax.f32 %v1687_v24, 0.0 }
  0xd1   :  { %2792 = vmatmul.msk.f32.gmra.mxu0 %vm296_vm1, %v57_v26  ;;  %v3598_v40 = vmax.f32 %v2118_v33, %v2054_v37  ;;  %2984 = vmatmul.msk.f32.gmra.mxu3 %vm296_vm1, %v249_v29  ;;  %v1863_v43 = vmax.f32 %v1114_v31, 0.0  ;;  %v1315_v26 = vadd.f32 %v3507_v35, %v3566_v15  ;;  %v1993_v29 = vmax.f32 %v1504_v8, 0.0  ;;  %v192_v15 = vld [vmem:[%s5206_s0 + $0x500] sm:$0xff] }
  0xd2   :  { %v1507_v37 = vadd.f32 %v3507_v35, %v3569_v16 }
  0xd3   :  { %v2119_v51 = vmax.f32 %v1863_v43, %v1991_v44  ;;  %2926 = vmatmul.msk.f32.gmra.mxu2 %vm296_vm1, %v191_v56  ;;  %v1930_v44 = vmax.f32 %v1315_v26, 0.0 }
  0xd4   :  { %v1689_v32 = vpop.f32.mrf.mxu3  ;;  %v1994_v52 = vmax.f32 %v1507_v37, 0.0 }
  0xd5   :  { %v1690_v45 = vadd.f32 %v3507_v35, %v1689_v32 }
  0xd6   :  { %v1116_v46 = vpop.f32.mrf.mxu0  ;;  %v3656_v24 = vpop.f32.mrf.mxu2 }
  0xd7   :  { %v1117_v50 = vadd.f32 %v3507_v35, %v1116_v46  ;;  %v2055_v53 = vmax.f32 %v1690_v45, 0.0  ;;  %v3675_v46 = vpop.f32.mrf.mxu1 }
  0xd9   :  { %2793 = vmatmul.msk.f32.gmra.mxu0 %vm296_vm1, %v58_v47  ;;  %v3624_v60 = vmax.f32 %v2119_v51, %v2055_v53  ;;  %2985 = vmatmul.msk.f32.gmra.mxu3 %vm296_vm1, %v250_v48  ;;  %v1864_v62 = vmax.f32 %v1117_v50, 0.0  ;;  %v128_v48 = vld [vmem:[%s5206_s0 + $0x300] sm:$0xff]  ;;  %v1318_v51 = vadd.f32 %v3507_v35, %v3592_v38  ;;  %v193_v38 = vld [vmem:[%s5206_s0 + $0x508] sm:$0xff] }
  0xda   :  { %2863 = vmatmul.msk.f32.gmra.mxu1 %vm296_vm1, %v128_v48 }
  0xdb   :  { %v2120_v12 = vmax.f32 %v1864_v62, %v1992_v63  ;;  %2927 = vmatmul.msk.f32.gmra.mxu2 %vm296_vm1, %v192_v15  ;;  %v1510_v63 = vadd.f32 %v3507_v35, %v3595_v39 }
  0xdc   :  { %v1692_v2 = vpop.f32.mrf.mxu3 }
  0xdd   :  { %v1693_v3 = vadd.f32 %v3507_v35, %v1692_v2  ;;  %v253_v2 = vld [vmem:[%s5206_s0 + $0x6e8] sm:$0xff] }
  0xde   :  { %v1119_v4 = vpop.f32.mrf.mxu0  ;;  %v3684_v49 = vpop.f32.mrf.mxu2 }
  0xdf   :  { %v1120_v10 = vadd.f32 %v3507_v35, %v1119_v4  ;;  %v2056_v18 = vmax.f32 %v1693_v3, 0.0  ;;  %v1931_v4 = vmax.f32 %v1318_v51, 0.0 }
  0xe1   :  { %v1865_v22 = vmax.f32 %v1120_v10, 0.0  ;;  %2794 = vmatmul.msk.f32.gmra.mxu0 %vm296_vm1, %v59_v5  ;;  %v3650_v57 = vmax.f32 %v2120_v12, %v2056_v18  ;;  %2986 = vmatmul.msk.f32.gmra.mxu3 %vm296_vm1, %v251_v9  ;;  %v3703_v9 = vpop.f32.mrf.mxu1  ;;  %v129_v10 = vld [vmem:[%s5206_s0 + $0x308] sm:$0xff]  ;;  %v1321_v18 = vadd.f32 %v3507_v35, %v3618_v54  ;;  %v194_v54 = vld [vmem:[%s5206_s0 + $0x510] sm:$0xff] }
  0xe2   :  { %2864 = vmatmul.msk.f32.gmra.mxu1 %vm296_vm1, %v129_v10 }
  0xe3   :  { %v2121_v25 = vmax.f32 %v1865_v22, %v1929_v11  ;;  %2928 = vmatmul.msk.f32.gmra.mxu2 %vm296_vm1, %v193_v38  ;;  %v1995_v22 = vmax.f32 %v1510_v63, 0.0 }
  0xe4   :  { %v1695_v30 = vpop.f32.mrf.mxu3 }
  0xe5   :  { %v1696_v31 = vadd.f32 %v3507_v35, %v1695_v30  ;;  %v2137_v32 = vmax.f32 %v2121_v25, %v1993_v29  ;;  %v62_v29 = vld [vmem:[%s5206_s0 + $0xf0] sm:$0xff]  ;;  %v1513_v30 = vadd.f32 %v3507_v35, %v3621_v55 }
  0xe6   :  { %v1122_v33 = vpop.f32.mrf.mxu0  ;;  %v3712_v11 = vpop.f32.mrf.mxu2 }
  0xe7   :  { %v1123_v43 = vadd.f32 %v3507_v35, %v1122_v33  ;;  %v2057_v45 = vmax.f32 %v1696_v31, 0.0  ;;  %v254_v31 = vld [vmem:[%s5206_s0 + $0x6f0] sm:$0xff]  ;;  %v1996_v48 = vmax.f32 %v1513_v30, 0.0  ;;  %v256_v30 = vld [vmem:[%s5206_s0 + $0x700] sm:$0xff] }
  0xe9   :  { %v1866_v47 = vmax.f32 %v1123_v43, 0.0  ;;  %2795 = vmatmul.msk.f32.gmra.mxu0 %vm296_vm1, %v60_v36  ;;  %v3678_v16 = vmax.f32 %v2137_v32, %v2057_v45  ;;  %2987 = vmatmul.msk.f32.gmra.mxu3 %vm296_vm1, %v252_v41  ;;  %v1932_v36 = vmax.f32 %v1321_v18, 0.0  ;;  %v3731_v15 = vpop.f32.mrf.mxu1 }
  0xeb   :  { %v2122_v50 = vmax.f32 %v1866_v47, %v1930_v44  ;;  %2929 = vmatmul.msk.f32.gmra.mxu2 %vm296_vm1, %v194_v54  ;;  %v130_v44 = vld [vmem:[%s5206_s0 + $0x310] sm:$0xff]  ;;  %v1324_v47 = vadd.f32 %v3507_v35, %v3647_v19  ;;  %v195_v19 = vld [vmem:[%s5206_s0 + $0x518] sm:$0xff] }
  0xec   :  { %v1698_v53 = vpop.f32.mrf.mxu3  ;;  %2865 = vmatmul.msk.f32.gmra.mxu1 %vm296_vm1, %v130_v44 }
  0xed   :  { %v1699_v61 = vadd.f32 %v3507_v35, %v1698_v53  ;;  %v2138_v5 = vmax.f32 %v2122_v50, %v1994_v52  ;;  %v63_v53 = vld [vmem:[%s5206_s0 + $0xf8] sm:$0xff]  ;;  %v1933_v63 = vmax.f32 %v1324_v47, 0.0 }
  0xee   :  { %v1125_v62 = vpop.f32.mrf.mxu0  ;;  %v3740_v32 = vpop.f32.mrf.mxu2 }
  0xef   :  { %v1126_v3 = vadd.f32 %v3507_v35, %v1125_v62  ;;  %v2058_v8 = vmax.f32 %v1699_v61, 0.0  ;;  %v1516_v61 = vadd.f32 %v3507_v35, %v3656_v24  ;;  %v255_v62 = vld [vmem:[%s5206_s0 + $0x6f8] sm:$0xff] }
  0xf1   :  { %v1867_v56 = vmax.f32 %v1126_v3, 0.0  ;;  %2796 = vmatmul.msk.f32.gmra.mxu0 %vm296_vm1, %v61_v42  ;;  %v3706_v39 = vmax.f32 %v2138_v5, %v2058_v8  ;;  %2988 = vmatmul.msk.f32.gmra.mxu3 %vm296_vm1, %v253_v2  ;;  %v1663_v3 = vadd.f32 %v3507_v35, %v3400_v0  ;;  %v1087_v8 = vadd.f32 %v3507_v35, %v3382_v59  ;;  %v64_v59 = vld [vmem:[%s5206_s0 + $0x100] sm:$0xff] }
  0xf2   :  { %v1997_v0 = vmax.f32 %v1516_v61, 0.0 }
  0xf3   :  { %v2123_v12 = vmax.f32 %v1867_v56, %v1931_v4  ;;  %2930 = vmatmul.msk.f32.gmra.mxu2 %vm296_vm1, %v195_v19  ;;  %v3761_v4 = vpop.f32.mrf.mxu1  ;;  %v131_v56 = vld [vmem:[%s5206_s0 + $0x318] sm:$0xff]  ;;  %v2046_v18 = vmax.f32 %v1663_v3, 0.0 }
  0xf4   :  { %v1701_v23 = vpop.f32.mrf.mxu3  ;;  %2866 = vmatmul.msk.f32.gmra.mxu1 %vm296_vm1, %v131_v56  ;;  %v1669_v56 = vadd.f32 %v3507_v35, %v3440_v13 }
  0xf5   :  { %v1702_v25 = vadd.f32 %v3507_v35, %v1701_v23  ;;  %v2139_v37 = vmax.f32 %v2123_v12, %v1995_v22  ;;  %v1327_v23 = vadd.f32 %v3507_v35, %v3675_v46  ;;  %v1519_v46 = vadd.f32 %v3507_v35, %v3684_v49 }
  0xf6   :  { %v1128_v26 = vpop.f32.mrf.mxu0  ;;  %v3772_v10 = vpop.f32.mrf.mxu2  ;;  %v1090_v49 = vadd.f32 %v3507_v35, %v3402_v1 }
  0xf7   :  { %v1129_v33 = vadd.f32 %v3507_v35, %v1128_v26  ;;  %v2059_v41 = vmax.f32 %v1702_v25, 0.0  ;;  %v1854_v26 = vmax.f32 %v1087_v8, 0.0 }
  0xf9   :  { %v1868_v43 = vmax.f32 %v1129_v33, 0.0  ;;  %2797 = vmatmul.msk.f32.gmra.mxu0 %vm296_vm1, %v62_v29  ;;  %v3734_v55 = vmax.f32 %v2139_v37, %v2059_v41  ;;  %2989 = vmatmul.msk.f32.gmra.mxu3 %vm296_vm1, %v254_v31  ;;  %v196_v31 = vld [vmem:[%s5206_s0 + $0x520] sm:$0xff]  ;;  %v2110_v37 = vmax.f32 %v1854_v26, %v2046_v18 }
  0xfb   :  { %v2124_v45 = vmax.f32 %v1868_v43, %v1932_v36  ;;  %2931 = vmatmul.msk.f32.gmra.mxu2 %vm296_vm1, %v196_v31  ;;  %v3791_v41 = vpop.f32.mrf.mxu1  ;;  %v1666_v43 = vadd.f32 %v3507_v35, %v3420_v6 }
  0xfc   :  { %v1704_v50 = vpop.f32.mrf.mxu3 }
  0xfd   :  { %v1705_v51 = vadd.f32 %v3507_v35, %v1704_v50  ;;  %v2140_v2 = vmax.f32 %v2124_v45, %v1996_v48  ;;  %v1934_v45 = vmax.f32 %v1327_v23, 0.0  ;;  %v132_v48 = vld [vmem:[%s5206_s0 + $0x320] sm:$0xff] }
  0xfe   :  { %v1131_v52 = vpop.f32.mrf.mxu0  ;;  %v3804_v50 = vpop.f32.mrf.mxu2  ;;  %2867 = vmatmul.msk.f32.gmra.mxu1 %vm296_vm1, %v132_v48 }
  0xff   :  { %v1132_v42 = vadd.f32 %v3507_v35, %v1131_v52  ;;  %v2060_v38 = vmax.f32 %v1705_v51, 0.0  ;;  %v1998_v52 = vmax.f32 %v1519_v46, 0.0 }
 0x101   :  { %v1869_v24 = vmax.f32 %v1132_v42, 0.0  ;;  %2798 = vmatmul.msk.f32.gmra.mxu0 %vm296_vm1, %v63_v53  ;;  %v3764_v5 = vmax.f32 %v2140_v2, %v2060_v38  ;;  %2990 = vmatmul.msk.f32.gmra.mxu3 %vm296_vm1, %v255_v62  ;;  %v2047_v53 = vmax.f32 %v1666_v43, 0.0  ;;  %v1330_v62 = vadd.f32 %v3507_v35, %v3703_v9  ;;  %v257_v2 = vld [vmem:[%s5206_s0 + $0x708] sm:$0xff]  ;;  %v198_v43 = vld [vmem:[%s5206_s0 + $0x530] sm:$0xff] }
 0x102   :  { %v1855_v42 = vmax.f32 %v1090_v49, 0.0  ;;  %v197_v38 = vld [vmem:[%s5206_s0 + $0x528] sm:$0xff]  ;;  %v1522_v9 = vadd.f32 %v3507_v35, %v3712_v11  ;;  %v1093_v11 = vadd.f32 %v3507_v35, %v3422_v7 }
 0x103   :  { %v2125_v12 = vmax.f32 %v1869_v24, %v1933_v63  ;;  %v65_v63 = vld [vmem:[%s5206_s0 + $0x108] sm:$0xff]  ;;  %2932 = vmatmul.msk.f32.gmra.mxu2 %vm296_vm1, %v197_v38  ;;  %v1336_v38 = vadd.f32 %v3507_v35, %v3761_v4  ;;  %v1528_v4 = vadd.f32 %v3507_v35, %v3772_v10  ;;  %v1099_v10 = vadd.f32 %v3507_v35, %v3462_v21 }
 0x104   :  { %v1707_v22 = vpop.f32.mrf.mxu3  ;;  %v1856_v46 = vmax.f32 %v1093_v11, 0.0  ;;  %v1675_v11 = vadd.f32 %v3507_v35, %v3480_v27 }
 0x105   :  { %v1708_v25 = vadd.f32 %v3507_v35, %v1707_v22  ;;  %v2141_v33 = vmax.f32 %v2125_v12, %v1997_v0  ;;  %v3825_v12 = vpop.f32.mrf.mxu1  ;;  %v2111_v0 = vmax.f32 %v1855_v42, %v2047_v53  ;;  %v1935_v22 = vmax.f32 %v1330_v62, 0.0  ;;  %v134_v62 = vld [vmem:[%s5206_s0 + $0x330] sm:$0xff] }
 0x106   :  { %v1134_v29 = vpop.f32.mrf.mxu0  ;;  %v3836_v26 = vpop.f32.mrf.mxu2 }
 0x107   :  { %v1135_v54 = vadd.f32 %v3507_v35, %v1134_v29  ;;  %v2061_v36 = vmax.f32 %v1708_v25, 0.0  ;;  %v133_v25 = vld [vmem:[%s5206_s0 + $0x328] sm:$0xff]  ;;  %v1999_v29 = vmax.f32 %v1522_v9, 0.0  ;;  %v67_v9 = vld [vmem:[%s5206_s0 + $0x118] sm:$0xff] }
 0x108   :  { %2868 = vmatmul.msk.f32.gmra.mxu1 %vm296_vm1, %v133_v25 }
 0x109   :  { %v1870_v44 = vmax.f32 %v1135_v54, 0.0  ;;  %2799 = vmatmul.msk.f32.gmra.mxu0 %vm296_vm1, %v64_v59  ;;  %v3796_v47 = vmax.f32 %v2141_v33, %v2061_v36  ;;  %2991 = vmatmul.msk.f32.gmra.mxu3 %vm296_vm1, %v256_v30  ;;  %v2048_v59 = vmax.f32 %v1669_v56, 0.0  ;;  %v1333_v54 = vadd.f32 %v3507_v35, %v3731_v15  ;;  %v66_v36 = vld [vmem:[%s5206_s0 + $0x110] sm:$0xff]  ;;  %v199_v56 = vld [vmem:[%s5206_s0 + $0x538] sm:$0xff] }
 0x10a   :  { %v1525_v15 = vadd.f32 %v3507_v35, %v3740_v32  ;;  %v1096_v32 = vadd.f32 %v3507_v35, %v3442_v14 }
 0x10b   :  { %v2126_v51 = vmax.f32 %v2110_v37, %v1870_v44  ;;  %v258_v37 = vld [vmem:[%s5206_s0 + $0x710] sm:$0xff]  ;;  %2933 = vmatmul.msk.f32.gmra.mxu2 %vm296_vm1, %v198_v43  ;;  %v2112_v48 = vmax.f32 %v1856_v46, %v2048_v59  ;;  %v1936_v53 = vmax.f32 %v1333_v54, 0.0  ;;  %v1937_v59 = vmax.f32 %v1336_v38, 0.0 }
 0x10c   :  { %v1710_v6 = vpop.f32.mrf.mxu3  ;;  %v2050_v46 = vmax.f32 %v1675_v11, 0.0 }
 0x10d   :  { %v2142_v61 = vmax.f32 %v2126_v51, %v1934_v45  ;;  %v1711_v19 = vadd.f32 %v3507_v35, %v1710_v6  ;;  %v3855_v51 = vpop.f32.mrf.mxu1 }
 0x10e   :  { %v1137_v1 = vpop.f32.mrf.mxu0 }
 0x10f   :  { %v1138_v3 = vadd.f32 %v3507_v35, %v1137_v1  ;;  %v2158_v24 = vmax.f32 %v2142_v61, %v1998_v52  ;;  %v2062_v8 = vmax.f32 %v1711_v19, 0.0  ;;  %v1672_v52 = vadd.f32 %v3507_v35, %v3460_v20  ;;  %v3868_v19 = vpop.f32.mrf.mxu2 }
 0x110   :  { %v2000_v1 = vmax.f32 %v1525_v15, 0.0  ;;  %2869 = vmatmul.msk.f32.gmra.mxu1 %vm296_vm1, %v134_v62  ;;  %v260_v15 = vld [vmem:[%s5206_s0 + $0x720] sm:$0xff]  ;;  %v1678_v62 = vadd.f32 %v3507_v35, %v3502_v34 }
 0x111   :  { %v1871_v18 = vmax.f32 %v1138_v3, 0.0  ;;  %2800 = vmatmul.msk.f32.gmra.mxu0 %vm296_vm1, %v65_v63  ;;  %v3828_v23 = vmax.f32 %v2158_v24, %v2062_v8  ;;  %2992 = vmatmul.msk.f32.gmra.mxu3 %vm296_vm1, %v257_v2  ;;  %v2049_v63 = vmax.f32 %v1672_v52, 0.0  ;;  %v1857_v24 = vmax.f32 %v1096_v32, 0.0  ;;  %v259_v8 = vld [vmem:[%s5206_s0 + $0x718] sm:$0xff] }
 0x113   :  { %v2127_v13 = vmax.f32 %v2111_v0, %v1871_v18  ;;  %2934 = vmatmul.msk.f32.gmra.mxu2 %vm296_vm1, %v199_v56 }
 0x114   :  { %v1713_v30 = vpop.f32.mrf.mxu3 }
 0x115   :  { %v2143_v31 = vmax.f32 %v2127_v13, %v1935_v22  ;;  %v1714_v33 = vadd.f32 %v3507_v35, %v1713_v30  ;;  %v3889_v25 = vpop.f32.mrf.mxu1  ;;  %v2113_v13 = vmax.f32 %v1857_v24, %v2049_v63  ;;  %v136_v63 = vld [vmem:[%s5206_s0 + $0x340] sm:$0xff]  ;;  %v2051_v24 = vmax.f32 %v1678_v62, 0.0 }
 0x116   :  { %v1140_v7 = vpop.f32.mrf.mxu0 }
 0x117   :  { %v1141_v44 = vadd.f32 %v3507_v35, %v1140_v7  ;;  %v2159_v45 = vmax.f32 %v2143_v31, %v1999_v29  ;;  %v2063_v49 = vmax.f32 %v1714_v33, 0.0  ;;  %v135_v31 = vld [vmem:[%s5206_s0 + $0x338] sm:$0xff]  ;;  %v3900_v54 = vpop.f32.mrf.mxu2  ;;  %v2001_v33 = vmax.f32 %v1528_v4, 0.0  ;;  %v201_v4 = vld [vmem:[%s5206_s0 + $0x548] sm:$0xff] }
 0x118   :  { %2870 = vmatmul.msk.f32.gmra.mxu1 %vm296_vm1, %v135_v31 }
 0x119   :  { %v1872_v6 = vmax.f32 %v1141_v44, 0.0  ;;  %2801 = vmatmul.msk.f32.gmra.mxu0 %vm296_vm1, %v66_v36  ;;  %v3860_v61 = vmax.f32 %v2159_v45, %v2063_v49  ;;  %2993 = vmatmul.msk.f32.gmra.mxu3 %vm296_vm1, %v258_v37  ;;  %v1339_v37 = vadd.f32 %v3507_v35, %v3791_v41  ;;  %v1858_v44 = vmax.f32 %v1099_v10, 0.0  ;;  %v68_v45 = vld [vmem:[%s5206_s0 + $0x120] sm:$0xff] }
 0x11a   :  { %v200_v49 = vld [vmem:[%s5206_s0 + $0x540] sm:$0xff]  ;;  %v1531_v41 = vadd.f32 %v3507_v35, %v3804_v50  ;;  %v1102_v50 = vadd.f32 %v3507_v35, %v3482_v28 }
 0x11b   :  { %v2128_v42 = vmax.f32 %v2112_v48, %v1872_v6  ;;  %2935 = vmatmul.msk.f32.gmra.mxu2 %vm296_vm1, %v200_v49  ;;  %v202_v49 = vld [vmem:[%s5206_s0 + $0x550] sm:$0xff] }
 0x11c   :  { %v1716_v20 = vpop.f32.mrf.mxu3  ;;  %v1859_v56 = vmax.f32 %v1102_v50, 0.0 }
 0x11d   :  { %v2144_v2 = vmax.f32 %v2128_v42, %v1936_v53  ;;  %v1717_v3 = vadd.f32 %v3507_v35, %v1716_v20  ;;  %v2114_v53 = vmax.f32 %v1858_v44, %v2050_v46  ;;  %v3919_v32 = vpop.f32.mrf.mxu1 }
 0x11e   :  { %v1143_v14 = vpop.f32.mrf.mxu0 }
 0x11f   :  { %v1144_v0 = vadd.f32 %v3507_v35, %v1143_v14  ;;  %v2160_v18 = vmax.f32 %v2144_v2, %v2000_v1  ;;  %v2064_v22 = vmax.f32 %v1717_v3, 0.0  ;;  %v1938_v1 = vmax.f32 %v1339_v37, 0.0  ;;  %v3932_v2 = vpop.f32.mrf.mxu2 }
 0x120   :  { %v2002_v3 = vmax.f32 %v1531_v41, 0.0  ;;  %2871 = vmatmul.msk.f32.gmra.mxu1 %vm296_vm1, %v136_v63 }
 0x121   :  { %v1873_v29 = vmax.f32 %v1144_v0, 0.0  ;;  %2802 = vmatmul.msk.f32.gmra.mxu0 %vm296_vm1, %v67_v9  ;;  %v3892_v30 = vmax.f32 %v2160_v18, %v2064_v22  ;;  %2994 = vmatmul.msk.f32.gmra.mxu3 %vm296_vm1, %v259_v8  ;;  %v1342_v9 = vadd.f32 %v3507_v35, %v3825_v12  ;;  %v69_v0 = vld [vmem:[%s5206_s0 + $0x128] sm:$0xff]  ;;  %v1534_v12 = vadd.f32 %v3507_v35, %v3836_v26 }
 0x122   :  { %v261_v18 = vld [vmem:[%s5206_s0 + $0x728] sm:$0xff] }
 0x123   :  { %v2129_v27 = vmax.f32 %v2113_v13, %v1873_v29  ;;  %2936 = vmatmul.msk.f32.gmra.mxu2 %vm296_vm1, %v201_v4  ;;  %v1939_v31 = vmax.f32 %v1342_v9, 0.0  ;;  %v71_v9 = vld [vmem:[%s5206_s0 + $0x138] sm:$0xff] }
 0x124   :  { %v1719_v7 = vpop.f32.mrf.mxu3 }
 0x125   :  { %v2145_v36 = vmax.f32 %v2129_v27, %v1937_v59  ;;  %v1720_v43 = vadd.f32 %v3507_v35, %v1719_v7  ;;  %v3951_v29 = vpop.f32.mrf.mxu1  ;;  %v2115_v59 = vmax.f32 %v1859_v56, %v2051_v24  ;;  %v2003_v7 = vmax.f32 %v1534_v12, 0.0  ;;  %v139_v12 = vld [vmem:[%s5206_s0 + $0x358] sm:$0xff] }
 0x126   :  { %v1146_v21 = vpop.f32.mrf.mxu0 }
 0x127   :  { %v1147_v48 = vadd.f32 %v3507_v35, %v1146_v21  ;;  %v2161_v52 = vmax.f32 %v2145_v36, %v2001_v33  ;;  %v2065_v6 = vmax.f32 %v1720_v43, 0.0  ;;  %v137_v33 = vld [vmem:[%s5206_s0 + $0x348] sm:$0xff]  ;;  %v3960_v46 = vpop.f32.mrf.mxu2  ;;  %v1345_v43 = vadd.f32 %v3507_v35, %v3855_v51 }
 0x128   :  { %2872 = vmatmul.msk.f32.gmra.mxu1 %vm296_vm1, %v137_v33  ;;  %v1537_v51 = vadd.f32 %v3507_v35, %v3868_v19  ;;  %v1351_v33 = vadd.f32 %v3507_v35, %v3919_v32  ;;  %v1543_v32 = vadd.f32 %v3507_v35, %v3932_v2 }
 0x129   :  { %v1874_v42 = vmax.f32 %v1147_v48, 0.0  ;;  %2803 = vmatmul.msk.f32.gmra.mxu0 %vm296_vm1, %v68_v45  ;;  %v3924_v20 = vmax.f32 %v2161_v52, %v2065_v6  ;;  %2995 = vmatmul.msk.f32.gmra.mxu3 %vm296_vm1, %v260_v15  ;;  %v70_v45 = vld [vmem:[%s5206_s0 + $0x130] sm:$0xff]  ;;  %v1940_v62 = vmax.f32 %v1345_v43, 0.0 }
 0x12a   :  { %v262_v15 = vld [vmem:[%s5206_s0 + $0x730] sm:$0xff]  ;;  %v2004_v63 = vmax.f32 %v1537_v51, 0.0 }
 0x12b   :  { %v2130_v38 = vmax.f32 %v2114_v53, %v1874_v42  ;;  %2937 = vmatmul.msk.f32.gmra.mxu2 %vm296_vm1, %v202_v49  ;;  %v1942_v49 = vmax.f32 %v1351_v33, 0.0 }
 0x12c   :  { %v1722_v34 = vpop.f32.mrf.mxu3 }
 0x12d   :  { %v2146_v14 = vmax.f32 %v2130_v38, %v1938_v1  ;;  %v1723_v8 = vadd.f32 %v3507_v35, %v1722_v34  ;;  %v3979_v6 = vpop.f32.mrf.mxu1  ;;  %v138_v1 = vld [vmem:[%s5206_s0 + $0x350] sm:$0xff]  ;;  %v1348_v34 = vadd.f32 %v3507_v35, %v3889_v25  ;;  %v1540_v25 = vadd.f32 %v3507_v35, %v3900_v54 }
 0x12e   :  { %v1149_v28 = vpop.f32.mrf.mxu0 }
 0x12f   :  { %v1150_v22 = vadd.f32 %v3507_v35, %v1149_v28  ;;  %v2162_v11 = vmax.f32 %v2146_v14, %v2002_v3  ;;  %v2066_v13 = vmax.f32 %v1723_v8, 0.0  ;;  %v3988_v50 = vpop.f32.mrf.mxu2  ;;  %v263_v8 = vld [vmem:[%s5206_s0 + $0x738] sm:$0xff] }
 0x130   :  { %2873 = vmatmul.msk.f32.gmra.mxu1 %vm296_vm1, %v138_v1  ;;  %v1354_v1 = vadd.f32 %v3507_v35, %v3951_v29  ;;  %v1546_v29 = vadd.f32 %v3507_v35, %v3960_v46 }
 0x131   :  { %v1875_v10 = vmax.f32 %v1150_v22, 0.0  ;;  %2804 = vmatmul.msk.f32.gmra.mxu0 %vm296_vm1, %v69_v0  ;;  %v3954_v27 = vmax.f32 %v2162_v11, %v2066_v13  ;;  %2996 = vmatmul.msk.f32.gmra.mxu3 %vm296_vm1, %v261_v18  ;;  %v1941_v22 = vmax.f32 %v1348_v34, 0.0 }
 0x133   :  { %v2131_v26 = vmax.f32 %v2115_v59, %v1875_v10  ;;  %v2005_v59 = vmax.f32 %v1540_v25, 0.0 }
 0x134   :  { %v1725_v36 = vpop.f32.mrf.mxu3 }
 0x135   :  { %v2147_v37 = vmax.f32 %v2131_v26, %v1939_v31  ;;  %v1726_v44 = vadd.f32 %v3507_v35, %v1725_v36  ;;  %v4008_v18 = vpop.f32.mrf.mxu1  ;;  %v72_v36 = vld [vmem:[%s5206_s0 + $0x140] sm:$0xff] }
 0x136   :  { %v1152_v21 = vpop.f32.mrf.mxu0 }
 0x137   :  { %v1153_v48 = vadd.f32 %v3507_v35, %v1152_v21  ;;  %v2163_v52 = vmax.f32 %v2147_v37, %v2003_v7  ;;  %v2067_v41 = vmax.f32 %v1726_v44, 0.0  ;;  %v4017_v13 = vpop.f32.mrf.mxu2  ;;  %v264_v37 = vld [vmem:[%s5206_s0 + $0x740] sm:$0xff] }
 0x138   :  { %2874 = vmatmul.msk.f32.gmra.mxu1 %vm296_vm1, %v139_v12  ;;  %v1357_v12 = vadd.f32 %v3507_v35, %v3979_v6  ;;  %v1549_v6 = vadd.f32 %v3507_v35, %v3988_v50 }
 0x139   :  { %v1876_v53 = vmax.f32 %v1153_v48, 0.0  ;;  %2805 = vmatmul.msk.f32.gmra.mxu0 %vm296_vm1, %v70_v45  ;;  %v3982_v42 = vmax.f32 %v2163_v52, %v2067_v41  ;;  %2997 = vmatmul.msk.f32.gmra.mxu3 %vm296_vm1, %v262_v15  ;;  %v140_v52 = vld [vmem:[%s5206_s0 + $0x360] sm:$0xff]  ;;  %v2006_v41 = vmax.f32 %v1543_v32, 0.0 }
 0x13b   :  { %v2148_v19 = vmax.f32 %v3547_v58, %v1876_v53  ;;  %v203_v58 = vld [vmem:[%s5206_s0 + $0x558] sm:$0xff] }
 0x13c   :  { %v1728_v38 = vpop.f32.mrf.mxu3  ;;  %2938 = vmatmul.msk.f32.gmra.mxu2 %vm296_vm1, %v203_v58  ;;  %v1943_v58 = vmax.f32 %v1354_v1, 0.0 }
 0x13d   :  { %v2164_v3 = vmax.f32 %v2148_v19, %v1940_v62  ;;  %v1729_v24 = vadd.f32 %v3507_v35, %v1728_v38  ;;  %v4037_v45 = vpop.f32.mrf.mxu1  ;;  %v73_v38 = vld [vmem:[%s5206_s0 + $0x148] sm:$0xff] }
 0x13e   :  { %v1155_v14 = vpop.f32.mrf.mxu0 }
 0x13f   :  { %v1156_v56 = vadd.f32 %v3507_v35, %v1155_v14  ;;  %v2180_v28 = vmax.f32 %v2164_v3, %v2004_v63  ;;  %v2068_v0 = vmax.f32 %v1729_v24, 0.0  ;;  %v4046_v51 = vpop.f32.mrf.mxu2  ;;  %v265_v3 = vld [vmem:[%s5206_s0 + $0x748] sm:$0xff] }
 0x140   :  { %2875 = vmatmul.msk.f32.gmra.mxu1 %vm296_vm1, %v140_v52  ;;  %v1360_v52 = vadd.f32 %v3507_v35, %v4008_v18  ;;  %v4124_v18 = vld [vmem:[%s5208_s2] ss:$0 sm:$0xff] }
 0x141   :  { %v1877_v4 = vmax.f32 %v1156_v56, 0.0  ;;  %2806 = vmatmul.msk.f32.gmra.mxu0 %vm296_vm1, %v71_v9  ;;  %v4011_v11 = vmax.f32 %v2180_v28, %v2068_v0  ;;  %2998 = vmatmul.msk.f32.gmra.mxu3 %vm296_vm1, %v263_v8  ;;  %v141_v28 = vld [vmem:[%s5206_s0 + $0x368] sm:$0xff]  ;;  %v2007_v0 = vmax.f32 %v1546_v29, 0.0 }
 0x143   :  { %v2149_v54 = vmax.f32 %v3572_v17, %v1877_v4  ;;  %v204_v17 = vld [vmem:[%s5206_s0 + $0x560] sm:$0xff] }
 0x144   :  { %v1731_v10 = vpop.f32.mrf.mxu3  ;;  %2939 = vmatmul.msk.f32.gmra.mxu2 %vm296_vm1, %v204_v17  ;;  %v1944_v17 = vmax.f32 %v1357_v12, 0.0 }
 0x145   :  { %v2165_v31 = vmax.f32 %v2149_v54, %v1941_v22  ;;  %v1732_v26 = vadd.f32 %v3507_v35, %v1731_v10  ;;  %v4066_v9 = vpop.f32.mrf.mxu1  ;;  %v74_v10 = vld [vmem:[%s5206_s0 + $0x150] sm:$0xff] }
 0x146   :  { %v1158_v7 = vpop.f32.mrf.mxu0 }
 0x147   :  { %v1159_v43 = vadd.f32 %v3507_v35, %v1158_v7  ;;  %v2181_v44 = vmax.f32 %v2165_v31, %v2005_v59  ;;  %v2069_v21 = vmax.f32 %v1732_v26, 0.0  ;;  %v4075_v25 = vpop.f32.mrf.mxu2  ;;  %v266_v31 = vld [vmem:[%s5206_s0 + $0x750] sm:$0xff] }
 0x148   :  { %2876 = vmatmul.msk.f32.gmra.mxu1 %vm296_vm1, %v141_v28  ;;  %v1363_v28 = vadd.f32 %v4124_v18, %v4037_v45  ;;  %v1555_v45 = vadd.f32 %v4124_v18, %v4046_v51 }
 0x149   :  { %v1878_v15 = vmax.f32 %v1159_v43, 0.0  ;;  %2807 = vmatmul.msk.f32.gmra.mxu0 %vm296_vm1, %v72_v36  ;;  %v4040_v48 = vmax.f32 %v2181_v44, %v2069_v21  ;;  %2999 = vmatmul.msk.f32.gmra.mxu3 %vm296_vm1, %v264_v37  ;;  %v142_v44 = vld [vmem:[%s5206_s0 + $0x370] sm:$0xff]  ;;  %v2008_v21 = vmax.f32 %v1549_v6, 0.0 }
 0x14b   :  { %v2150_v2 = vmax.f32 %v3598_v40, %v1878_v15  ;;  %v205_v40 = vld [vmem:[%s5206_s0 + $0x568] sm:$0xff] }
 0x14c   :  { %v1734_v53 = vpop.f32.mrf.mxu3  ;;  %2940 = vmatmul.msk.f32.gmra.mxu2 %vm296_vm1, %v205_v40 }
 0x14d   :  { %v2166_v62 = vmax.f32 %v2150_v2, %v1942_v49  ;;  %v1735_v19 = vadd.f32 %v3507_v35, %v1734_v53  ;;  %v4095_v36 = vpop.f32.mrf.mxu1  ;;  %v75_v53 = vld [vmem:[%s5206_s0 + $0x158] sm:$0xff] }
 0x14e   :  { %v1161_v63 = vpop.f32.mrf.mxu0 }
 0x14f   :  { %v1162_v34 = vadd.f32 %v3507_v35, %v1161_v63  ;;  %v2182_v24 = vmax.f32 %v2166_v62, %v2006_v41  ;;  %v2070_v14 = vmax.f32 %v1735_v19, 0.0  ;;  %v4104_v32 = vpop.f32.mrf.mxu2  ;;  %v267_v62 = vld [vmem:[%s5206_s0 + $0x758] sm:$0xff]  ;;  %v1552_v63 = vadd.f32 %v4124_v18, %v4017_v13 }
 0x150   :  { %2877 = vmatmul.msk.f32.gmra.mxu1 %vm296_vm1, %v142_v44  ;;  %v1366_v44 = vadd.f32 %v4124_v18, %v4066_v9  ;;  %v1558_v9 = vadd.f32 %v4124_v18, %v4075_v25 }
 0x151   :  { %v1879_v8 = vmax.f32 %v1162_v34, 0.0  ;;  %2808 = vmatmul.msk.f32.gmra.mxu0 %vm296_vm1, %v73_v38  ;;  %v4069_v56 = vmax.f32 %v2182_v24, %v2070_v14  ;;  %3000 = vmatmul.msk.f32.gmra.mxu3 %vm296_vm1, %v265_v3  ;;  %v1945_v34 = vmax.f32 %v1360_v52, 0.0  ;;  %v2009_v14 = vmax.f32 %v1552_v63, 0.0 }
 0x153   :  { %v2151_v46 = vmax.f32 %v3624_v60, %v1879_v8  ;;  %v206_v60 = vld [vmem:[%s5206_s0 + $0x570] sm:$0xff] }
 0x154   :  { %v1737_v4 = vpop.f32.mrf.mxu3  ;;  %2941 = vmatmul.msk.f32.gmra.mxu2 %vm296_vm1, %v206_v60  ;;  %v1946_v60 = vmax.f32 %v1363_v28, 0.0 }
 0x155   :  { %v2167_v22 = vmax.f32 %v2151_v46, %v1943_v58  ;;  %v1738_v54 = vadd.f32 %v3507_v35, %v1737_v4  ;;  %v4129_v3 = vpop.f32.mrf.mxu1  ;;  %v76_v4 = vld [vmem:[%s5206_s0 + $0x160] sm:$0xff] }
 0x156   :  { %v1164_v59 = vpop.f32.mrf.mxu0 }
 0x157   :  { %v1165_v33 = vadd.f32 %v3507_v35, %v1164_v59  ;;  %v2183_v26 = vmax.f32 %v2167_v22, %v2007_v0  ;;  %v2071_v7 = vmax.f32 %v1738_v54, 0.0  ;;  %v4138_v29 = vpop.f32.mrf.mxu2  ;;  %v268_v22 = vld [vmem:[%s5206_s0 + $0x760] sm:$0xff] }
 0x159   :  { %v1880_v37 = vmax.f32 %v1165_v33, 0.0  ;;  %2809 = vmatmul.msk.f32.gmra.mxu0 %vm296_vm1, %v74_v10  ;;  %v4098_v43 = vmax.f32 %v2183_v26, %v2071_v7  ;;  %3001 = vmatmul.msk.f32.gmra.mxu3 %vm296_vm1, %v266_v31  ;;  %v144_v26 = vld [vmem:[%s5206_s0 + $0x380] sm:$0xff]  ;;  %v2010_v7 = vmax.f32 %v1555_v45, 0.0 }
 0x15b   :  { %v2152_v50 = vmax.f32 %v3650_v57, %v1880_v37  ;;  %v207_v57 = vld [vmem:[%s5206_s0 + $0x578] sm:$0xff] }
 0x15c   :  { %v1740_v15 = vpop.f32.mrf.mxu3  ;;  %2942 = vmatmul.msk.f32.gmra.mxu2 %vm296_vm1, %v207_v57  ;;  %v1947_v57 = vmax.f32 %v1366_v44, 0.0 }
 0x15d   :  { %v2168_v49 = vmax.f32 %v2152_v50, %v1944_v17  ;;  %v1741_v2 = vadd.f32 %v3507_v35, %v1740_v15  ;;  %v4158_v10 = vpop.f32.mrf.mxu1  ;;  %v77_v15 = vld [vmem:[%s5206_s0 + $0x168] sm:$0xff] }
 0x15e   :  { %v1167_v41 = vpop.f32.mrf.mxu0 }
 0x15f   :  { %v1168_v1 = vadd.f32 %v3507_v35, %v1167_v41  ;;  %v2184_v19 = vmax.f32 %v2168_v49, %v2008_v21  ;;  %v2072_v38 = vmax.f32 %v1741_v2, 0.0  ;;  %v143_v35 = vld [vmem:[%s5206_s0 + $0x378] sm:$0xff]  ;;  %v4167_v6 = vpop.f32.mrf.mxu2  ;;  %v269_v49 = vld [vmem:[%s5206_s0 + $0x768] sm:$0xff] }
 0x160   :  { %2878 = vmatmul.msk.f32.gmra.mxu1 %vm296_vm1, %v143_v35  ;;  %v1369_v35 = vadd.f32 %v4124_v18, %v4095_v36  ;;  %v1561_v36 = vadd.f32 %v4124_v18, %v4104_v32 }
 0x161   :  { %v1881_v40 = vmax.f32 %v1168_v1, 0.0  ;;  %2810 = vmatmul.msk.f32.gmra.mxu0 %vm296_vm1, %v75_v53  ;;  %v4132_v24 = vmax.f32 %v2184_v19, %v2072_v38  ;;  %3002 = vmatmul.msk.f32.gmra.mxu3 %vm296_vm1, %v267_v62  ;;  %v145_v19 = vld [vmem:[%s5206_s0 + $0x388] sm:$0xff]  ;;  %v2011_v38 = vmax.f32 %v1558_v9, 0.0 }
 0x163   :  { %v2169_v13 = vmax.f32 %v3678_v16, %v1881_v40  ;;  %v208_v16 = vld [vmem:[%s5206_s0 + $0x580] sm:$0xff] }
 0x164   :  { %v1743_v8 = vpop.f32.mrf.mxu3  ;;  %2943 = vmatmul.msk.f32.gmra.mxu2 %vm296_vm1, %v208_v16  ;;  %v1948_v16 = vmax.f32 %v1369_v35, 0.0 }
 0x165   :  { %v2185_v58 = vmax.f32 %v2169_v13, %v1945_v34  ;;  %v1744_v46 = vadd.f32 %v4124_v18, %v1743_v8  ;;  %v4187_v53 = vpop.f32.mrf.mxu1  ;;  %v78_v8 = vld [vmem:[%s5206_s0 + $0x170] sm:$0xff] }
 0x166   :  { %v1170_v0 = vpop.f32.mrf.mxu0 }
 0x167   :  { %v1171_v12 = vadd.f32 %v4124_v18, %v1170_v0  ;;  %v2201_v54 = vmax.f32 %v2185_v58, %v2009_v14  ;;  %v2073_v59 = vmax.f32 %v1744_v46, 0.0  ;;  %v4196_v63 = vpop.f32.mrf.mxu2  ;;  %v270_v58 = vld [vmem:[%s5206_s0 + $0x770] sm:$0xff] }
 0x168   :  { %2879 = vmatmul.msk.f32.gmra.mxu1 %vm296_vm1, %v144_v26  ;;  %v1372_v26 = vadd.f32 %v4124_v18, %v4129_v3  ;;  %v1564_v3 = vadd.f32 %v4124_v18, %v4138_v29 }
 0x169   :  { %v1882_v31 = vmax.f32 %v1171_v12, 0.0  ;;  %2811 = vmatmul.msk.f32.gmra.mxu0 %vm296_vm1, %v76_v4  ;;  %v4161_v33 = vmax.f32 %v2201_v54, %v2073_v59  ;;  %3003 = vmatmul.msk.f32.gmra.mxu3 %vm296_vm1, %v268_v22  ;;  %v146_v54 = vld [vmem:[%s5206_s0 + $0x390] sm:$0xff]  ;;  %v2012_v59 = vmax.f32 %v1561_v36, 0.0 }
 0x16a   :  { %v2013_v29 = vmax.f32 %v1564_v3, 0.0 }
 0x16b   :  { %v2170_v51 = vmax.f32 %v3706_v39, %v1882_v31  ;;  %v209_v39 = vld [vmem:[%s5206_s0 + $0x588] sm:$0xff] }
 0x16c   :  { %v1746_v37 = vpop.f32.mrf.mxu3  ;;  %2944 = vmatmul.msk.f32.gmra.mxu2 %vm296_vm1, %v209_v39  ;;  %v1949_v39 = vmax.f32 %v1372_v26, 0.0 }
 0x16d   :  { %v2186_v17 = vmax.f32 %v2170_v51, %v1946_v60  ;;  %v1747_v50 = vadd.f32 %v4124_v18, %v1746_v37  ;;  %v4216_v4 = vpop.f32.mrf.mxu1  ;;  %v79_v37 = vld [vmem:[%s5206_s0 + $0x178] sm:$0xff] }
 0x16e   :  { %v1173_v21 = vpop.f32.mrf.mxu0 }
 0x16f   :  { %v1174_v52 = vadd.f32 %v4124_v18, %v1173_v21  ;;  %v2202_v2 = vmax.f32 %v2186_v17, %v2010_v7  ;;  %v2074_v41 = vmax.f32 %v1747_v50, 0.0  ;;  %v4225_v45 = vpop.f32.mrf.mxu2  ;;  %v271_v17 = vld [vmem:[%s5206_s0 + $0x778] sm:$0xff] }
 0x170   :  { %2880 = vmatmul.msk.f32.gmra.mxu1 %vm296_vm1, %v145_v19  ;;  %v1375_v19 = vadd.f32 %v4124_v18, %v4158_v10  ;;  %v1567_v10 = vadd.f32 %v4124_v18, %v4167_v6 }
 0x171   :  { %v1883_v62 = vmax.f32 %v1174_v52, 0.0  ;;  %2812 = vmatmul.msk.f32.gmra.mxu0 %vm296_vm1, %v77_v15  ;;  %v4190_v1 = vmax.f32 %v2202_v2, %v2074_v41  ;;  %3004 = vmatmul.msk.f32.gmra.mxu3 %vm296_vm1, %v269_v49  ;;  %v147_v2 = vld [vmem:[%s5206_s0 + $0x398] sm:$0xff] }
 0x172   :  { %v2014_v6 = vmax.f32 %v1567_v10, 0.0 }
 0x173   :  { %v2171_v25 = vmax.f32 %v3734_v55, %v1883_v62  ;;  %v210_v55 = vld [vmem:[%s5206_s0 + $0x590] sm:$0xff] }
 0x174   :  { %v1749_v40 = vpop.f32.mrf.mxu3  ;;  %2945 = vmatmul.msk.f32.gmra.mxu2 %vm296_vm1, %v210_v55  ;;  %v1950_v55 = vmax.f32 %v1375_v19, 0.0 }
 0x175   :  { %v2187_v34 = vmax.f32 %v2171_v25, %v1947_v57  ;;  %v1750_v13 = vadd.f32 %v4124_v18, %v1749_v40  ;;  %v4245_v15 = vpop.f32.mrf.mxu1  ;;  %v80_v40 = vld [vmem:[%s5206_s0 + $0x180] sm:$0xff] }
 0x176   :  { %v1176_v14 = vpop.f32.mrf.mxu0 }
 0x177   :  { %v1177_v28 = vadd.f32 %v4124_v18, %v1176_v14  ;;  %v2203_v46 = vmax.f32 %v2187_v34, %v2011_v38  ;;  %v2075_v0 = vmax.f32 %v1750_v13, 0.0  ;;  %v4256_v62 = vpop.f32.mrf.mxu2  ;;  %v212_v34 = vld [vmem:[%s5206_s0 + $0x5a0] sm:$0xff] }
 0x178   :  { %2881 = vmatmul.msk.f32.gmra.mxu1 %vm296_vm1, %v146_v54 }
 0x179   :  { %v1884_v22 = vmax.f32 %v1177_v28, 0.0  ;;  %2813 = vmatmul.msk.f32.gmra.mxu0 %vm296_vm1, %v78_v8  ;;  %v4219_v12 = vmax.f32 %v2203_v46, %v2075_v0  ;;  %3005 = vmatmul.msk.f32.gmra.mxu3 %vm296_vm1, %v270_v58  ;;  %v148_v46 = vld [vmem:[%s5206_s0 + $0x3a0] sm:$0xff] }
 0x17b   :  { %v2172_v32 = vmax.f32 %v3764_v5, %v1884_v22  ;;  %v211_v5 = vld [vmem:[%s5206_s0 + $0x598] sm:$0xff] }
 0x17c   :  { %v1752_v31 = vpop.f32.mrf.mxu3  ;;  %2946 = vmatmul.msk.f32.gmra.mxu2 %vm296_vm1, %v211_v5 }
 0x17d   :  { %v2188_v60 = vmax.f32 %v2172_v32, %v1948_v16  ;;  %v1753_v51 = vadd.f32 %v4124_v18, %v1752_v31  ;;  %v4274_v8 = vpop.f32.mrf.mxu1  ;;  %v1378_v16 = vadd.f32 %v4124_v18, %v4187_v53  ;;  %v273_v31 = vld [vmem:[%s5206_s0 + $0x788] sm:$0xff] }
 0x17e   :  { %v1179_v7 = vpop.f32.mrf.mxu0 }
 0x17f   :  { %v1180_v44 = vadd.f32 %v4124_v18, %v1179_v7  ;;  %v2204_v50 = vmax.f32 %v2188_v60, %v2012_v59  ;;  %v2076_v21 = vmax.f32 %v1753_v51, 0.0  ;;  %v81_v59 = vld [vmem:[%s5206_s0 + $0x188] sm:$0xff]  ;;  %v1570_v51 = vadd.f32 %v4124_v18, %v4196_v63 }
 0x180   :  { %2882 = vmatmul.msk.f32.gmra.mxu1 %vm296_vm1, %v147_v2  ;;  %v213_v60 = vld [vmem:[%s5206_s0 + $0x5a8] sm:$0xff]  ;;  %v1951_v5 = vmax.f32 %v1378_v16, 0.0 }
 0x181   :  { %v1885_v49 = vmax.f32 %v1180_v44, 0.0  ;;  %2814 = vmatmul.msk.f32.gmra.mxu0 %vm296_vm1, %v79_v37  ;;  %v4248_v52 = vmax.f32 %v2204_v50, %v2076_v21  ;;  %3006 = vmatmul.msk.f32.gmra.mxu3 %vm296_vm1, %v271_v17  ;;  %v149_v50 = vld [vmem:[%s5206_s0 + $0x3a8] sm:$0xff]  ;;  %v2015_v63 = vmax.f32 %v1570_v51, 0.0 }
 0x183   :  { %v2173_v9 = vmax.f32 %v3796_v47, %v1885_v49  ;;  %v272_v47 = vld [vmem:[%s5206_s0 + $0x780] sm:$0xff] }
 0x184   :  { %v1755_v41 = vpop.f32.mrf.mxu3  ;;  %2947 = vmatmul.msk.f32.gmra.mxu2 %vm296_vm1, %v212_v34 }
 0x185   :  { %v2189_v57 = vmax.f32 %v2173_v9, %v1949_v39  ;;  %v1756_v25 = vadd.f32 %v4124_v18, %v1755_v41  ;;  %v4303_v37 = vpop.f32.mrf.mxu1  ;;  %v1381_v39 = vadd.f32 %v4124_v18, %v4216_v4  ;;  %v274_v41 = vld [vmem:[%s5206_s0 + $0x790] sm:$0xff]  ;;  %v1573_v4 = vadd.f32 %v4124_v18, %v4225_v45 }
 0x186   :  { %v1182_v38 = vpop.f32.mrf.mxu0 }
 0x187   :  { %v1183_v35 = vadd.f32 %v4124_v18, %v1182_v38  ;;  %v2205_v13 = vmax.f32 %v2189_v57, %v2013_v29  ;;  %v2077_v14 = vmax.f32 %v1756_v25, 0.0  ;;  %v82_v29 = vld [vmem:[%s5206_s0 + $0x190] sm:$0xff]  ;;  %v1952_v34 = vmax.f32 %v1381_v39, 0.0 }
 0x188   :  { %2883 = vmatmul.msk.f32.gmra.mxu1 %vm296_vm1, %v148_v46  ;;  %v2016_v10 = vmax.f32 %v1573_v4, 0.0 }
 0x189   :  { %v1886_v58 = vmax.f32 %v1183_v35, 0.0  ;;  %2815 = vmatmul.msk.f32.gmra.mxu0 %vm296_vm1, %v80_v40  ;;  %v4277_v28 = vmax.f32 %v2205_v13, %v2077_v14  ;;  %3007 = vmatmul.msk.f32.gmra.mxu3 %vm296_vm1, %v272_v47  ;;  %v150_v13 = vld [vmem:[%s5206_s0 + $0x3b0] sm:$0xff] }
 0x18b   :  { %v2190_v36 = vmax.f32 %v3828_v23, %v1886_v58  ;;  %v4294_v23 = vpop.f32.mrf.mxu2 }
 0x18c   :  { %v1758_v0 = vpop.f32.mrf.mxu3  ;;  %2948 = vmatmul.msk.f32.gmra.mxu2 %vm296_vm1, %v213_v60 }
 0x18d   :  { %v2206_v22 = vmax.f32 %v2190_v36, %v1950_v55  ;;  %v1759_v54 = vadd.f32 %v4124_v18, %v1758_v0  ;;  %v4330_v38 = vpop.f32.mrf.mxu1  ;;  %v1384_v55 = vadd.f32 %v4124_v18, %v4245_v15  ;;  %v275_v0 = vld [vmem:[%s5206_s0 + $0x798] sm:$0xff]  ;;  %v1576_v15 = vadd.f32 %v4124_v18, %v4256_v62 }
 0x18e   :  { %v1185_v32 = vpop.f32.mrf.mxu0 }
 0x18f   :  { %v1186_v26 = vadd.f32 %v4124_v18, %v1185_v32  ;;  %v2222_v53 = vmax.f32 %v2206_v22, %v2014_v6  ;;  %v2078_v7 = vmax.f32 %v1759_v54, 0.0  ;;  %v83_v6 = vld [vmem:[%s5206_s0 + $0x198] sm:$0xff]  ;;  %v2017_v51 = vmax.f32 %v1576_v15, 0.0 }
 0x190   :  { %2884 = vmatmul.msk.f32.gmra.mxu1 %vm296_vm1, %v149_v50 }
 0x191   :  { %v1887_v17 = vmax.f32 %v1186_v26, 0.0  ;;  %2816 = vmatmul.msk.f32.gmra.mxu0 %vm296_vm1, %v81_v59  ;;  %v4306_v44 = vmax.f32 %v2222_v53, %v2078_v7  ;;  %3008 = vmatmul.msk.f32.gmra.mxu3 %vm296_vm1, %v273_v31  ;;  %v1953_v31 = vmax.f32 %v1384_v55, 0.0  ;;  %v151_v53 = vld [vmem:[%s5206_s0 + $0x3b8] sm:$0xff] }
 0x193   :  { %v2191_v3 = vmax.f32 %v3860_v61, %v1887_v17  ;;  %v214_v61 = vld [vmem:[%s5206_s0 + $0x5b0] sm:$0xff]  ;;  %v4332_v40 = vpop.f32.mrf.mxu2 }
 0x194   :  { %v1761_v21 = vpop.f32.mrf.mxu3  ;;  %2949 = vmatmul.msk.f32.gmra.mxu2 %vm296_vm1, %v214_v61 }
 0x195   :  { %v2207_v49 = vmax.f32 %v2191_v3, %v1951_v5  ;;  %v1762_v2 = vadd.f32 %v4124_v18, %v1761_v21  ;;  %v4359_v32 = vpop.f32.mrf.mxu1  ;;  %v1387_v5 = vadd.f32 %v4124_v18, %v4274_v8  ;;  %v276_v21 = vld [vmem:[%s5206_s0 + $0x7a0] sm:$0xff]  ;;  %v1579_v8 = vadd.f32 %v4124_v18, %v4294_v23 }
 0x196   :  { %v1188_v9 = vpop.f32.mrf.mxu0 }
 0x197   :  { %v1189_v57 = vadd.f32 %v4124_v18, %v1188_v9  ;;  %v2223_v19 = vmax.f32 %v2207_v49, %v2015_v63  ;;  %v2079_v25 = vmax.f32 %v1762_v2, 0.0  ;;  %v84_v63 = vld [vmem:[%s5206_s0 + $0x1a0] sm:$0xff]  ;;  %v2018_v23 = vmax.f32 %v1579_v8, 0.0 }
 0x198   :  { %2885 = vmatmul.msk.f32.gmra.mxu1 %vm296_vm1, %v150_v13 }
 0x199   :  { %v1888_v47 = vmax.f32 %v1189_v57, 0.0  ;;  %2817 = vmatmul.msk.f32.gmra.mxu0 %vm296_vm1, %v82_v29  ;;  %v4335_v35 = vmax.f32 %v2223_v19, %v2079_v25  ;;  %3009 = vmatmul.msk.f32.gmra.mxu3 %vm296_vm1, %v274_v41  ;;  %v1954_v41 = vmax.f32 %v1387_v5, 0.0  ;;  %v152_v57 = vld [vmem:[%s5206_s0 + $0x3c0] sm:$0xff] }
 0x19b   :  { %v2192_v45 = vmax.f32 %v3892_v30, %v1888_v47  ;;  %v215_v30 = vld [vmem:[%s5206_s0 + $0x5b8] sm:$0xff]  ;;  %v4365_v26 = vpop.f32.mrf.mxu2 }
 0x19c   :  { %v1764_v14 = vpop.f32.mrf.mxu3  ;;  %2950 = vmatmul.msk.f32.gmra.mxu2 %vm296_vm1, %v215_v30  ;;  %v1585_v5 = vadd.f32 %v4124_v18, %v4365_v26 }
 0x19d   :  { %v2208_v58 = vmax.f32 %v2192_v45, %v1952_v34  ;;  %v1765_v46 = vadd.f32 %v4124_v18, %v1764_v14  ;;  %v4388_v9 = vpop.f32.mrf.mxu1  ;;  %v1390_v34 = vadd.f32 %v4124_v18, %v4303_v37  ;;  %v217_v14 = vld [vmem:[%s5206_s0 + $0x5c8] sm:$0xff]  ;;  %v1582_v37 = vadd.f32 %v4124_v18, %v4332_v40 }
 0x19e   :  { %v1191_v36 = vpop.f32.mrf.mxu0  ;;  %v2020_v26 = vmax.f32 %v1585_v5, 0.0 }
 0x19f   :  { %v1192_v22 = vadd.f32 %v4124_v18, %v1191_v36  ;;  %v2224_v16 = vmax.f32 %v2208_v58, %v2016_v10  ;;  %v2080_v54 = vmax.f32 %v1765_v46, 0.0  ;;  %v85_v10 = vld [vmem:[%s5206_s0 + $0x1a8] sm:$0xff]  ;;  %v2019_v40 = vmax.f32 %v1582_v37, 0.0 }
 0x1a0   :  { %2886 = vmatmul.msk.f32.gmra.mxu1 %vm296_vm1, %v151_v53 }
 0x1a1   :  { %v1889_v59 = vmax.f32 %v1192_v22, 0.0  ;;  %2818 = vmatmul.msk.f32.gmra.mxu0 %vm296_vm1, %v83_v6  ;;  %v4362_v60 = vmax.f32 %v2224_v16, %v2080_v54  ;;  %3010 = vmatmul.msk.f32.gmra.mxu3 %vm296_vm1, %v275_v0  ;;  %v1955_v0 = vmax.f32 %v1390_v34, 0.0  ;;  %v153_v22 = vld [vmem:[%s5206_s0 + $0x3c8] sm:$0xff] }
 0x1a3   :  { %v2193_v62 = vmax.f32 %v3924_v20, %v1889_v59  ;;  %v216_v20 = vld [vmem:[%s5206_s0 + $0x5c0] sm:$0xff]  ;;  %v1587_v25 = vpop.f32.mrf.mxu2  ;;  %v1393_v59 = vadd.f32 %v4124_v18, %v4330_v38 }
 0x1a4   :  { %v1767_v7 = vpop.f32.mrf.mxu3  ;;  %2951 = vmatmul.msk.f32.gmra.mxu2 %vm296_vm1, %v216_v20 }
 0x1a5   :  { %v2209_v17 = vmax.f32 %v2193_v62, %v1953_v31  ;;  %v1768_v50 = vadd.f32 %v4124_v18, %v1767_v7  ;;  %v4415_v36 = vpop.f32.mrf.mxu1  ;;  %v86_v62 = vld [vmem:[%s5206_s0 + $0x1b0] sm:$0xff] }
 0x1a6   :  { %v1194_v3 = vpop.f32.mrf.mxu0  ;;  %v218_v7 = vld [vmem:[%s5206_s0 + $0x5d0] sm:$0xff] }
 0x1a7   :  { %v1195_v49 = vadd.f32 %v4124_v18, %v1194_v3  ;;  %v2225_v39 = vmax.f32 %v2209_v17, %v2017_v51  ;;  %v2081_v2 = vmax.f32 %v1768_v50, 0.0  ;;  %v278_v51 = vld [vmem:[%s5206_s0 + $0x7b0] sm:$0xff] }
 0x1a8   :  { %2887 = vmatmul.msk.f32.gmra.mxu1 %vm296_vm1, %v152_v57 }
 0x1a9   :  { %v1890_v29 = vmax.f32 %v1195_v49, 0.0  ;;  %2819 = vmatmul.msk.f32.gmra.mxu0 %vm296_vm1, %v84_v63  ;;  %v4391_v61 = vmax.f32 %v2225_v39, %v2081_v2  ;;  %3011 = vmatmul.msk.f32.gmra.mxu3 %vm296_vm1, %v276_v21  ;;  %v1956_v21 = vmax.f32 %v1393_v59, 0.0  ;;  %v154_v49 = vld [vmem:[%s5206_s0 + $0x3d0] sm:$0xff] }
 0x1ab   :  { %v2194_v19 = vmax.f32 %v3954_v27, %v1890_v29  ;;  %v277_v27 = vld [vmem:[%s5206_s0 + $0x7a8] sm:$0xff]  ;;  %v1396_v29 = vadd.f32 %v4124_v18, %v4359_v32  ;;  %v1588_v32 = vadd.f32 %v4124_v18, %v1587_v25 }
 0x1ac   :  { %v1770_v4 = vpop.f32.mrf.mxu3  ;;  %2952 = vmatmul.msk.f32.gmra.mxu2 %vm296_vm1, %v217_v14 }
 0x1ad   :  { %v2210_v47 = vmax.f32 %v2194_v19, %v1954_v41  ;;  %v1771_v13 = vadd.f32 %v4124_v18, %v1770_v4  ;;  %v4444_v3 = vpop.f32.mrf.mxu1  ;;  %v87_v19 = vld [vmem:[%s5206_s0 + $0x1b8] sm:$0xff] }
 0x1ae   :  { %v1197_v45 = vpop.f32.mrf.mxu0 }
 0x1af   :  { %v1198_v58 = vadd.f32 %v4124_v18, %v1197_v45  ;;  %v2226_v55 = vmax.f32 %v2210_v47, %v2018_v23  ;;  %v2082_v46 = vmax.f32 %v1771_v13, 0.0  ;;  %v279_v23 = vld [vmem:[%s5206_s0 + $0x7b8] sm:$0xff] }
 0x1b0   :  { %2888 = vmatmul.msk.f32.gmra.mxu1 %vm296_vm1, %v153_v22  ;;  %v88_v22 = vld [vmem:[%s5206_s0 + $0x1c0] sm:$0xff] }
 0x1b1   :  { %v1891_v6 = vmax.f32 %v1198_v58, 0.0  ;;  %2820 = vmatmul.msk.f32.gmra.mxu0 %vm296_vm1, %v85_v10  ;;  %v4418_v30 = vmax.f32 %v2226_v55, %v2082_v46  ;;  %3012 = vmatmul.msk.f32.gmra.mxu3 %vm296_vm1, %v277_v27  ;;  %v1957_v27 = vmax.f32 %v1396_v29, 0.0  ;;  %v155_v58 = vld [vmem:[%s5206_s0 + $0x3d8] sm:$0xff]  ;;  %v2021_v55 = vmax.f32 %v1588_v32, 0.0  ;;  %v158_v29 = vld [vmem:[%s5206_s0 + $0x3f0] sm:$0xff] }
 0x1b2   :  { %v159_v32 = vld [vmem:[%s5206_s0 + $0x3f8] sm:$0xff] }
 0x1b3   :  { %v2195_v16 = vmax.f32 %v3982_v42, %v1891_v6  ;;  %v4435_v42 = vpop.f32.mrf.mxu2 }
 0x1b4   :  { %v1773_v15 = vpop.f32.mrf.mxu3  ;;  %2953 = vmatmul.msk.f32.gmra.mxu2 %vm296_vm1, %v218_v7  ;;  %v89_v7 = vld [vmem:[%s5206_s0 + $0x1c8] sm:$0xff] }
 0x1b5   :  { %v2211_v54 = vmax.f32 %v2195_v16, %v1955_v0  ;;  %v1774_v31 = vadd.f32 %v4124_v18, %v1773_v15  ;;  %v4472_v45 = vpop.f32.mrf.mxu1  ;;  %v280_v16 = vld [vmem:[%s5206_s0 + $0x7c0] sm:$0xff] }
 0x1b6   :  { %v1200_v53 = vpop.f32.mrf.mxu0 }
 0x1b7   :  { %v1201_v17 = vadd.f32 %v4124_v18, %v1200_v53  ;;  %v2227_v38 = vmax.f32 %v2211_v54, %v2019_v40  ;;  %v2083_v50 = vmax.f32 %v1774_v31, 0.0  ;;  %v156_v53 = vld [vmem:[%s5206_s0 + $0x3e0] sm:$0xff] }
 0x1b8   :  { %2889 = vmatmul.msk.f32.gmra.mxu1 %vm296_vm1, %v154_v49 }
 0x1b9   :  { %v1892_v63 = vmax.f32 %v1201_v17, 0.0  ;;  %2821 = vmatmul.msk.f32.gmra.mxu0 %vm296_vm1, %v86_v62  ;;  %v4447_v20 = vmax.f32 %v2227_v38, %v2083_v50  ;;  %3013 = vmatmul.msk.f32.gmra.mxu3 %vm296_vm1, %v278_v51  ;;  %v281_v17 = vld [vmem:[%s5206_s0 + $0x7c8] sm:$0xff] }
 0x1ba   :  { %v221_v38 = vld [vmem:[%s5206_s0 + $0x5e8] sm:$0xff] }
 0x1bb   :  { %v2212_v39 = vmax.f32 %v4011_v11, %v1892_v63  ;;  %v219_v11 = vld [vmem:[%s5206_s0 + $0x5d8] sm:$0xff]  ;;  %v4470_v13 = vpop.f32.mrf.mxu2  ;;  %v157_v50 = vld [vmem:[%s5206_s0 + $0x3e8] sm:$0xff] }
 0x1bc   :  { %v1776_v8 = vpop.f32.mrf.mxu3  ;;  %2954 = vmatmul.msk.f32.gmra.mxu2 %vm296_vm1, %v219_v11 }
 0x1bd   :  { %v2228_v2 = vmax.f32 %v2212_v39, %v1956_v21  ;;  %v1777_v41 = vadd.f32 %v4124_v18, %v1776_v8  ;;  %v1410_v54 = vpop.f32.mrf.mxu1  ;;  %v90_v39 = vld [vmem:[%s5206_s0 + $0x1d0] sm:$0xff] }
 0x1be   :  { %v1203_v57 = vpop.f32.mrf.mxu0  ;;  %v222_v8 = vld [vmem:[%s5206_s0 + $0x5f0] sm:$0xff] }
 0x1bf   :  { %v1204_v4 = vadd.f32 %v4124_v18, %v1203_v57  ;;  %v2244_v47 = vmax.f32 %v2228_v2, %v2020_v26  ;;  %v2084_v34 = vmax.f32 %v1777_v41, 0.0  ;;  %v282_v26 = vld [vmem:[%s5206_s0 + $0x7d0] sm:$0xff] }
 0x1c0   :  { %2890 = vmatmul.msk.f32.gmra.mxu1 %vm296_vm1, %v155_v58  ;;  %v92_v58 = vld [vmem:[%s5206_s0 + $0x1e0] sm:$0xff] }
 0x1c1   :  { %v1893_v10 = vmax.f32 %v1204_v4, 0.0  ;;  %2822 = vmatmul.msk.f32.gmra.mxu0 %vm296_vm1, %v87_v19  ;;  %v4475_v14 = vmax.f32 %v2244_v47, %v2084_v34  ;;  %3014 = vmatmul.msk.f32.gmra.mxu3 %vm296_vm1, %v279_v23  ;;  %v91_v19 = vld [vmem:[%s5206_s0 + $0x1d8] sm:$0xff] }
 0x1c2   :  { %v283_v23 = vld [vmem:[%s5206_s0 + $0x7d8] sm:$0xff] }
 0x1c3   :  { %v2213_v25 = vmax.f32 %v4040_v48, %v1893_v10  ;;  %v220_v48 = vld [vmem:[%s5206_s0 + $0x5e0] sm:$0xff]  ;;  %v4500_v31 = vpop.f32.mrf.mxu2  ;;  %v223_v4 = vld [vmem:[%s5206_s0 + $0x5f8] sm:$0xff]  ;;  %v1411_v10 = vadd.f32 %v4124_v18, %v1410_v54 }
 0x1c4   :  { %v1779_v37 = vpop.f32.mrf.mxu3  ;;  %2955 = vmatmul.msk.f32.gmra.mxu2 %vm296_vm1, %v220_v48  ;;  %v160_v48 = vld [vmem:[%s5206_s0 + $0x400] sm:$0xff] }
 0x1c5   :  { %v2229_v46 = vmax.f32 %v2213_v25, %v1957_v27  ;;  %v1780_v6 = vadd.f32 %v4124_v18, %v1779_v37  ;;  %v1413_v5 = vpop.f32.mrf.mxu1  ;;  %v284_v25 = vld [vmem:[%s5206_s0 + $0x7e0] sm:$0xff] }
 0x1c6   :  { %v4484_v0 = vpop.f32.mrf.mxu0 }
 0x1c7   :  { %v2245_v40 = vmax.f32 %v2229_v46, %v2021_v55  ;;  %v2085_v15 = vmax.f32 %v1780_v6, 0.0 }
 0x1c8   :  { %2891 = vmatmul.msk.f32.gmra.mxu1 %vm296_vm1, %v156_v53 }
 0x1c9   :  { %2823 = vmatmul.msk.f32.gmra.mxu0 %vm296_vm1, %v88_v22  ;;  %v4497_v59 = vmax.f32 %v2245_v40, %v2085_v15  ;;  %3015 = vmatmul.msk.f32.gmra.mxu3 %vm296_vm1, %v280_v16  ;;  %v1962_v16 = vmax.f32 %v1411_v10, 0.0 }
 0x1cb   :  { %v4528_v21 = vpop.f32.mrf.mxu2 }
 0x1cc   :  { %v4506_v62 = vpop.f32.mrf.mxu3  ;;  %2956 = vmatmul.msk.f32.gmra.mxu2 %vm296_vm1, %v221_v38 }
 0x1cd   :  { %v1416_v2 = vpop.f32.mrf.mxu1 }
 0x1ce   :  { %v4508_v51 = vpop.f32.mrf.mxu0 }
 0x1d0   :  { %2892 = vmatmul.msk.f32.gmra.mxu1 %vm296_vm1, %v157_v50  ;;  %v93_v50 = vld [vmem:[%s5206_s0 + $0x1e8] sm:$0xff] }
 0x1d1   :  { %2824 = vmatmul.msk.f32.gmra.mxu0 %vm296_vm1, %v89_v7  ;;  %3016 = vmatmul.msk.f32.gmra.mxu3 %vm296_vm1, %v281_v17  ;;  %v1414_v7 = vadd.f32 %v4124_v18, %v1413_v5 }
 0x1d3   :  { %v1602_v11 = vpop.f32.mrf.mxu2 }
 0x1d4   :  { %v4526_v63 = vpop.f32.mrf.mxu3  ;;  %2957 = vmatmul.msk.f32.gmra.mxu2 %vm296_vm1, %v222_v8  ;;  %v1603_v37 = vadd.f32 %v4124_v18, %v1602_v11 }
 0x1d6   :  { %v4530_v49 = vpop.f32.mrf.mxu0  ;;  %v2026_v15 = vmax.f32 %v1603_v37, 0.0 }
 0x1d8   :  { %2893 = vmatmul.msk.f32.gmra.mxu1 %vm296_vm1, %v158_v29 }
 0x1d9   :  { %2825 = vmatmul.msk.f32.gmra.mxu0 %vm296_vm1, %v90_v39  ;;  %3017 = vmatmul.msk.f32.gmra.mxu3 %vm296_vm1, %v282_v26  ;;  %v285_v39 = vld [vmem:[%s5206_s0 + $0x7e8] sm:$0xff] }
 0x1db   :  { %v1605_v46 = vpop.f32.mrf.mxu2 }
 0x1dc   :  { %v4548_v41 = vpop.f32.mrf.mxu3  ;;  %2958 = vmatmul.msk.f32.gmra.mxu2 %vm296_vm1, %v223_v4  ;;  %v1606_v8 = vadd.f32 %v4124_v18, %v1605_v46 }
 0x1dd   :  { %v4562_v47 = vpop.f32.mrf.mxu1 }
 0x1de   :  { %v4550_v57 = vpop.f32.mrf.mxu0 }
 0x1e0   :  { %2894 = vmatmul.msk.f32.gmra.mxu1 %vm296_vm1, %v159_v32  ;;  %v161_v32 = vld [vmem:[%s5206_s0 + $0x408] sm:$0xff] }
 0x1e1   :  { %2826 = vmatmul.msk.f32.gmra.mxu0 %vm296_vm1, %v91_v19  ;;  %3018 = vmatmul.msk.f32.gmra.mxu3 %vm296_vm1, %v283_v23  ;;  %v1963_v23 = vmax.f32 %v1414_v7, 0.0 }
 0x1e3   :  { %v1608_v4 = vpop.f32.mrf.mxu2 }
 0x1e4   :  { %v4570_v34 = vpop.f32.mrf.mxu3 }
 0x1e5   :  { %v4581_v6 = vpop.f32.mrf.mxu1 }
 0x1e6   :  { %v1218_v27 = vpop.f32.mrf.mxu0 }
 0x1e7   :  { %v1219_v55 = vadd.f32 %v4124_v18, %v1218_v27  ;;  %v2027_v27 = vmax.f32 %v1606_v8, 0.0  ;;  %v1420_v8 = vadd.f32 %v4124_v18, %v4562_v47 }
 0x1e8   :  { %2895 = vmatmul.msk.f32.gmra.mxu1 %vm296_vm1, %v160_v48 }
 0x1e9   :  { %v1898_v22 = vmax.f32 %v1219_v55, 0.0  ;;  %2827 = vmatmul.msk.f32.gmra.mxu0 %vm296_vm1, %v92_v58  ;;  %3019 = vmatmul.msk.f32.gmra.mxu3 %vm296_vm1, %v284_v25  ;;  %v1417_v55 = vadd.f32 %v4124_v18, %v1416_v2 }
 0x1eb   :  { %v2234_v40 = vmax.f32 %v4190_v1, %v1898_v22  ;;  %v94_v22 = vld [vmem:[%s5206_s0 + $0x1f0] sm:$0xff] }
 0x1ec   :  { %v1794_v54 = vpop.f32.mrf.mxu3 }
 0x1ed   :  { %v2250_v53 = vmax.f32 %v2234_v40, %v1962_v16  ;;  %v1795_v17 = vadd.f32 %v4124_v18, %v1794_v54  ;;  %v4600_v19 = vpop.f32.mrf.mxu1  ;;  %v286_v16 = vld [vmem:[%s5206_s0 + $0x7f0] sm:$0xff]  ;;  %v1609_v40 = vadd.f32 %v4124_v18, %v1608_v4 }
 0x1ee   :  { %v1221_v38 = vpop.f32.mrf.mxu0 }
 0x1ef   :  { %v1222_v1 = vadd.f32 %v4124_v18, %v1221_v38  ;;  %v2266_v26 = vmax.f32 %v2250_v53, %v2026_v15  ;;  %v2090_v29 = vmax.f32 %v1795_v17, 0.0  ;;  %v1964_v53 = vmax.f32 %v1417_v55, 0.0  ;;  %v162_v17 = vld [vmem:[%s5206_s0 + $0x410] sm:$0xff] }
 0x1f0   :  { %2896 = vmatmul.msk.f32.gmra.mxu1 %vm296_vm1, %v161_v32 }
 0x1f1   :  { %v1899_v5 = vmax.f32 %v1222_v1, 0.0  ;;  %2828 = vmatmul.msk.f32.gmra.mxu0 %vm296_vm1, %v93_v50  ;;  %v4603_v11 = vmax.f32 %v2266_v26, %v2090_v29  ;;  %3020 = vmatmul.msk.f32.gmra.mxu3 %vm296_vm1, %v285_v39  ;;  %v2028_v50 = vmax.f32 %v1609_v40, 0.0  ;;  %v1611_v39 = vpop.f32.mrf.mxu2 }
 0x1f3   :  { %v2235_v10 = vmax.f32 %v4219_v12, %v1899_v5 }
 0x1f4   :  { %v1797_v58 = vpop.f32.mrf.mxu3 }
 0x1f5   :  { %v2251_v25 = vmax.f32 %v2235_v10, %v1963_v23  ;;  %v1798_v37 = vadd.f32 %v4124_v18, %v1797_v58  ;;  %v4621_v54 = vpop.f32.mrf.mxu1  ;;  %v95_v23 = vld [vmem:[%s5206_s0 + $0x1f8] sm:$0xff]  ;;  %v1612_v10 = vadd.f32 %v4124_v18, %v1611_v39  ;;  %v97_v39 = vld [vmem:[%s5206_s0 + $0x208] sm:$0xff] }
 0x1f6   :  { %v1224_v46 = vpop.f32.mrf.mxu0 }
 0x1f7   :  { %v1225_v12 = vadd.f32 %v4124_v18, %v1224_v46  ;;  %v2267_v48 = vmax.f32 %v2251_v25, %v2027_v27  ;;  %v2091_v15 = vmax.f32 %v1798_v37, 0.0  ;;  %v1965_v25 = vmax.f32 %v1420_v8, 0.0  ;;  %v163_v37 = vld [vmem:[%s5206_s0 + $0x418] sm:$0xff] }
 0x1f8   :  { %2897 = vmatmul.msk.f32.gmra.mxu1 %vm296_vm1, %v162_v17 }
 0x1f9   :  { %v1900_v2 = vmax.f32 %v1225_v12, 0.0  ;;  %2829 = vmatmul.msk.f32.gmra.mxu0 %vm296_vm1, %v94_v22  ;;  %v4624_v7 = vmax.f32 %v2267_v48, %v2091_v15  ;;  %3021 = vmatmul.msk.f32.gmra.mxu3 %vm296_vm1, %v286_v16  ;;  %v2029_v22 = vmax.f32 %v1612_v10, 0.0  ;;  %v96_v15 = vld [vmem:[%s5206_s0 + $0x200] sm:$0xff] }
 0x1fb   :  { %v2236_v38 = vmax.f32 %v4248_v52, %v1900_v2  ;;  %v287_v52 = vld [vmem:[%s5206_s0 + $0x7f8] sm:$0xff] }
 0x1fc   :  { %v1800_v1 = vpop.f32.mrf.mxu3 }
 0x1fd   :  { %v2252_v26 = vmax.f32 %v2236_v38, %v1964_v53  ;;  %v1801_v29 = vadd.f32 %v4124_v18, %v1800_v1  ;;  %v4643_v58 = vpop.f32.mrf.mxu1  ;;  %v164_v38 = vld [vmem:[%s5206_s0 + $0x420] sm:$0xff] }
 0x1fe   :  { %v1227_v5 = vpop.f32.mrf.mxu0 }
 0x1ff   :  { %v1228_v4 = vadd.f32 %v4124_v18, %v1227_v5  ;;  %v2268_v32 = vmax.f32 %v2252_v26, %v2028_v50  ;;  %v2092_v27 = vmax.f32 %v1801_v29, 0.0  ;;  %v165_v26 = vld [vmem:[%s5206_s0 + $0x428] sm:$0xff]  ;;  %v98_v29 = vld [vmem:[%s5206_s0 + $0x210] sm:$0xff] }
 0x200   :  { %2898 = vmatmul.msk.f32.gmra.mxu1 %vm296_vm1, %v163_v37 }
 0x201   :  { %v1901_v47 = vmax.f32 %v1228_v4, 0.0  ;;  %2830 = vmatmul.msk.f32.gmra.mxu0 %vm296_vm1, %v95_v23  ;;  %v4646_v55 = vmax.f32 %v2268_v32, %v2092_v27  ;;  %3022 = vmatmul.msk.f32.gmra.mxu3 %vm296_vm1, %v287_v52  ;;  %v99_v52 = vld [vmem:[%s5206_s0 + $0x218] sm:$0xff] }
 0x203   :  { %v2237_v46 = vmax.f32 %v4277_v28, %v1901_v47 }
 0x204   :  { %v1803_v16 = vpop.f32.mrf.mxu3 }
 0x205   :  { %v2253_v12 = vmax.f32 %v2237_v46, %v1965_v25  ;;  %v1804_v48 = vadd.f32 %v4124_v18, %v1803_v16  ;;  %v4660_v17 = vpop.f32.mrf.mxu1  ;;  %v100_v25 = vld [vmem:[%s5206_s0 + $0x220] sm:$0xff] }
 0x206   :  { %v4655_v40 = vpop.f32.mrf.mxu0 }
 0x207   :  { %v2269_v2 = vmax.f32 %v2253_v12, %v2029_v22  ;;  %v2093_v53 = vmax.f32 %v1804_v48, 0.0 }
 0x208   :  { %2899 = vmatmul.msk.f32.gmra.mxu1 %vm296_vm1, %v164_v38  ;;  %v1207_v38 = vadd.f32 %v4124_v18, %v4484_v0  ;;  %v1210_v0 = vadd.f32 %v4124_v18, %v4508_v51 }
 0x209   :  { %2831 = vmatmul.msk.f32.gmra.mxu0 %vm296_vm1, %v96_v15  ;;  %v4663_v28 = vmax.f32 %v2269_v2, %v2093_v53 }
 0x20d   :  { %v4674_v1 = vpop.f32.mrf.mxu1 }
 0x20e   :  { %v4669_v50 = vpop.f32.mrf.mxu0 }
 0x210   :  { %2900 = vmatmul.msk.f32.gmra.mxu1 %vm296_vm1, %v165_v26 }
 0x211   :  { %2832 = vmatmul.msk.f32.gmra.mxu0 %vm296_vm1, %v97_v39  ;;  %v102_v39 = vld [vmem:[%s5206_s0 + $0x230] sm:$0xff] }
 0x215   :  { %v4686_v5 = vpop.f32.mrf.mxu1 }
 0x216   :  { %v4681_v8 = vpop.f32.mrf.mxu0 }
 0x219   :  { %2833 = vmatmul.msk.f32.gmra.mxu0 %vm296_vm1, %v98_v29  ;;  %v1894_v29 = vmax.f32 %v1207_v38, 0.0 }
 0x21d   :  { %v4693_v32 = vpop.f32.mrf.mxu1 }
 0x21e   :  { %v1239_v23 = vpop.f32.mrf.mxu0 }
 0x21f   :  { %v1240_v4 = vadd.f32 %v4124_v18, %v1239_v23  ;;  %v1399_v23 = vadd.f32 %v4124_v18, %v4388_v9  ;;  %v103_v9 = vld [vmem:[%s5206_s0 + $0x238] sm:$0xff] }
 0x221   :  { %v1905_v10 = vmax.f32 %v1240_v4, 0.0  ;;  %2834 = vmatmul.msk.f32.gmra.mxu0 %vm296_vm1, %v99_v52 }
 0x223   :  { %v4697_v27 = vmax.f32 %v4391_v61, %v1905_v10  ;;  %v101_v61 = vld [vmem:[%s5206_s0 + $0x228] sm:$0xff]  ;;  %v2214_v10 = vmax.f32 %v4069_v56, %v1894_v29  ;;  %v1783_v56 = vadd.f32 %v4124_v18, %v4506_v62  ;;  %v104_v62 = vld [vmem:[%s5206_s0 + $0x240] sm:$0xff] }
 0x225   :  { %v4703_v46 = vpop.f32.mrf.mxu1 }
 0x226   :  { %v1242_v47 = vpop.f32.mrf.mxu0 }
 0x227   :  { %v1243_v37 = vadd.f32 %v4124_v18, %v1242_v47  ;;  %v1958_v47 = vmax.f32 %v1399_v23, 0.0 }
 0x229   :  { %v1906_v22 = vmax.f32 %v1243_v37, 0.0  ;;  %2835 = vmatmul.msk.f32.gmra.mxu0 %vm296_vm1, %v100_v25  ;;  %v1591_v25 = vadd.f32 %v4124_v18, %v4435_v42  ;;  %v2230_v51 = vmax.f32 %v2214_v10, %v1958_v47 }
 0x22b   :  { %v4707_v16 = vmax.f32 %v4418_v30, %v1906_v22 }
 0x22d   :  { %v4714_v2 = vpop.f32.mrf.mxu1 }
 0x22e   :  { %v1245_v12 = vpop.f32.mrf.mxu0 }
 0x22f   :  { %v1246_v48 = vadd.f32 %v4124_v18, %v1245_v12  ;;  %v1402_v12 = vadd.f32 %v4124_v18, %v4415_v36  ;;  %v1213_v36 = vadd.f32 %v4124_v18, %v4530_v49 }
 0x231   :  { %v1907_v15 = vmax.f32 %v1246_v48, 0.0  ;;  %2836 = vmatmul.msk.f32.gmra.mxu0 %vm296_vm1, %v101_v61  ;;  %v2022_v61 = vmax.f32 %v1591_v25, 0.0  ;;  %v1959_v38 = vmax.f32 %v1402_v12, 0.0 }
 0x233   :  { %v4717_v53 = vmax.f32 %v4447_v20, %v1907_v15 }
 0x235   :  { %v4733_v4 = vpop.f32.mrf.mxu1 }
 0x236   :  { %v1248_v30 = vpop.f32.mrf.mxu0 }
 0x237   :  { %v1249_v26 = vadd.f32 %v4124_v18, %v1248_v30  ;;  %v1594_v30 = vadd.f32 %v4124_v18, %v4470_v13  ;;  %v4764_v13 = vld [vmem:[%s5208_s2] ss:$0 sm:$0xff] }
 0x238   :  { %v1786_v49 = vadd.f32 %v4764_v13, %v4526_v63  ;;  %v1405_v10 = vadd.f32 %v4764_v13, %v4444_v3  ;;  %v1216_v63 = vadd.f32 %v4764_v13, %v4550_v57  ;;  %v105_v3 = vld [vmem:[%s5206_s0 + $0x248] sm:$0xff]  ;;  %v1789_v57 = vadd.f32 %v4764_v13, %v4548_v41 }
 0x239   :  { %v1908_v52 = vmax.f32 %v1249_v26, 0.0  ;;  %2837 = vmatmul.msk.f32.gmra.mxu0 %vm296_vm1, %v102_v39  ;;  %v2246_v39 = vmax.f32 %v2230_v51, %v2022_v61  ;;  %v2086_v26 = vmax.f32 %v1783_v56, 0.0  ;;  %v1408_v56 = vadd.f32 %v4764_v13, %v4472_v45 }
 0x23a   :  { %v1960_v12 = vmax.f32 %v1405_v10, 0.0  ;;  %v1792_v10 = vadd.f32 %v4764_v13, %v4570_v34 }
 0x23b   :  { %v4729_v20 = vmax.f32 %v4475_v14, %v1908_v52  ;;  %v1895_v14 = vmax.f32 %v1210_v0, 0.0  ;;  %v1896_v0 = vmax.f32 %v1213_v36, 0.0  ;;  %v2262_v47 = vmax.f32 %v2246_v39, %v2086_v26 }
 0x23c   :  { %v1600_v39 = vadd.f32 %v4764_v13, %v4528_v21  ;;  %v1961_v45 = vmax.f32 %v1408_v56, 0.0 }
 0x23d   :  { %v2215_v15 = vmax.f32 %v4098_v43, %v1895_v14  ;;  %v4758_v23 = vpop.f32.mrf.mxu1  ;;  %v2023_v43 = vmax.f32 %v1594_v30, 0.0  ;;  %v2216_v14 = vmax.f32 %v4132_v24, %v1896_v0 }
 0x23e   :  { %v1251_v37 = vpop.f32.mrf.mxu0 }
 0x23f   :  { %v1252_v22 = vadd.f32 %v4124_v18, %v1251_v37  ;;  %v2231_v52 = vmax.f32 %v2215_v15, %v1959_v38  ;;  %v1897_v38 = vmax.f32 %v1216_v63, 0.0  ;;  %v2232_v24 = vmax.f32 %v2216_v14, %v1960_v12  ;;  %v1614_v14 = vpop.f32.mrf.mxu2 }
 0x241   :  { %v1909_v48 = vmax.f32 %v1252_v22, 0.0  ;;  %2838 = vmatmul.msk.f32.gmra.mxu0 %vm296_vm1, %v103_v9  ;;  %v1597_v9 = vadd.f32 %v4764_v13, %v4500_v31  ;;  %v2087_v22 = vmax.f32 %v1786_v49, 0.0  ;;  %v2233_v26 = vmax.f32 %v4161_v33, %v1897_v38 }
 0x243   :  { %v4748_v42 = vmax.f32 %v4497_v59, %v1909_v48  ;;  %v2024_v48 = vmax.f32 %v1597_v9, 0.0  ;;  %v2249_v49 = vmax.f32 %v2233_v26, %v1961_v45 }
 0x245   :  { %v4784_v31 = vpop.f32.mrf.mxu1 }
 0x246   :  { %v1254_v29 = vpop.f32.mrf.mxu0 }
 0x247   :  { %v1255_v59 = vadd.f32 %v4124_v18, %v1254_v29  ;;  %v2247_v18 = vmax.f32 %v2231_v52, %v2023_v43  ;;  %v2248_v29 = vmax.f32 %v2232_v24, %v2024_v48  ;;  %v106_v52 = vld [vmem:[%s5206_s0 + $0x250] sm:$0xff]  ;;  %v2025_v43 = vmax.f32 %v1600_v39, 0.0  ;;  %v2384_v39 = vld [vmem:[%s5209_s3] sm:$0xff] }
 0x248   :  { %v2386_v24 = vld [vmem:[%s5209_s3 + $0x10] sm:$0xff] }
 0x249   :  { %v1910_v25 = vmax.f32 %v1255_v59, 0.0  ;;  %2839 = vmatmul.msk.f32.gmra.mxu0 %vm296_vm1, %v104_v62  ;;  %v2263_v15 = vmax.f32 %v2247_v18, %v2087_v22  ;;  %v2088_v62 = vmax.f32 %v1789_v57, 0.0  ;;  %v2089_v18 = vmax.f32 %v1792_v10, 0.0  ;;  %v2387_v57 = vld [vmem:[%s5209_s3 + $0x18] sm:$0xff]  ;;  %2451 = vmatpush.msrb.mxu1 %v2386_v24 }
 0x24a   :  { %2516 = vmatpush.msrb.mxu2 %v2387_v57 }
 0x24b   :  { %v4771_v37 = vmax.f32 %v2262_v47, %v1910_v25  ;;  %v2264_v0 = vmax.f32 %v2248_v29, %v2088_v62  ;;  %v2265_v25 = vmax.f32 %v2249_v49, %v2025_v43  ;;  %2452 = vmatpush.msrb.mxu1 %v2384_v39 }
 0x24d   :  { %v4801_v33 = vpop.f32.mrf.mxu1  ;;  %v2281_v63 = vmax.f32 %v2265_v25, %v2089_v18  ;;  %v1423_v25 = vadd.f32 %v4764_v13, %v4581_v6 }
 0x24e   :  { %v1257_v51 = vpop.f32.mrf.mxu0 }
 0x24f   :  { %v1258_v61 = vadd.f32 %v4764_v13, %v1257_v51  ;;  %v1806_v51 = vpop.f32.mrf.mxu3 }
 0x251   :  { %v1911_v30 = vmax.f32 %v1258_v61, 0.0  ;;  %2840 = vmatmul.msk.f32.gmra.mxu0 %vm296_vm1, %v105_v3 }
 0x253   :  { %v4789_v36 = vmax.f32 %v2263_v15, %v1911_v30  ;;  %v1617_v15 = vpop.f32.mrf.mxu2 }
 0x255   :  { %v1464_v61 = vpop.f32.mrf.mxu1 }
 0x256   :  { %v1260_v59 = vpop.f32.mrf.mxu0  ;;  %v1465_v43 = vadd.f32 %v4764_v13, %v1464_v61  ;;  %v1234_v61 = vadd.f32 %v4764_v13, %v4669_v50 }
 0x257   :  { %v1261_v41 = vadd.f32 %v4764_v13, %v1260_v59  ;;  %v1809_v30 = vpop.f32.mrf.mxu3 }
 0x259   :  { %v1912_v47 = vmax.f32 %v1261_v41, 0.0  ;;  %2841 = vmatmul.msk.f32.gmra.mxu0 %vm296_vm1, %v106_v52  ;;  %v1231_v52 = vadd.f32 %v4764_v13, %v4655_v40  ;;  %v1966_v40 = vmax.f32 %v1423_v25, 0.0 }
 0x25b   :  { %v4803_v21 = vmax.f32 %v2264_v0, %v1912_v47  ;;  %v1620_v41 = vpop.f32.mrf.mxu2  ;;  %v1902_v47 = vmax.f32 %v1231_v52, 0.0 }
 0x25d   :  { %v1467_v45 = vpop.f32.mrf.mxu1 }
 0x25e   :  { %v1263_v9 = vpop.f32.mrf.mxu0 }
 0x25f   :  { %v1264_v22 = vadd.f32 %v4764_v13, %v1263_v9  ;;  %v4831_v0 = vpop.f32.mrf.mxu3 }
 0x261   :  { %v1913_v12 = vmax.f32 %v1264_v22, 0.0  ;;  %v1980_v22 = vmax.f32 %v1465_v43, 0.0  ;;  %v1618_v43 = vadd.f32 %v4764_v13, %v1617_v15  ;;  %v1810_v15 = vadd.f32 %v4764_v13, %v1809_v30 }
 0x263   :  { %v4806_v3 = vmax.f32 %v2281_v63, %v1913_v12  ;;  %v2254_v63 = vmax.f32 %v4306_v44, %v1902_v47  ;;  %v1615_v12 = vadd.f32 %v4764_v13, %v1614_v14  ;;  %v1426_v44 = vadd.f32 %v4764_v13, %v4600_v19 }
 0x265   :  { %v1470_v18 = vpop.f32.mrf.mxu1  ;;  %v2270_v57 = vmax.f32 %v2254_v63, %v1966_v40  ;;  %v2030_v39 = vmax.f32 %v1615_v12, 0.0 }
 0x266   :  { %v1266_v34 = vpop.f32.mrf.mxu0  ;;  %v1471_v19 = vadd.f32 %v4764_v13, %v1470_v18 }
 0x267   :  { %v1267_v56 = vadd.f32 %v4764_v13, %v1266_v34  ;;  %v4848_v14 = vpop.f32.mrf.mxu3  ;;  %v2286_v52 = vmax.f32 %v2270_v57, %v2030_v39 }
 0x269   :  { %v1914_v48 = vmax.f32 %v1267_v56, 0.0  ;;  %v1468_v56 = vadd.f32 %v4764_v13, %v1467_v45  ;;  %v1237_v45 = vadd.f32 %v4764_v13, %v4681_v8 }
 0x26b   :  { %v4810_v38 = vmax.f32 %v4603_v11, %v1914_v48  ;;  %v2385_v11 = vld [vmem:[%s5209_s3 + $0x8] sm:$0xff]  ;;  %v1623_v48 = vpop.f32.mrf.mxu2  ;;  %v1981_v50 = vmax.f32 %v1468_v56, 0.0 }
 0x26c   :  { %2517 = vmatpush.msrb.mxu2 %v2385_v11  ;;  %v1903_v11 = vmax.f32 %v1234_v61, 0.0 }
 0x26e   :  { %v1269_v26 = vpop.f32.mrf.mxu0 }
 0x26f   :  { %v1270_v29 = vadd.f32 %v4764_v13, %v1269_v26  ;;  %v1818_v61 = vpop.f32.mrf.mxu3 }
 0x271   :  { %v1915_v62 = vmax.f32 %v1270_v29, 0.0  ;;  %v1473_v29 = vpop.f32.mrf.mxu1 }
 0x273   :  { %v4826_v59 = vmax.f32 %v4624_v7, %v1915_v62  ;;  %v1626_v63 = vpop.f32.mrf.mxu2 }
 0x276   :  { %v1272_v49 = vpop.f32.mrf.mxu0 }
 0x277   :  { %v1273_v10 = vadd.f32 %v4764_v13, %v1272_v49 }
 0x279   :  { %v1916_v9 = vmax.f32 %v1273_v10, 0.0  ;;  %v1967_v10 = vmax.f32 %v1426_v44, 0.0  ;;  %v1476_v57 = vpop.f32.mrf.mxu1 }
 0x27b   :  { %v2300_v7 = vmax.f32 %v4646_v55, %v1916_v9  ;;  %v1807_v55 = vadd.f32 %v4764_v13, %v1806_v51  ;;  %v2255_v51 = vmax.f32 %v4335_v35, %v1903_v11  ;;  %v1982_v35 = vmax.f32 %v1471_v19, 0.0 }
 0x27c   :  { %v1474_v11 = vadd.f32 %v4764_v13, %v1473_v29  ;;  %v1629_v29 = vpop.f32.mrf.mxu2 }
 0x27d   :  { %v4841_v34 = vmax.f32 %v2300_v7, %v1980_v22  ;;  %v2094_v49 = vmax.f32 %v1807_v55, 0.0  ;;  %v1904_v22 = vmax.f32 %v1237_v45, 0.0  ;;  %v2031_v7 = vmax.f32 %v1618_v43, 0.0 }
 0x27e   :  { %v1275_v24 = vpop.f32.mrf.mxu0  ;;  %v2271_v40 = vmax.f32 %v2255_v51, %v1967_v10  ;;  %v2095_v55 = vmax.f32 %v1810_v15, 0.0  ;;  %v1624_v51 = vadd.f32 %v4764_v13, %v1623_v48  ;;  %v1816_v15 = vadd.f32 %v4764_v13, %v4848_v14 }
 0x27f   :  { %v1276_v6 = vadd.f32 %v4764_v13, %v1275_v24  ;;  %v2302_v8 = vmax.f32 %v2286_v52, %v2094_v49  ;;  %v2256_v24 = vmax.f32 %v4362_v60, %v1904_v22  ;;  %v1813_v60 = vadd.f32 %v4764_v13, %v4831_v0 }
 0x280   :  { %v2287_v39 = vmax.f32 %v2271_v40, %v2031_v7  ;;  %v1983_v52 = vmax.f32 %v1474_v11, 0.0  ;;  %v1477_v22 = vadd.f32 %v4764_v13, %v1476_v57 }
 0x281   :  { %v1917_v26 = vmax.f32 %v1276_v6, 0.0  ;;  %v1621_v6 = vadd.f32 %v4764_v13, %v1620_v41  ;;  %v1432_v41 = vadd.f32 %v4764_v13, %v4643_v58  ;;  %v2096_v10 = vmax.f32 %v1813_v60, 0.0 }
 0x282   :  { %v1435_v58 = vadd.f32 %v4764_v13, %v4660_v17 }
 0x283   :  { %v2301_v62 = vmax.f32 %v4663_v28, %v1917_v26  ;;  %v1429_v28 = vadd.f32 %v4764_v13, %v4621_v54  ;;  %v1969_v19 = vmax.f32 %v1432_v41, 0.0 }
 0x285   :  { %v4855_v47 = vmax.f32 %v2301_v62, %v1981_v50  ;;  %v1968_v18 = vmax.f32 %v1429_v28, 0.0  ;;  %v2032_v50 = vmax.f32 %v1621_v6, 0.0  ;;  %v2303_v62 = vmax.f32 %v2287_v39, %v2095_v55  ;;  %v1479_v28 = vpop.f32.mrf.mxu1  ;;  %v1632_v6 = vpop.f32.mrf.mxu2 }
 0x286   :  { %v1278_v25 = vpop.f32.mrf.mxu0  ;;  %v2273_v48 = vmax.f32 %v4697_v27, %v1969_v19  ;;  %v2097_v39 = vmax.f32 %v1816_v15, 0.0  ;;  %v1480_v17 = vadd.f32 %v4764_v13, %v1479_v28 }
 0x287   :  { %v1279_v9 = vadd.f32 %v4764_v13, %v1278_v25  ;;  %v2272_v30 = vmax.f32 %v2256_v24, %v1968_v18  ;;  %v1821_v25 = vpop.f32.mrf.mxu3  ;;  %v1970_v24 = vmax.f32 %v1435_v58, 0.0  ;;  %v1627_v18 = vadd.f32 %v4764_v13, %v1626_v63 }
 0x288   :  { %v1438_v63 = vadd.f32 %v4764_v13, %v4674_v1  ;;  %v1985_v41 = vmax.f32 %v1480_v17, 0.0 }
 0x289   :  { %v1918_v12 = vmax.f32 %v1279_v9, 0.0  ;;  %v2288_v49 = vmax.f32 %v2272_v30, %v2032_v50  ;;  %v2274_v27 = vmax.f32 %v4707_v16, %v1970_v24  ;;  %v2034_v14 = vmax.f32 %v1627_v18, 0.0 }
 0x28a   :  { %v1633_v18 = vadd.f32 %v4764_v13, %v1632_v6 }
 0x28b   :  { %v2318_v56 = vmax.f32 %v2302_v8, %v1918_v12  ;;  %v2033_v8 = vmax.f32 %v1624_v51, 0.0  ;;  %v2304_v40 = vmax.f32 %v2288_v49, %v2096_v10  ;;  %v1971_v49 = vmax.f32 %v1438_v63, 0.0 }
 0x28d   :  { %v2334_v54 = vmax.f32 %v2318_v56, %v1982_v35  ;;  %v1984_v35 = vmax.f32 %v1477_v22, 0.0  ;;  %v2289_v57 = vmax.f32 %v2273_v48, %v2033_v8  ;;  %v1482_v30 = vpop.f32.mrf.mxu1  ;;  %v2275_v22 = vmax.f32 %v4717_v53, %v1971_v49 }
 0x28e   :  { %v1281_v44 = vpop.f32.mrf.mxu0  ;;  %v1483_v51 = vadd.f32 %v4764_v13, %v1482_v30  ;;  %v1441_v8 = vadd.f32 %v4764_v13, %v4686_v5 }
 0x28f   :  { %v1282_v26 = vadd.f32 %v4764_v13, %v1281_v44  ;;  %2350 = vxpose.xlu0.b32.start [1/16] (narrow) %v2334_v54, 16  ;;  %3023 = vmatmul.msk.f32.vlgmr.msrb.gmra.mxu1 %vm2388_vm2, %v2334_v54  ;;  %v1819_v44 = vadd.f32 %v4764_v13, %v1818_v61  ;;  %v2305_v50 = vmax.f32 %v2289_v57, %v2097_v39  ;;  %v1635_v61 = vpop.f32.mrf.mxu2 }
 0x290   :  { %3039 = vmatmul.msk.f32.vlgmr.msrb.gmra.mxu2 %vm2388_vm2, %v2334_v54  ;;  %v1986_v28 = vmax.f32 %v1483_v51, 0.0  ;;  %v1972_v24 = vmax.f32 %v1441_v8, 0.0 }
 0x291   :  { %v1919_v45 = vmax.f32 %v1282_v26, 0.0  ;;  %v1824_v26 = vpop.f32.mrf.mxu3 }
 0x292   :  { %v2292_v17 = vmax.f32 %v4729_v20, %v1972_v24  ;;  %v1447_v20 = vadd.f32 %v4764_v13, %v4703_v46 }
 0x293   :  { %v2319_v43 = vmax.f32 %v2303_v62, %v1919_v45  ;;  %v2290_v45 = vmax.f32 %v2274_v27, %v2034_v14 }
 0x295   :  { %v2335_v9 = vmax.f32 %v2319_v43, %v1983_v52  ;;  %v1630_v52 = vadd.f32 %v4764_v13, %v1629_v29  ;;  %v2098_v43 = vmax.f32 %v1819_v44, 0.0  ;;  %v1822_v29 = vadd.f32 %v4764_v13, %v1821_v25  ;;  %v1485_v58 = vpop.f32.mrf.mxu1 }
 0x296   :  { %v1284_v0 = vpop.f32.mrf.mxu0 }
 0x297   :  { %v1285_v7 = vadd.f32 %v4764_v13, %v1284_v0  ;;  %2351 = vxpose.xlu0.b32.cont [2/16] (narrow) %v2335_v9, 16  ;;  %3024 = vmatmul.msk.f32.gmra.mxu1 %vm2388_vm2, %v2335_v9  ;;  %v2035_v1 = vmax.f32 %v1630_v52, 0.0  ;;  %v2099_v15 = vmax.f32 %v1822_v29, 0.0  ;;  %v1638_v25 = vpop.f32.mrf.mxu2 }
 0x298   :  { %3040 = vmatmul.msk.f32.gmra.mxu2 %vm2388_vm2, %v2335_v9  ;;  %v2306_v9 = vmax.f32 %v2290_v45, %v2098_v43 }
 0x299   :  { %v1920_v12 = vmax.f32 %v1285_v7, 0.0  ;;  %v1827_v7 = vpop.f32.mrf.mxu3  ;;  %v2291_v48 = vmax.f32 %v2275_v22, %v2035_v1 }
 0x29a   :  { %v1828_v43 = vadd.f32 %v4764_v13, %v1827_v7 }
 0x29b   :  { %v2320_v56 = vmax.f32 %v2304_v40, %v1920_v12  ;;  %v2307_v57 = vmax.f32 %v2291_v48, %v2099_v15 }
 0x29c   :  { %v2101_v1 = vmax.f32 %v1828_v43, 0.0 }
 0x29d   :  { %v2336_v55 = vmax.f32 %v2320_v56, %v1984_v35  ;;  %v1486_v35 = vadd.f32 %v4764_v13, %v1485_v58 }
 0x29e   :  { %v1287_v54 = vpop.f32.mrf.mxu0 }
 0x29f   :  { %v1288_v11 = vadd.f32 %v4764_v13, %v1287_v54  ;;  %2352 = vxpose.xlu0.b32.cont [3/16] (narrow) %v2336_v55, 16  ;;  %3025 = vmatmul.msk.f32.gmra.mxu1 %vm2388_vm2, %v2336_v55  ;;  %v1987_v39 = vmax.f32 %v1486_v35, 0.0  ;;  %v2036_v54 = vmax.f32 %v1633_v18, 0.0 }
 0x2a0   :  { %3041 = vmatmul.msk.f32.gmra.mxu2 %vm2388_vm2, %v2336_v55  ;;  %v1444_v55 = vadd.f32 %v4764_v13, %v4693_v32 }
 0x2a1   :  { %v1921_v60 = vmax.f32 %v1288_v11, 0.0  ;;  %v1825_v11 = vadd.f32 %v4764_v13, %v1824_v26  ;;  %v1830_v27 = vpop.f32.mrf.mxu3  ;;  %v2308_v63 = vmax.f32 %v2292_v17, %v2036_v54  ;;  %v1641_v26 = vpop.f32.mrf.mxu2 }
 0x2a2   :  { %v1973_v44 = vmax.f32 %v1444_v55, 0.0  ;;  %v1642_v15 = vadd.f32 %v4764_v13, %v1641_v26 }
 0x2a3   :  { %v2321_v62 = vmax.f32 %v2305_v50, %v1921_v60  ;;  %v1636_v50 = vadd.f32 %v4764_v13, %v1635_v61  ;;  %v2100_v60 = vmax.f32 %v1825_v11, 0.0 }
 0x2a4   :  { %v2039_v18 = vmax.f32 %v1642_v15, 0.0 }
 0x2a5   :  { %v2337_v16 = vmax.f32 %v2321_v62, %v1985_v41  ;;  %v2293_v62 = vmax.f32 %v4748_v42, %v1973_v44  ;;  %v2037_v45 = vmax.f32 %v1636_v50, 0.0  ;;  %v2324_v52 = vmax.f32 %v2308_v63, %v2100_v60 }
 0x2a6   :  { %v1290_v10 = vpop.f32.mrf.mxu0  ;;  %v1450_v42 = vadd.f32 %v4764_v13, %v4714_v2  ;;  %v1456_v63 = vadd.f32 %v4764_v13, %v4758_v23 }
 0x2a7   :  { %v1291_v19 = vadd.f32 %v4764_v13, %v1290_v10  ;;  %2353 = vxpose.xlu0.b32.cont [4/16] (narrow) %v2337_v16, 16  ;;  %3026 = vmatmul.msk.f32.gmra.mxu1 %vm2388_vm2, %v2337_v16  ;;  %v2309_v10 = vmax.f32 %v2293_v62, %v2037_v45 }
 0x2a8   :  { %3042 = vmatmul.msk.f32.gmra.mxu2 %vm2388_vm2, %v2337_v16  ;;  %v1974_v16 = vmax.f32 %v1447_v20, 0.0  ;;  %v1975_v8 = vmax.f32 %v1450_v42, 0.0 }
 0x2a9   :  { %v1922_v0 = vmax.f32 %v1291_v19, 0.0  ;;  %v1833_v51 = vpop.f32.mrf.mxu3  ;;  %v1639_v19 = vadd.f32 %v4764_v13, %v1638_v25  ;;  %v1644_v7 = vpop.f32.mrf.mxu2 }
 0x2aa   :  { %v2294_v22 = vmax.f32 %v4771_v37, %v1974_v16  ;;  %v2295_v24 = vmax.f32 %v4789_v36, %v1975_v8  ;;  %v1834_v25 = vadd.f32 %v4764_v13, %v1833_v51  ;;  %v1645_v54 = vadd.f32 %v4764_v13, %v1644_v7 }
 0x2ab   :  { %v2322_v40 = vmax.f32 %v2306_v9, %v1922_v0  ;;  %v2038_v29 = vmax.f32 %v1639_v19, 0.0  ;;  %v2325_v0 = vmax.f32 %v2309_v10, %v2101_v1  ;;  %v1459_v16 = vadd.f32 %v4764_v13, %v4784_v31 }
 0x2ac   :  { %v2311_v17 = vmax.f32 %v2295_v24, %v2039_v18  ;;  %v2103_v11 = vmax.f32 %v1834_v25, 0.0  ;;  %v1462_v31 = vadd.f32 %v4764_v13, %v4801_v33 }
 0x2ad   :  { %v2338_v12 = vmax.f32 %v2322_v40, %v1986_v28  ;;  %v1831_v28 = vadd.f32 %v4764_v13, %v1830_v27  ;;  %v2310_v48 = vmax.f32 %v2294_v22, %v2038_v29  ;;  %v1978_v19 = vmax.f32 %v1459_v16, 0.0 }
 0x2ae   :  { %v1293_v56 = vpop.f32.mrf.mxu0  ;;  %v2327_v44 = vmax.f32 %v2311_v17, %v2103_v11 }
 0x2af   :  { %v1294_v53 = vadd.f32 %v4764_v13, %v1293_v56  ;;  %2354 = vxpose.xlu0.b32.cont [5/16] (narrow) %v2338_v12, 16  ;;  %3027 = vmatmul.msk.f32.gmra.mxu1 %vm2388_vm2, %v2338_v12  ;;  %v1453_v56 = vadd.f32 %v4764_v13, %v4733_v4 }
 0x2b0   :  { %3043 = vmatmul.msk.f32.gmra.mxu2 %vm2388_vm2, %v2338_v12  ;;  %v2102_v12 = vmax.f32 %v1831_v28, 0.0  ;;  %v1979_v28 = vmax.f32 %v1462_v31, 0.0 }
 0x2b1   :  { %v1923_v5 = vmax.f32 %v1294_v53, 0.0  ;;  %v1836_v2 = vpop.f32.mrf.mxu3 }
 0x2b2   :  { %v2326_v53 = vmax.f32 %v2310_v48, %v2102_v12 }
 0x2b3   :  { %v2323_v6 = vmax.f32 %v2307_v57, %v1923_v5  ;;  %v1976_v5 = vmax.f32 %v1453_v56, 0.0 }
 0x2b5   :  { %v2339_v14 = vmax.f32 %v2323_v6, %v1987_v39  ;;  %v1647_v39 = vpop.f32.mrf.mxu2  ;;  %v2296_v27 = vmax.f32 %v4803_v21, %v1976_v5  ;;  %v1977_v21 = vmax.f32 %v1456_v63, 0.0 }
 0x2b6   :  { %v1296_v30 = vpop.f32.mrf.mxu0  ;;  %v1648_v26 = vadd.f32 %v4764_v13, %v1647_v39 }
 0x2b7   :  { %v1297_v41 = vadd.f32 %v4764_v13, %v1296_v30  ;;  %2355 = vxpose.xlu0.b32.cont [6/16] (narrow) %v2339_v14, 16  ;;  %3028 = vmatmul.msk.f32.gmra.mxu1 %vm2388_vm2, %v2339_v14  ;;  %v1837_v30 = vadd.f32 %v4764_v13, %v1836_v2  ;;  %v2313_v23 = vmax.f32 %v4806_v3, %v1977_v21 }
 0x2b8   :  { %3044 = vmatmul.msk.f32.gmra.mxu2 %vm2388_vm2, %v2339_v14  ;;  %v2040_v14 = vmax.f32 %v1645_v54, 0.0  ;;  %v2041_v43 = vmax.f32 %v1648_v26, 0.0  ;;  %v2314_v3 = vmax.f32 %v4810_v38, %v1978_v19  ;;  %v2315_v38 = vmax.f32 %v4826_v59, %v1979_v28  ;;  %v2597_v19 = vld [vmem:[%s5210_s4 + $0xf0] sm:$0xff] }
 0x2b9   :  { %v1924_v32 = vmax.f32 %v1297_v41, 0.0  ;;  %v1839_v36 = vpop.f32.mrf.mxu3 }
 0x2ba   :  { %v2312_v41 = vmax.f32 %v2296_v27, %v2040_v14  ;;  %v1840_v51 = vadd.f32 %v4764_v13, %v1839_v36  ;;  %v2329_v1 = vmax.f32 %v2313_v23, %v2041_v43 }
 0x2bb   :  { %v2340_v49 = vmax.f32 %v2324_v52, %v1924_v32  ;;  %v2104_v32 = vmax.f32 %v1837_v30, 0.0 }
 0x2bd   :  { %v1650_v62 = vpop.f32.mrf.mxu2  ;;  %v2328_v52 = vmax.f32 %v2312_v41, %v2104_v32 }
 0x2be   :  { %v1299_v61 = vpop.f32.mrf.mxu0  ;;  %v1651_v10 = vadd.f32 %v4764_v13, %v1650_v62 }
 0x2bf   :  { %v1300_v9 = vadd.f32 %v4764_v13, %v1299_v61  ;;  %2356 = vxpose.xlu0.b32.cont [7/16] (narrow) %v2340_v49, 16  ;;  %3029 = vmatmul.msk.f32.gmra.mxu1 %vm2388_vm2, %v2340_v49 }
 0x2c0   :  { %3045 = vmatmul.msk.f32.gmra.mxu2 %vm2388_vm2, %v2340_v49  ;;  %v2042_v42 = vmax.f32 %v1651_v10, 0.0 }
 0x2c1   :  { %v1925_v46 = vmax.f32 %v1300_v9, 0.0  ;;  %v1842_v49 = vpop.f32.mrf.mxu3  ;;  %v2105_v9 = vmax.f32 %v1840_v51, 0.0 }
 0x2c2   :  { %v1843_v29 = vadd.f32 %v4764_v13, %v1842_v49  ;;  %v2330_v7 = vmax.f32 %v2314_v3, %v2042_v42  ;;  %v2593_v3 = vld [vmem:[%s5210_s4 + $0xd0] sm:$0xff] }
 0x2c3   :  { %v2341_v58 = vmax.f32 %v2325_v0, %v1925_v46  ;;  %v2345_v22 = vmax.f32 %v2329_v1, %v2105_v9  ;;  %v2595_v9 = vld [vmem:[%s5210_s4 + $0xe0] sm:$0xff] }
 0x2c4   :  { %v2106_v8 = vmax.f32 %v1843_v29, 0.0 }
 0x2c5   :  { %v1653_v46 = vpop.f32.mrf.mxu2 }
 0x2c6   :  { %v1302_v40 = vpop.f32.mrf.mxu0  ;;  %v2346_v15 = vmax.f32 %v2330_v7, %v2106_v8  ;;  %v2587_v7 = vld [vmem:[%s5210_s4 + $0xa0] sm:$0xff] }
 0x2c7   :  { %v1303_v35 = vadd.f32 %v4764_v13, %v1302_v40  ;;  %2357 = vxpose.xlu0.b32.cont [8/16] (narrow) %v2341_v58, 16  ;;  %3030 = vmatmul.msk.f32.gmra.mxu1 %vm2388_vm2, %v2341_v58 }
 0x2c8   :  { %3046 = vmatmul.msk.f32.gmra.mxu2 %vm2388_vm2, %v2341_v58  ;;  %v1654_v58 = vadd.f32 %v4764_v13, %v1653_v46 }
 0x2c9   :  { %v1926_v37 = vmax.f32 %v1303_v35, 0.0  ;;  %v1845_v0 = vpop.f32.mrf.mxu3 }
 0x2ca   :  { %v2043_v48 = vmax.f32 %v1654_v58, 0.0  ;;  %v1846_v33 = vadd.f32 %v4764_v13, %v1845_v0  ;;  %v2589_v0 = vld [vmem:[%s5210_s4 + $0xb0] sm:$0xff] }
 0x2cb   :  { %v2342_v57 = vmax.f32 %v2326_v53, %v1926_v37 }
 0x2cc   :  { %v2331_v35 = vmax.f32 %v2315_v38, %v2043_v48  ;;  %v2107_v37 = vmax.f32 %v1846_v33, 0.0  ;;  %v2583_v48 = vld [vmem:[%s5210_s4 + $0x80] sm:$0xff]  ;;  %v2581_v33 = vld [vmem:[%s5210_s4 + $0x70] sm:$0xff] }
 0x2cd   :  { %v1656_v40 = vpop.f32.mrf.mxu2 }
 0x2ce   :  { %v1305_v55 = vpop.f32.mrf.mxu0  ;;  %v1657_v2 = vadd.f32 %v4764_v13, %v1656_v40  ;;  %v2347_v24 = vmax.f32 %v2331_v35, %v2107_v37  ;;  %v2585_v40 = vld [vmem:[%s5210_s4 + $0x90] sm:$0xff]  ;;  %v2579_v35 = vld [vmem:[%s5210_s4 + $0x60] sm:$0xff] }
 0x2cf   :  { %v1306_v6 = vadd.f32 %v4764_v13, %v1305_v55  ;;  %2358 = vxpose.xlu0.b32.cont [9/16] (narrow) %v2342_v57, 16  ;;  %3031 = vmatmul.msk.f32.gmra.mxu1 %vm2388_vm2, %v2342_v57  ;;  %v2577_v37 = vld [vmem:[%s5210_s4 + $0x50] sm:$0xff] }
 0x2d0   :  { %3047 = vmatmul.msk.f32.gmra.mxu2 %vm2388_vm2, %v2342_v57  ;;  %v2044_v56 = vmax.f32 %v1657_v2, 0.0 }
 0x2d1   :  { %v1927_v4 = vmax.f32 %v1306_v6, 0.0  ;;  %v1848_v12 = vpop.f32.mrf.mxu3 }
 0x2d2   :  { %v1849_v18 = vadd.f32 %v4764_v13, %v1848_v12  ;;  %v2332_v59 = vmax.f32 %v4841_v34, %v2044_v56 }
 0x2d3   :  { %v2343_v50 = vmax.f32 %v2327_v44, %v1927_v4 }
 0x2d4   :  { %v2108_v57 = vmax.f32 %v1849_v18, 0.0  ;;  %v2575_v18 = vld [vmem:[%s5210_s4 + $0x40] sm:$0xff] }
 0x2d5   :  { %v1659_v53 = vpop.f32.mrf.mxu2 }
 0x2d6   :  { %v1308_v60 = vpop.f32.mrf.mxu0  ;;  %v1660_v25 = vadd.f32 %v4764_v13, %v1659_v53  ;;  %v2348_v55 = vmax.f32 %v2332_v59, %v2108_v57  ;;  %v2573_v59 = vld [vmem:[%s5210_s4 + $0x30] sm:$0xff]  ;;  %v2571_v57 = vld [vmem:[%s5210_s4 + $0x20] sm:$0xff] }
 0x2d7   :  { %v1309_v20 = vadd.f32 %v4764_v13, %v1308_v60  ;;  %2359 = vxpose.xlu0.b32.cont [10/16] (narrow) %v2343_v50, 16  ;;  %3032 = vmatmul.msk.f32.gmra.mxu1 %vm2388_vm2, %v2343_v50 }
 0x2d8   :  { %3048 = vmatmul.msk.f32.gmra.mxu2 %vm2388_vm2, %v2343_v50  ;;  %v2045_v39 = vmax.f32 %v1660_v25, 0.0 }
 0x2d9   :  { %v1928_v45 = vmax.f32 %v1309_v20, 0.0  ;;  %v1851_v5 = vpop.f32.mrf.mxu3 }
 0x2da   :  { %v1852_v17 = vadd.f32 %v4764_v13, %v1851_v5  ;;  %v2333_v54 = vmax.f32 %v4855_v47, %v2045_v39  ;;  %v2569_v39 = vld [vmem:[%s5210_s4 + $0x10] sm:$0xff] }
 0x2db   :  { %v2344_v61 = vmax.f32 %v2328_v52, %v1928_v45 }
 0x2dc   :  { %v2109_v11 = vmax.f32 %v1852_v17, 0.0  ;;  %v2567_v17 = vld [vmem:[%s5210_s4] sm:$0xff] }
 0x2de   :  { %v2349_v6 = vmax.f32 %v2333_v54, %v2109_v11 }
 0x2df   :  { %2360 = vxpose.xlu0.b32.cont [11/16] (narrow) %v2344_v61, 16  ;;  %3033 = vmatmul.msk.f32.gmra.mxu1 %vm2388_vm2, %v2344_v61 }
 0x2e0   :  { %3049 = vmatmul.msk.f32.gmra.mxu2 %vm2388_vm2, %v2344_v61 }
 0x2e7   :  { %2361 = vxpose.xlu0.b32.cont [12/16] (narrow) %v2345_v22, 16  ;;  %3034 = vmatmul.msk.f32.gmra.mxu1 %vm2388_vm2, %v2345_v22 }
 0x2e8   :  { %3050 = vmatmul.msk.f32.gmra.mxu2 %vm2388_vm2, %v2345_v22  ;;  %v2591_v22 = vld [vmem:[%s5210_s4 + $0xc0] sm:$0xff] }
 0x2ef   :  { %2362 = vxpose.xlu0.b32.cont [13/16] (narrow) %v2346_v15, 16  ;;  %3035 = vmatmul.msk.f32.gmra.mxu1 %vm2388_vm2, %v2346_v15 }
 0x2f0   :  { %3051 = vmatmul.msk.f32.gmra.mxu2 %vm2388_vm2, %v2346_v15 }
 0x2f7   :  { %2363 = vxpose.xlu0.b32.cont [14/16] (narrow) %v2347_v24, 16  ;;  %3036 = vmatmul.msk.f32.gmra.mxu1 %vm2388_vm2, %v2347_v24 }
 0x2f8   :  { %3052 = vmatmul.msk.f32.gmra.mxu2 %vm2388_vm2, %v2347_v24 }
 0x2ff   :  { %2364 = vxpose.xlu0.b32.cont [15/16] (narrow) %v2348_v55, 16  ;;  %3037 = vmatmul.msk.f32.gmra.mxu1 %vm2388_vm2, %v2348_v55 }
 0x300   :  { %3053 = vmatmul.msk.f32.gmra.mxu2 %vm2388_vm2, %v2348_v55 }
 0x307   :  { %2365 = vxpose.xlu0.b32.end [16/16] (narrow) %v2349_v6, 16  ;;  %3038 = vmatmul.msk.f32.gmra.mxu1 %vm2388_vm2, %v2349_v6 }
 0x308   :  { %3054 = vmatmul.msk.f32.gmra.mxu2 %vm2388_vm2, %v2349_v6  ;;  %v2598_v6 = vld [vmem:[%s5210_s4 + $0xf8] sm:$0xff] }
 0x30c   :  { %v4975_v34 = vpop.f32.mrf.mxu1 }
 0x313   :  { %v4977_v4 = vpop.f32.mrf.mxu2 }
 0x314   :  { %v4979_v36 = vpop.f32.mrf.mxu1 }
 0x315   :  { %v2601_v54 = vmul.f32 %v2569_v39, %v4979_v36  ;;  %v2594_v36 = vld [vmem:[%s5210_s4 + $0xd8] sm:$0xff] }
 0x31b   :  { %v4981_v13 = vpop.f32.mrf.mxu2 }
 0x31c   :  { %v4983_v27 = vpop.f32.mrf.mxu1 }
 0x31d   :  { %v2603_v55 = vmul.f32 %v2571_v57, %v4983_v27  ;;  %v2688_v57 = vld [vmem:[%s5212_s6 + $0x80] sm:$0xff] }
 0x323   :  { %v4985_v14 = vpop.f32.mrf.mxu2 }
 0x324   :  { %v2463_v47 = vpop.f32.mrf.mxu1 }
 0x325   :  { %v2605_v5 = vmul.f32 %v2573_v59, %v2463_v47  ;;  %v2599_v47 = vmul.f32 %v2567_v17, %v4975_v34  ;;  %v2592_v34 = vld [vmem:[%s5210_s4 + $0xc8] sm:$0xff]  ;;  %v2690_v59 = vld [vmem:[%s5212_s6 + $0x90] sm:$0xff] }
 0x32b   :  { %v4987_v44 = vpop.f32.mrf.mxu2 }
 0x32c   :  { %v2466_v30 = vpop.f32.mrf.mxu1 }
 0x32d   :  { %v2607_v25 = vmul.f32 %v2575_v18, %v2466_v30  ;;  %v2596_v30 = vld [vmem:[%s5210_s4 + $0xe8] sm:$0xff]  ;;  %v2692_v18 = vld [vmem:[%s5212_s6 + $0xa0] sm:$0xff] }
 0x333   :  { %v4989_v63 = vpop.f32.mrf.mxu2 }
 0x334   :  { %v2469_v50 = vpop.f32.mrf.mxu1 }
 0x335   :  { %v2609_v53 = vmul.f32 %v2577_v37, %v2469_v50  ;;  %v2631_v50 = vld [vmem:[%s5211_s5] sm:$0x3]  ;;  %v2695_v37 = vld [vmem:[%s5212_s6 + $0xb8] sm:$0xff] }
 0x33b   :  { %v4991_v41 = vpop.f32.mrf.mxu2 }
 0x33c   :  { %v2472_v60 = vpop.f32.mrf.mxu1 }
 0x33d   :  { %v2611_v56 = vmul.f32 %v2579_v35, %v2472_v60  ;;  %v2673_v35 = vld [vmem:[%s5212_s6 + $0x8] sm:$0xff] }
 0x343   :  { %v4993_v20 = vpop.f32.mrf.mxu2 }
 0x344   :  { %v2475_v32 = vpop.f32.mrf.mxu1 }
 0x345   :  { %v2613_v2 = vmul.f32 %v2581_v33, %v2475_v32  ;;  %v2675_v33 = vld [vmem:[%s5212_s6 + $0x18] sm:$0xff] }
 0x34b   :  { %v4995_v62 = vpop.f32.mrf.mxu2 }
 0x34c   :  { %v2478_v26 = vpop.f32.mrf.mxu1 }
 0x34d   :  { %v2615_v12 = vmul.f32 %v2583_v48, %v2478_v26  ;;  %v2590_v26 = vld [vmem:[%s5210_s4 + $0xb8] sm:$0xff]  ;;  %v2677_v48 = vld [vmem:[%s5212_s6 + $0x28] sm:$0xff] }
 0x353   :  { %v4997_v45 = vpop.f32.mrf.mxu2 }
 0x354   :  { %v2481_v21 = vpop.f32.mrf.mxu1 }
 0x355   :  { %v2617_v15 = vmul.f32 %v2585_v40, %v2481_v21  ;;  %v2679_v40 = vld [vmem:[%s5212_s6 + $0x38] sm:$0xff] }
 0x35b   :  { %v4999_v49 = vpop.f32.mrf.mxu2 }
 0x35c   :  { %v2484_v52 = vpop.f32.mrf.mxu1 }
 0x35d   :  { %v2619_v38 = vmul.f32 %v2587_v7, %v2484_v52  ;;  %v2588_v52 = vld [vmem:[%s5210_s4 + $0xa8] sm:$0xff]  ;;  %v2682_v7 = vld [vmem:[%s5212_s6 + $0x50] sm:$0xff] }
 0x363   :  { %v5001_v16 = vpop.f32.mrf.mxu2 }
 0x364   :  { %v2487_v43 = vpop.f32.mrf.mxu1 }
 0x365   :  { %v2621_v58 = vmul.f32 %v2589_v0, %v2487_v43 }
 0x36b   :  { %v5003_v61 = vpop.f32.mrf.mxu2 }
 0x36c   :  { %v2490_v23 = vpop.f32.mrf.mxu1  ;;  %v2622_v43 = vmul.f32 %v2590_v26, %v5003_v61 }
 0x36d   :  { %v2623_v28 = vmul.f32 %v2591_v22, %v2490_v23  ;;  %v2586_v23 = vld [vmem:[%s5210_s4 + $0x98] sm:$0xff] }
 0x36e   :  { %v2570_v22 = vld [vmem:[%s5210_s4 + $0x18] sm:$0xff] }
 0x373   :  { %v5008_v1 = vpop.f32.mrf.mxu2 }
 0x374   :  { %v2493_v51 = vpop.f32.mrf.mxu1  ;;  %v2624_v21 = vmul.f32 %v2592_v34, %v5008_v1  ;;  %v2582_v1 = vld [vmem:[%s5210_s4 + $0x78] sm:$0xff] }
 0x375   :  { %v2625_v29 = vmul.f32 %v2593_v3, %v2493_v51  ;;  %v2620_v51 = vmul.f32 %v2588_v52, %v5001_v16  ;;  %v2614_v16 = vmul.f32 %v2582_v1, %v4995_v62  ;;  %v2574_v3 = vld [vmem:[%s5210_s4 + $0x38] sm:$0xff] }
 0x37b   :  { %v2558_v8 = vpop.f32.mrf.mxu2 }
 0x37c   :  { %v2496_v10 = vpop.f32.mrf.mxu1  ;;  %v2626_v32 = vmul.f32 %v2594_v36, %v2558_v8  ;;  %v2680_v8 = vld [vmem:[%s5212_s6 + $0x40] sm:$0xff] }
 0x37d   :  { %v2627_v31 = vmul.f32 %v2595_v9, %v2496_v10  ;;  %v2584_v10 = vld [vmem:[%s5210_s4 + $0x88] sm:$0xff] }
 0x37e   :  { %v2616_v61 = vmul.f32 %v2584_v10, %v4997_v45  ;;  %v2580_v9 = vld [vmem:[%s5210_s4 + $0x68] sm:$0xff] }
 0x383   :  { %v2561_v24 = vpop.f32.mrf.mxu2 }
 0x384   :  { %v2499_v46 = vpop.f32.mrf.mxu1  ;;  %v2628_v60 = vmul.f32 %v2596_v30, %v2561_v24  ;;  %v2693_v24 = vld [vmem:[%s5212_s6 + $0xa8] sm:$0xff] }
 0x385   :  { %v2629_v42 = vmul.f32 %v2597_v19, %v2499_v46  ;;  %v2618_v19 = vmul.f32 %v2586_v23, %v4999_v49  ;;  %v2578_v46 = vld [vmem:[%s5210_s4 + $0x58] sm:$0xff]  ;;  %v2612_v49 = vmul.f32 %v2580_v9, %v4993_v20  ;;  %v2606_v20 = vmul.f32 %v2574_v3, %v4987_v44 }
 0x386   :  { %v2610_v45 = vmul.f32 %v2578_v46, %v4991_v41  ;;  %v2687_v44 = vld [vmem:[%s5212_s6 + $0x78] sm:$0xff] }
 0x387   :  { %2632 = vmatpush.msrb.mxu3 %v2629_v42  ;;  %v2576_v42 = vld [vmem:[%s5210_s4 + $0x48] sm:$0xff] }
 0x388   :  { %v2608_v62 = vmul.f32 %v2576_v42, %v4989_v63  ;;  %v2602_v63 = vmul.f32 %v2570_v22, %v4981_v13  ;;  %v2683_v13 = vld [vmem:[%s5212_s6 + $0x58] sm:$0xff] }
 0x389   :  { %2633 = vmatpush.msrb.mxu3 %v2627_v31  ;;  %v2572_v31 = vld [vmem:[%s5210_s4 + $0x28] sm:$0xff] }
 0x38a   :  { %v2604_v41 = vmul.f32 %v2572_v31, %v4985_v14  ;;  %v2686_v14 = vld [vmem:[%s5212_s6 + $0x70] sm:$0xff] }
 0x38b   :  { %2634 = vmatpush.msrb.mxu3 %v2625_v29  ;;  %v2564_v11 = vpop.f32.mrf.mxu2  ;;  %v2568_v29 = vld [vmem:[%s5210_s4 + $0x8] sm:$0xff] }
 0x38c   :  { %v2630_v27 = vmul.f32 %v2598_v6, %v2564_v11  ;;  %v2600_v0 = vmul.f32 %v2568_v29, %v4977_v4  ;;  %v2684_v4 = vld [vmem:[%s5212_s6 + $0x60] sm:$0xff] }
 0x38d   :  { %2635 = vmatpush.msrb.mxu3 %v2623_v28  ;;  %v2685_v28 = vld [vmem:[%s5212_s6 + $0x68] sm:$0xff]  ;;  %v3070_v11 = vld [vmem:[%s5213_s7] ss:$0 sm:$0xff] }
 0x38f   :  { %2636 = vmatpush.msrb.mxu3 %v2621_v58  ;;  %v2681_v58 = vld [vmem:[%s5212_s6 + $0x48] sm:$0xff] }
 0x391   :  { %2637 = vmatpush.msrb.mxu3 %v2619_v38  ;;  %v2678_v38 = vld [vmem:[%s5212_s6 + $0x30] sm:$0xff] }
 0x393   :  { %2638 = vmatpush.msrb.mxu3 %v2617_v15  ;;  %v2676_v15 = vld [vmem:[%s5212_s6 + $0x20] sm:$0xff] }
 0x395   :  { %2639 = vmatpush.msrb.mxu3 %v2615_v12  ;;  %v2674_v12 = vld [vmem:[%s5212_s6 + $0x10] sm:$0xff] }
 0x397   :  { %2640 = vmatpush.msrb.mxu3 %v2613_v2  ;;  %v2672_v2 = vld [vmem:[%s5212_s6] sm:$0xff] }
 0x399   :  { %2641 = vmatpush.msrb.mxu3 %v2611_v56  ;;  %v2694_v56 = vld [vmem:[%s5212_s6 + $0xb0] sm:$0xff] }
 0x39b   :  { %2642 = vmatpush.msrb.mxu3 %v2609_v53  ;;  %v2691_v53 = vld [vmem:[%s5212_s6 + $0x98] sm:$0xff] }
 0x39d   :  { %2643 = vmatpush.msrb.mxu3 %v2607_v25  ;;  %v2689_v25 = vld [vmem:[%s5212_s6 + $0x88] sm:$0xff]  ;;  %s3099_s6 = smov [#allocation2]  }
 0x39e   :  { %s2753_s25 = sshll.u32 %s3099_s6, 4  ;;  %s2754_s25 = int_to_ptr.vmem [resolvable:$true] %s2753_s25 }
 0x39f   :  { %2644 = vmatpush.msrb.mxu3 %v2605_v5 }
 0x3a1   :  { %2645 = vmatpush.msrb.mxu3 %v2603_v55  ;;  %v2366_v55 = vpop.trf.xlu0 }
 0x3a2   :  { %2382 = vst [vmem:[%s5214_s8] sm:$0xff] %v2366_v55 }
 0x3a3   :  { %2646 = vmatpush.msrb.mxu3 %v2601_v54 }
 0x3a5   :  { %2647 = vmatpush.msrb.mxu3 %v2599_v47 }
 0x3a6   :  { %2648 = vmatmul.f32.vlgmr.msrb.gmra.mxu3 %v2631_v50 }
 0x3a7   :  { %2652 = vmatpush.msra.mxu3 %v2630_v27 }
 0x3a9   :  { %2653 = vmatpush.msra.mxu3 %v2628_v60  ;;  %v2367_v17 = vpop.trf.xlu0 }
 0x3aa   :  { %2383 = vst [vmem:[%s5214_s8 + $0x8] sm:$0xff] %v2367_v17 }
 0x3ab   :  { %2654 = vmatpush.msra.mxu3 %v2626_v32 }
 0x3ad   :  { %2655 = vmatpush.msra.mxu3 %v2624_v21 }
 0x3af   :  { %2656 = vmatpush.msra.mxu3 %v2622_v43 }
 0x3b1   :  { %2657 = vmatpush.msra.mxu3 %v2620_v51 }
 0x3b3   :  { %2658 = vmatpush.msra.mxu3 %v2618_v19 }
 0x3b5   :  { %2659 = vmatpush.msra.mxu3 %v2616_v61 }
 0x3b7   :  { %2660 = vmatpush.msra.mxu3 %v2614_v16 }
 0x3b9   :  { %2661 = vmatpush.msra.mxu3 %v2612_v49 }
 0x3bb   :  { %2662 = vmatpush.msra.mxu3 %v2610_v45 }
 0x3bd   :  { %2663 = vmatpush.msra.mxu3 %v2608_v62 }
 0x3bf   :  { %2664 = vmatpush.msra.mxu3 %v2606_v20 }
 0x3c1   :  { %2665 = vmatpush.msra.mxu3 %v2604_v41 }
 0x3c3   :  { %2666 = vmatpush.msra.mxu3 %v2602_v63 }
 0x3c5   :  { %2667 = vmatpush.msra.mxu3 %v2600_v0 }
 0x3c6   :  { %2668 = vmatmul.f32.vlgmr.msra.gmra.mxu3 %v2631_v50 }
 0x3c7   :  { %2704 = vmatpush.msrb.mxu3 %v2687_v44 }
 0x3c9   :  { %2705 = vmatpush.msrb.mxu3 %v2686_v14 }
 0x3cb   :  { %2706 = vmatpush.msrb.mxu3 %v2685_v28 }
 0x3cd   :  { %2707 = vmatpush.msrb.mxu3 %v2684_v4 }
 0x3cf   :  { %2708 = vmatpush.msrb.mxu3 %v2683_v13 }
 0x3d1   :  { %2709 = vmatpush.msrb.mxu3 %v2682_v7 }
 0x3d3   :  { %2710 = vmatpush.msrb.mxu3 %v2681_v58 }
 0x3d5   :  { %2711 = vmatpush.msrb.mxu3 %v2680_v8 }
 0x3d7   :  { %2712 = vmatpush.msrb.mxu3 %v2679_v40 }
 0x3d9   :  { %2713 = vmatpush.msrb.mxu3 %v2678_v38 }
 0x3db   :  { %2714 = vmatpush.msrb.mxu3 %v2677_v48 }
 0x3dd   :  { %2715 = vmatpush.msrb.mxu3 %v2676_v15 }
 0x3df   :  { %2716 = vmatpush.msrb.mxu3 %v2675_v33 }
 0x3e1   :  { %2717 = vmatpush.msrb.mxu3 %v2674_v12 }
 0x3e3   :  { %2718 = vmatpush.msrb.mxu3 %v2673_v35 }
 0x3e5   :  { %2719 = vmatpush.msrb.mxu3 %v2672_v2 }
 0x3e7   :  { %2732 = vmatpush.msra.mxu3 %v2695_v37 }
 0x3e9   :  { %2733 = vmatpush.msra.mxu3 %v2694_v56 }
 0x3eb   :  { %2734 = vmatpush.msra.mxu3 %v2693_v24 }
 0x3ed   :  { %2735 = vmatpush.msra.mxu3 %v2692_v18 }
 0x3ef   :  { %2736 = vmatpush.msra.mxu3 %v2691_v53 }
 0x3f1   :  { %2737 = vmatpush.msra.mxu3 %v2690_v59 }
 0x3f3   :  { %2738 = vmatpush.msra.mxu3 %v2689_v25 }
 0x3f5   :  { %2739 = vmatpush.msra.mxu3 %v2688_v57 }
 0x429   :  { %v2649_v5 = vpop.f32.mrf.mxu3 }
 0x42a   :  { %2720 = vmatmul.f32.vlgmr.msrb.gmra.mxu3 %v2649_v5 }
 0x449   :  { %v2669_v39 = vpop.f32.mrf.mxu3 }
 0x44a   :  { %3055 = vmatmul.msk.f32.vlgmr.msra.gmra.mxu3 %vm2700_vm3, %v2669_v39 }
 0x4ad   :  { %v2721_v54 = vpop.f32.mrf.mxu3 }
 0x4ae   :  { %v2722_v6 = vadd.f32 %v3070_v11, %v2721_v54 }
 0x4cd   :  { %v2741_v47 = vpop.f32.mrf.mxu3 }
 0x4ce   :  { %v2742_v30 = vadd.f32 %v2741_v47, %v2722_v6 }
 0x4d0   :  { %2745 = vst.msk [vmem:[#allocation2] sm:$0x3] %vm2744_vm4, %v2742_v30 }
 0x4d1   :  { %2758 = dma.vmem_to_hbm [thread:$0]  %s2754_s25, 32, %s2756_s27, [#allocation3]  }
 0x4d2   :  { %3097 = dma.done.wait [#allocation3], 32  }
 0x4d3   :  { %3098 = vsyncadd [#allocation3], 4294967264 }
 0x4d4   :  { %2765 = vsyncpa [#allocation3], 1 }

</bundles_post_ra>
